<compile_context>
chip_gen: v5e
topology: v5e:2x2
jax: 0.10.0
libtpu: 0.0.40
codegen_flags: <defaults>
</compile_context>

<pallas_src>
import functools

import jax
import jax.numpy as jnp
import numpy as np
from jax import lax
from jax.experimental import pallas as pl
from jax.experimental.pallas import tpu as pltpu

EPS = 1e-5
TM = 256   # row tile for flat (M, C) kernels; keeps grid >= 2 at the test shapes (v7x)


def _round_up(x, m):
    return ((x + m - 1) // m) * m


def _cparams(n_parallel, block_bytes, working_bytes=0):
    # Per-call scoped-VMEM budget from actual footprints: double-buffered pipeline
    # blocks + in-kernel temporaries + compiler headroom; clamped to stay v7x-safe.
    need = 2 * block_bytes + working_bytes + (8 << 20)
    vmem = int(min(max(need, 16 << 20), 48 << 20))
    return pltpu.CompilerParams(
        dimension_semantics=("parallel",) * n_parallel,
        vmem_limit_bytes=vmem)


def _pad1(v):
    """Zero 1-px border on the two leading (H, W) dims, entirely in VMEM (concat-based)."""
    h, w, c = v.shape
    zrow = jnp.zeros((1, w, c), v.dtype)
    v = jnp.concatenate([zrow, v, zrow], axis=0)
    zcol = jnp.zeros((h + 2, 1, c), v.dtype)
    return jnp.concatenate([zcol, v, zcol], axis=1)


# --------------------------- fused 3x3 conv kernel ---------------------------

def _conv3x3_kernel(*refs, apply_prologue, out_padded, stride):
    """One padded image -> raw 3x3 conv output + per-image BN partial stats.

    refs (with prologue):  x, w, pro, out, stats
    refs (no prologue):    x, w, out, stats
      x:     (1, Hp, Wp, Cin)           bf16  zero-padded input image
      w:     (9*Cin, Cout)              bf16  im2col-ordered weights (kh, kw, cin)
      pro:   (2, Cin)                   f32   previous-stage BN (scale, bias), folded here
      out:   (1, Ho[+2], Wo[+2], Cout)  bf16  raw conv output (zero border if out_padded)
      stats: (1, 2, Cout)               f32   per-image [sum, sum_sq] of the conv output
    """
    if apply_prologue:
        x_ref, w_ref, pro_ref, o_ref, stats_ref = refs
    else:
        x_ref, w_ref, o_ref, stats_ref = refs

    Cin = x_ref.shape[3]
    Cout = stats_ref.shape[2]
    Hp, Wp = x_ref.shape[1], x_ref.shape[2]
    if out_padded:
        Ho, Wo = o_ref.shape[1] - 2, o_ref.shape[2] - 2
    else:
        Ho, Wo = o_ref.shape[1], o_ref.shape[2]

    x = x_ref[0]                                         # (Hp, Wp, Cin) bf16
    if apply_prologue:
        # Fused BN + ReLU of the previous stage, applied to the interior only so the
        # 1-px border stays exactly zero (reference pads the POST-activation tensor);
        # a single f32->bf16 cast of the activation, then re-pad in VMEM.
        inner = x[1:Hp - 1, 1:Wp - 1, :].astype(jnp.float32)
        act = jnp.maximum(inner * pro_ref[0] + pro_ref[1], 0.0).astype(jnp.bfloat16)
        x = _pad1(act)

    # In-VMEM im2col slab: one deep MXU matmul (K = 9*Cin) instead of 9 shallow ones.
    cols = []
    for kh in range(3):
        for kw in range(3):
            if stride == 1:
                tap = x[kh:kh + Ho, kw:kw + Wo, :]
            else:
                tap = x[kh:kh + (Ho - 1) * stride + 1:stride,
                        kw:kw + (Wo - 1) * stride + 1:stride, :]
            cols.append(tap)
    patches = jnp.concatenate(cols, axis=-1).reshape(Ho * Wo, 9 * Cin)
    acc = jnp.dot(patches, w_ref[...], preferred_element_type=jnp.float32)

    # Stats epilogue rides on the f32 accumulator -- no extra HBM read pass.
    stats_ref[0] = jnp.stack(
        [jnp.sum(acc, axis=0), jnp.sum(acc * acc, axis=0)], axis=0)

    y = acc.astype(o_ref.dtype).reshape(Ho, Wo, Cout)
    if out_padded:
        # Write a zero-bordered padded block so the next conv needs no XLA pad pass.
        o_ref[0] = _pad1(y)
    else:
        o_ref[0] = y


def conv3x3(xp, w_flat, cout, *, prologue=None, stride=1, out_padded=False):
    """3x3 conv of an already zero-padded NHWC bf16 input; grid = one image per step."""
    N, Hp, Wp, Cin = xp.shape
    Ho = (Hp - 3) // stride + 1
    Wo = (Wp - 3) // stride + 1
    oh, ow = (Ho + 2, Wo + 2) if out_padded else (Ho, Wo)

    in_specs = [pl.BlockSpec((1, Hp, Wp, Cin), lambda n: (n, 0, 0, 0)),
                pl.BlockSpec((9 * Cin, cout), lambda n: (0, 0))]
    args = [xp, w_flat]
    if prologue is not None:
        in_specs.append(pl.BlockSpec((2, Cin), lambda n: (0, 0)))
        args.append(prologue)

    block_bytes = (Hp * Wp * Cin * 2 + 9 * Cin * cout * 2 + 2 * Cin * 4
                   + oh * ow * cout * 2 + 2 * cout * 4)
    working_bytes = (Hp * Wp * Cin * 6            # f32 prologue + bf16 re-padded copy
                     + Ho * Wo * 9 * Cin * 2      # in-VMEM im2col slab
                     + Ho * Wo * cout * 4)        # f32 accumulator

    out, stats = pl.pallas_call(
        functools.partial(_conv3x3_kernel, apply_prologue=prologue is not None,
                          out_padded=out_padded, stride=stride),
        out_shape=(jax.ShapeDtypeStruct((N, oh, ow, cout), jnp.bfloat16),
                   jax.ShapeDtypeStruct((N, 2, cout), jnp.float32)),
        grid=(N,),
        in_specs=in_specs,
        out_specs=(pl.BlockSpec((1, oh, ow, cout), lambda n: (n, 0, 0, 0)),
                   pl.BlockSpec((1, 2, cout), lambda n: (n, 0, 0))),
        compiler_params=_cparams(1, block_bytes, working_bytes),
    )(*args)
    # TODO(synk): for large images, tile the grid over output-row bands with a halo
    #             (manual DMA) instead of one full image per step (v7x: 64 MiB VMEM).
    return out, jnp.sum(stats, axis=0)


# ----------------------- matmul with fused stats epilogue --------------------

def _matmul_stats_kernel(a_ref, b_ref, o_ref, stats_ref):
    a = a_ref[...]
    if a_ref.dtype != jnp.bfloat16:
        a = a.astype(jnp.bfloat16)          # cast in-kernel; no standalone HBM pre-pass
    acc = jnp.dot(a, b_ref[...], preferred_element_type=jnp.float32)
    o_ref[...] = acc.astype(o_ref.dtype)
    stats_ref[0] = jnp.stack(
        [jnp.sum(acc, axis=0), jnp.sum(acc * acc, axis=0)], axis=0)


def matmul_stats(a, b):
    """(M, K) @ (K, Cout) with per-row-tile BN partial stats fused in the epilogue."""
    M, K = a.shape
    cout = b.shape[-1]
    tm = min(TM, _round_up(M, 8))
    Mp = _round_up(M, tm)
    if Mp != M:
        a = jnp.pad(a, ((0, Mp - M), (0, 0)))   # zero rows are stats-neutral
    grid_m = Mp // tm
    block_bytes = (tm * K * a.dtype.itemsize + K * cout * 2
                   + tm * cout * 2 + 2 * cout * 4)
    out, stats = pl.pallas_call(
        _matmul_stats_kernel,
        out_shape=(jax.ShapeDtypeStruct((Mp, cout), jnp.bfloat16),
                   jax.ShapeDtypeStruct((grid_m, 2, cout), jnp.float32)),
        grid=(grid_m,),
        in_specs=[pl.BlockSpec((tm, K), lambda i: (i, 0)),
                  pl.BlockSpec((K, cout), lambda i: (0, 0))],
        out_specs=(pl.BlockSpec((tm, cout), lambda i: (i, 0)),
                   pl.BlockSpec((1, 2, cout), lambda i: (i, 0, 0))),
        compiler_params=_cparams(1, block_bytes, tm * cout * 4),
    )(a, b)
    return out[:M], jnp.sum(stats, axis=0)


# ------------- fused BN + BN(shortcut) + add + ReLU + NHWC->NCHW -------------

def _bn_add_relu_nchw_kernel(y_ref, sc_ref, p_ref, o_ref):
    # p_ref: (3, C) f32 = [scale_y, scale_sc, bias_y + bias_sc]  (precomputed on host)
    _, C, HW = o_ref.shape
    y = y_ref[0].astype(jnp.float32).reshape(HW, C)
    s = sc_ref[0].astype(jnp.float32).reshape(HW, C)
    r = jnp.maximum(y * p_ref[0] + s * p_ref[1] + p_ref[2], 0.0)
    o_ref[0] = r.T     # in-VMEM transpose -> lane-dense NCHW store, no XLA relayout pass


def bn_add_relu_nchw(y, sc, p):
    """Fused epilogue; emits the block output directly as NCHW (N, C, Ho*Wo) f32."""
    N, Ho, Wo, C = y.shape
    block_bytes = 2 * Ho * Wo * C * 2 + 3 * C * 4 + C * Ho * Wo * 4
    return pl.pallas_call(
        _bn_add_relu_nchw_kernel,
        out_shape=jax.ShapeDtypeStruct((N, C, Ho * Wo), jnp.float32),
        grid=(N,),
        in_specs=[pl.BlockSpec((1, Ho, Wo, C), lambda n: (n, 0, 0, 0)),
                  pl.BlockSpec((1, Ho, Wo, C), lambda n: (n, 0, 0, 0)),
                  pl.BlockSpec((3, C), lambda n: (0, 0))],
        out_specs=pl.BlockSpec((1, C, Ho * Wo), lambda n: (n, 0, 0)),
        compiler_params=_cparams(1, block_bytes, 3 * Ho * Wo * C * 4),
    )(y, sc, p)


# ------------------------------- JAX glue ------------------------------------

def bn_affine(stats, count, gamma, beta):
    """Fold training-mode BatchNorm into a per-channel (scale, bias); tiny host math."""
    mean = stats[0] / count
    var = jnp.maximum(stats[1] / count - mean * mean, 0.0)   # clamp E[x^2]-mean^2
    scale = gamma * lax.rsqrt(var + EPS)
    return scale, beta - mean * scale


def resblock_forward(x_nchw, params, stride):
    x = jnp.transpose(x_nchw, (0, 2, 3, 1)).astype(jnp.bfloat16)   # NHWC, bf16 once
    N, H, W, Cin = x.shape
    Cmid = params["w1"].shape[-1]
    Ho = (H - 1) // stride + 1
    Wo = (W - 1) // stride + 1
    M = N * Ho * Wo

    # ---- conv1 (3x3, stride s, pad 1): raw output written WITH its zero border so
    #      conv2 needs no separate XLA pad pass; fused BN1 partial stats. -------------
    xp = jnp.pad(x, ((0, 0), (1, 1), (1, 1), (0, 0)))
    w1 = params["w1"].reshape(9 * Cin, Cmid).astype(jnp.bfloat16)
    y1p, st1 = conv3x3(xp, w1, Cmid, stride=stride, out_padded=True)
    scale1, bias1 = bn_affine(st1, M, params["g1"], params["b1"])

    # ---- conv2 (3x3, stride 1, pad 1): BN1 + ReLU folded into its prologue ----------
    w2 = params["w2"].reshape(9 * Cmid, Cmid).astype(jnp.bfloat16)
    pro = jnp.stack([scale1, bias1], axis=0).astype(jnp.float32)    # (2, Cmid)
    y2, st2 = conv3x3(y1p, w2, Cmid, prologue=pro)
    scale2, bias2 = bn_affine(st2, M, params["g2"], params["b2"])

    # ---- shortcut --------------------------------------------------------------------
    if "ws" in params:
        xs = (x if stride == 1 else x[:, ::stride, ::stride, :]).reshape(M, Cin)
        scf, sts = matmul_stats(xs, params["ws"].astype(jnp.bfloat16))
        scale_s, bias_s = bn_affine(sts, M, params["gs"], params["bs"])
        sc = scf.reshape(N, Ho, Wo, Cmid)
    else:
        assert stride == 1, "identity shortcut requires stride == 1 (as in PyTorch)"
        sc = x
        scale_s = jnp.ones((Cmid,), jnp.float32)
        bias_s = jnp.zeros((Cmid,), jnp.float32)

    # ---- BN2 + BN_shortcut + add + ReLU + NHWC->NCHW in one fused pass ---------------
    p = jnp.stack([scale2, scale_s, bias2 + bias_s], axis=0).astype(jnp.float32)
    out = bn_add_relu_nchw(y2, sc, p)                   # (N, Cmid, Ho*Wo) f32, NCHW
    return out.reshape(N, Cmid, Ho, Wo)                 # free metadata reshape


def init_params(key, in_channel, out_channel):
    ks = jax.random.split(key, 3)
    params = {
        "w1": (jax.random.normal(ks[0], (3, 3, in_channel, out_channel)) * 0.1
               ).astype(jnp.float32),
        "g1": jnp.ones((out_channel,), jnp.float32),
        "b1": jnp.zeros((out_channel,), jnp.float32),
        "w2": (jax.random.normal(ks[1], (3, 3, out_channel, out_channel)) * 0.1
               ).astype(jnp.float32),
        "g2": jnp.ones((out_channel,), jnp.float32),
        "b2": jnp.zeros((out_channel,), jnp.float32),
    }
    if in_channel != out_channel:        # expansion == 1
        params["ws"] = (jax.random.normal(ks[2], (in_channel, out_channel)) * 0.1
                        ).astype(jnp.float32)
        params["gs"] = jnp.ones((out_channel,), jnp.float32)
        params["bs"] = jnp.zeros((out_channel,), jnp.float32)
    return params


# --------------------------- pure-JAX reference ------------------------------

def _bn_ref(y, g, b):
    mean = jnp.mean(y, axis=(0, 1, 2))
    var = jnp.mean((y - mean) ** 2, axis=(0, 1, 2))
    return (y - mean) / jnp.sqrt(var + EPS) * g + b


def reference_forward(x_nchw, params, stride):
    x = jnp.transpose(x_nchw, (0, 2, 3, 1)).astype(jnp.float32)
    dn = ("NHWC", "HWIO", "NHWC")
    y = lax.conv_general_dilated(x, params["w1"], (stride, stride),
                                 [(1, 1), (1, 1)], dimension_numbers=dn)
    y = jax.nn.relu(_bn_ref(y, params["g1"], params["b1"]))
    y = lax.conv_general_dilated(y, params["w2"], (1, 1),
                                 [(1, 1), (1, 1)], dimension_numbers=dn)
    y = _bn_ref(y, params["g2"], params["b2"])
    if "ws" in params:
        Cin, Cout = params["ws"].shape
        sc = lax.conv_general_dilated(x, params["ws"].reshape(1, 1, Cin, Cout),
                                      (stride, stride), "VALID", dimension_numbers=dn)
        sc = _bn_ref(sc, params["gs"], params["bs"])
    else:
        sc = x
    out = jax.nn.relu(y + sc)
    return jnp.transpose(out, (0, 3, 1, 2))


# ---------------------------------- main --------------------------------------

if __name__ == "__main__":
    key = jax.random.PRNGKey(0)
    k_x, k_p = jax.random.split(key)

    # Lane-dense channel counts (every kernel output has C = 128 lanes).
    N, in_channel, out_channel, H, W, stride = 2, 64, 128, 16, 16, 1
    x = jax.random.normal(k_x, (N, in_channel, H, W), dtype=jnp.float32)   # NCHW
    params = init_params(k_p, in_channel, out_channel)

    fwd = jax.jit(functools.partial(resblock_forward, stride=stride))
    out = jax.block_until_ready(fwd(x, params))

    ref = jax.block_until_ready(reference_forward(x, params, stride))
    assert out.shape == (N, out_channel, H, W), out.shape
    # bf16 MXU operands through two conv+BN stages -> compare loosely vs f32 reference.
    np.testing.assert_allclose(np.asarray(out), np.asarray(ref), rtol=5e-2, atol=5e-2)

    print("KERNEL_OK")
</pallas_src>

<mosaic_0001>
module attributes {stable_mosaic.version = 11 : i64} {
  func.func @_conv3x3_kernel(%arg0: i32, %arg1: memref<1x18x18x64xbf16, #tpu.memory_space<vmem>>, %arg2: memref<576x128xbf16, #tpu.memory_space<vmem>>, %arg3: memref<1x18x18x128xbf16, #tpu.memory_space<vmem>>, %arg4: memref<1x2x128xf32, #tpu.memory_space<vmem>>) attributes {dimension_semantics = [#tpu.dimension_semantics<parallel>], iteration_bounds = array<i64: 2>, scalar_prefetch = 0 : i64, scratch_operands = 0 : i64, tpu.core_type = #tpu.core_type<tc>, window_params = [{transform_indices = @transform_0, window_bounds = array<i64: 1, 18, 18, 64>}, {pipeline_mode = #tpu.pipeline_mode<synchronous>, transform_indices = @transform_1, window_bounds = array<i64: 576, 128>}, {transform_indices = @transform_2, window_bounds = array<i64: 1, 18, 18, 128>}, {transform_indices = @transform_3, window_bounds = array<i64: 1, 2, 128>}]} {
    %c0 = arith.constant 0 : index
    %c0_0 = arith.constant 0 : index
    %c0_1 = arith.constant 0 : index
    %c0_2 = arith.constant 0 : index
    %0 = vector.load %arg1[%c0, %c0_0, %c0_1, %c0_2] : memref<1x18x18x64xbf16, #tpu.memory_space<vmem>>, vector<1x18x18x64xbf16>
    %1 = vector.shape_cast %0 : vector<1x18x18x64xbf16> to vector<18x18x64xbf16>
    %2 = vector.extract_strided_slice %1 {offsets = [0, 0, 0], sizes = [16, 16, 64], strides = [1, 1, 1]} : vector<18x18x64xbf16> to vector<16x16x64xbf16>
    %3 = vector.extract_strided_slice %1 {offsets = [0, 1, 0], sizes = [16, 16, 64], strides = [1, 1, 1]} : vector<18x18x64xbf16> to vector<16x16x64xbf16>
    %4 = vector.extract_strided_slice %1 {offsets = [0, 2, 0], sizes = [16, 16, 64], strides = [1, 1, 1]} : vector<18x18x64xbf16> to vector<16x16x64xbf16>
    %5 = vector.extract_strided_slice %1 {offsets = [1, 0, 0], sizes = [16, 16, 64], strides = [1, 1, 1]} : vector<18x18x64xbf16> to vector<16x16x64xbf16>
    %6 = vector.extract_strided_slice %1 {offsets = [1, 1, 0], sizes = [16, 16, 64], strides = [1, 1, 1]} : vector<18x18x64xbf16> to vector<16x16x64xbf16>
    %7 = vector.extract_strided_slice %1 {offsets = [1, 2, 0], sizes = [16, 16, 64], strides = [1, 1, 1]} : vector<18x18x64xbf16> to vector<16x16x64xbf16>
    %8 = vector.extract_strided_slice %1 {offsets = [2, 0, 0], sizes = [16, 16, 64], strides = [1, 1, 1]} : vector<18x18x64xbf16> to vector<16x16x64xbf16>
    %9 = vector.extract_strided_slice %1 {offsets = [2, 1, 0], sizes = [16, 16, 64], strides = [1, 1, 1]} : vector<18x18x64xbf16> to vector<16x16x64xbf16>
    %10 = vector.extract_strided_slice %1 {offsets = [2, 2, 0], sizes = [16, 16, 64], strides = [1, 1, 1]} : vector<18x18x64xbf16> to vector<16x16x64xbf16>
    %11 = tpu.concatenate %2, %3, %4, %5, %6, %7, %8, %9, %10 in 2 : vector<16x16x64xbf16>, vector<16x16x64xbf16>, vector<16x16x64xbf16>, vector<16x16x64xbf16>, vector<16x16x64xbf16>, vector<16x16x64xbf16>, vector<16x16x64xbf16>, vector<16x16x64xbf16>, vector<16x16x64xbf16> -> vector<16x16x576xbf16>
    %12 = vector.shape_cast %11 : vector<16x16x576xbf16> to vector<256x576xbf16>
    %c0_3 = arith.constant 0 : index
    %c0_4 = arith.constant 0 : index
    %13 = vector.load %arg2[%c0_3, %c0_4] : memref<576x128xbf16, #tpu.memory_space<vmem>>, vector<576x128xbf16>
    %cst = arith.constant dense<0.000000e+00> : vector<256x128xf32>
    %14 = tpu.matmul %12, %13, %cst {dimension_numbers = #tpu.dot_dimension_numbers<[1], [0], [0], [1], [0, 0, 1, 1], [], []>} : vector<256x576xbf16>, vector<576x128xbf16>, vector<256x128xf32> -> vector<256x128xf32>
    %cst_5 = arith.constant dense<0.000000e+00> : vector<128xf32>
    %15 = vector.multi_reduction <add>, %14, %cst_5 [0] : vector<256x128xf32> to vector<128xf32>
    %16 = arith.mulf %14, %14 : vector<256x128xf32>
    %cst_6 = arith.constant dense<0.000000e+00> : vector<128xf32>
    %17 = vector.multi_reduction <add>, %16, %cst_6 [0] : vector<256x128xf32> to vector<128xf32>
    %18 = vector.shape_cast %15 : vector<128xf32> to vector<1x128xf32>
    %19 = vector.shape_cast %17 : vector<128xf32> to vector<1x128xf32>
    %20 = tpu.concatenate %18, %19 in 0 : vector<1x128xf32>, vector<1x128xf32> -> vector<2x128xf32>
    %c0_7 = arith.constant 0 : index
    %c0_8 = arith.constant 0 : index
    %c0_9 = arith.constant 0 : index
    %21 = vector.load %arg4[%c0_7, %c0_8, %c0_9] : memref<1x2x128xf32, #tpu.memory_space<vmem>>, vector<1x2x128xf32>
    %22 = vector.shape_cast %21 : vector<1x2x128xf32> to vector<2x128xf32>
    %23 = vector.shape_cast %20 : vector<2x128xf32> to vector<1x2x128xf32>
    tpu.vector_store %arg4[%c0_7, %c0_8, %c0_9], %23 {strides = array<i32>} : memref<1x2x128xf32, #tpu.memory_space<vmem>>, vector<1x2x128xf32>,
    %24 = arith.truncf %14 : vector<256x128xf32> to vector<256x128xbf16>
    %25 = vector.shape_cast %24 : vector<256x128xbf16> to vector<16x16x128xbf16>
    %cst_10 = arith.constant 0.000000e+00 : bf16
    %26 = vector.broadcast %cst_10 : bf16 to vector<1x16x128xbf16>
    %27 = tpu.concatenate %26, %25, %26 in 0 : vector<1x16x128xbf16>, vector<16x16x128xbf16>, vector<1x16x128xbf16> -> vector<18x16x128xbf16>
    %cst_11 = arith.constant 0.000000e+00 : bf16
    %28 = vector.broadcast %cst_11 : bf16 to vector<18x1x128xbf16>
    %29 = tpu.concatenate %28, %27, %28 in 1 : vector<18x1x128xbf16>, vector<18x16x128xbf16>, vector<18x1x128xbf16> -> vector<18x18x128xbf16>
    %c0_12 = arith.constant 0 : index
    %c0_13 = arith.constant 0 : index
    %c0_14 = arith.constant 0 : index
    %c0_15 = arith.constant 0 : index
    %30 = vector.load %arg3[%c0_12, %c0_13, %c0_14, %c0_15] : memref<1x18x18x128xbf16, #tpu.memory_space<vmem>>, vector<1x18x18x128xbf16>
    %31 = vector.shape_cast %30 : vector<1x18x18x128xbf16> to vector<18x18x128xbf16>
    %32 = vector.shape_cast %29 : vector<18x18x128xbf16> to vector<1x18x18x128xbf16>
    tpu.vector_store %arg3[%c0_12, %c0_13, %c0_14, %c0_15], %32 {strides = array<i32>} : memref<1x18x18x128xbf16, #tpu.memory_space<vmem>>, vector<1x18x18x128xbf16>,
    return
  }
  func.func @transform_0(%arg0: i32) -> (i32, i32, i32, i32) {
    %c0_i32 = arith.constant 0 : i32
    %c0_i32_0 = arith.constant 0 : i32
    %c0_i32_1 = arith.constant 0 : i32
    %c0_i32_2 = arith.constant 0 : i32
    return %arg0, %c0_i32, %c0_i32_0, %c0_i32_1 : i32, i32, i32, i32
  }
  func.func @transform_1(%arg0: i32) -> (i32, i32) {
    %c0_i32 = arith.constant 0 : i32
    %c0_i32_0 = arith.constant 0 : i32
    %c0_i32_1 = arith.constant 0 : i32
    return %c0_i32, %c0_i32_0 : i32, i32
  }
  func.func @transform_2(%arg0: i32) -> (i32, i32, i32, i32) {
    %c0_i32 = arith.constant 0 : i32
    %c0_i32_0 = arith.constant 0 : i32
    %c0_i32_1 = arith.constant 0 : i32
    %c0_i32_2 = arith.constant 0 : i32
    return %arg0, %c0_i32, %c0_i32_0, %c0_i32_1 : i32, i32, i32, i32
  }
  func.func @transform_3(%arg0: i32) -> (i32, i32, i32) {
    %c0_i32 = arith.constant 0 : i32
    %c0_i32_0 = arith.constant 0 : i32
    %c0_i32_1 = arith.constant 0 : i32
    return %arg0, %c0_i32, %c0_i32_0 : i32, i32, i32
  }
}

module attributes {stable_mosaic.version = 11 : i64} {
  func.func @_conv3x3_kernel(%arg0: i32, %arg1: memref<1x18x18x128xbf16, #tpu.memory_space<vmem>>, %arg2: memref<1152x128xbf16, #tpu.memory_space<vmem>>, %arg3: memref<2x128xf32, #tpu.memory_space<vmem>>, %arg4: memref<1x16x16x128xbf16, #tpu.memory_space<vmem>>, %arg5: memref<1x2x128xf32, #tpu.memory_space<vmem>>) attributes {dimension_semantics = [#tpu.dimension_semantics<parallel>], iteration_bounds = array<i64: 2>, scalar_prefetch = 0 : i64, scratch_operands = 0 : i64, tpu.core_type = #tpu.core_type<tc>, window_params = [{transform_indices = @transform_0, window_bounds = array<i64: 1, 18, 18, 128>}, {pipeline_mode = #tpu.pipeline_mode<synchronous>, transform_indices = @transform_1, window_bounds = array<i64: 1152, 128>}, {pipeline_mode = #tpu.pipeline_mode<synchronous>, transform_indices = @transform_2, window_bounds = array<i64: 2, 128>}, {transform_indices = @transform_3, window_bounds = array<i64: 1, 16, 16, 128>}, {transform_indices = @transform_4, window_bounds = array<i64: 1, 2, 128>}]} {
    %c0 = arith.constant 0 : index
    %c0_0 = arith.constant 0 : index
    %c0_1 = arith.constant 0 : index
    %c0_2 = arith.constant 0 : index
    %0 = vector.load %arg1[%c0, %c0_0, %c0_1, %c0_2] : memref<1x18x18x128xbf16, #tpu.memory_space<vmem>>, vector<1x18x18x128xbf16>
    %1 = vector.shape_cast %0 : vector<1x18x18x128xbf16> to vector<18x18x128xbf16>
    %2 = vector.extract_strided_slice %1 {offsets = [1, 1, 0], sizes = [16, 16, 128], strides = [1, 1, 1]} : vector<18x18x128xbf16> to vector<16x16x128xbf16>
    %3 = arith.extf %2 : vector<16x16x128xbf16> to vector<16x16x128xf32>
    %c0_3 = arith.constant 0 : index
    %c0_4 = arith.constant 0 : index
    %4 = vector.load %arg3[%c0_3, %c0_4] : memref<2x128xf32, #tpu.memory_space<vmem>>, vector<1x128xf32>
    %5 = vector.shape_cast %4 : vector<1x128xf32> to vector<128xf32>
    %6 = vector.shape_cast %5 : vector<128xf32> to vector<1x1x128xf32>
    %7 = vector.broadcast %6 : vector<1x1x128xf32> to vector<16x16x128xf32>
    %8 = arith.mulf %3, %7 : vector<16x16x128xf32>
    %c1 = arith.constant 1 : index
    %c0_5 = arith.constant 0 : index
    %9 = vector.load %arg3[%c1, %c0_5] : memref<2x128xf32, #tpu.memory_space<vmem>>, vector<1x128xf32>
    %10 = vector.shape_cast %9 : vector<1x128xf32> to vector<128xf32>
    %11 = vector.shape_cast %10 : vector<128xf32> to vector<1x1x128xf32>
    %12 = vector.broadcast %11 : vector<1x1x128xf32> to vector<16x16x128xf32>
    %13 = arith.addf %8, %12 : vector<16x16x128xf32>
    %cst = arith.constant 0.000000e+00 : f32
    %14 = vector.broadcast %cst : f32 to vector<16x16x128xf32>
    %15 = arith.maximumf %13, %14 : vector<16x16x128xf32>
    %16 = arith.truncf %15 : vector<16x16x128xf32> to vector<16x16x128xbf16>
    %cst_6 = arith.constant 0.000000e+00 : bf16
    %17 = vector.broadcast %cst_6 : bf16 to vector<1x16x128xbf16>
    %18 = tpu.concatenate %17, %16, %17 in 0 : vector<1x16x128xbf16>, vector<16x16x128xbf16>, vector<1x16x128xbf16> -> vector<18x16x128xbf16>
    %cst_7 = arith.constant 0.000000e+00 : bf16
    %19 = vector.broadcast %cst_7 : bf16 to vector<18x1x128xbf16>
    %20 = tpu.concatenate %19, %18, %19 in 1 : vector<18x1x128xbf16>, vector<18x16x128xbf16>, vector<18x1x128xbf16> -> vector<18x18x128xbf16>
    %21 = vector.extract_strided_slice %20 {offsets = [0, 0, 0], sizes = [16, 16, 128], strides = [1, 1, 1]} : vector<18x18x128xbf16> to vector<16x16x128xbf16>
    %22 = vector.extract_strided_slice %20 {offsets = [0, 1, 0], sizes = [16, 16, 128], strides = [1, 1, 1]} : vector<18x18x128xbf16> to vector<16x16x128xbf16>
    %23 = vector.extract_strided_slice %20 {offsets = [0, 2, 0], sizes = [16, 16, 128], strides = [1, 1, 1]} : vector<18x18x128xbf16> to vector<16x16x128xbf16>
    %24 = vector.extract_strided_slice %20 {offsets = [1, 0, 0], sizes = [16, 16, 128], strides = [1, 1, 1]} : vector<18x18x128xbf16> to vector<16x16x128xbf16>
    %25 = vector.extract_strided_slice %20 {offsets = [1, 1, 0], sizes = [16, 16, 128], strides = [1, 1, 1]} : vector<18x18x128xbf16> to vector<16x16x128xbf16>
    %26 = vector.extract_strided_slice %20 {offsets = [1, 2, 0], sizes = [16, 16, 128], strides = [1, 1, 1]} : vector<18x18x128xbf16> to vector<16x16x128xbf16>
    %27 = vector.extract_strided_slice %20 {offsets = [2, 0, 0], sizes = [16, 16, 128], strides = [1, 1, 1]} : vector<18x18x128xbf16> to vector<16x16x128xbf16>
    %28 = vector.extract_strided_slice %20 {offsets = [2, 1, 0], sizes = [16, 16, 128], strides = [1, 1, 1]} : vector<18x18x128xbf16> to vector<16x16x128xbf16>
    %29 = vector.extract_strided_slice %20 {offsets = [2, 2, 0], sizes = [16, 16, 128], strides = [1, 1, 1]} : vector<18x18x128xbf16> to vector<16x16x128xbf16>
    %30 = tpu.concatenate %21, %22, %23, %24, %25, %26, %27, %28, %29 in 2 : vector<16x16x128xbf16>, vector<16x16x128xbf16>, vector<16x16x128xbf16>, vector<16x16x128xbf16>, vector<16x16x128xbf16>, vector<16x16x128xbf16>, vector<16x16x128xbf16>, vector<16x16x128xbf16>, vector<16x16x128xbf16> -> vector<16x16x1152xbf16>
    %31 = vector.shape_cast %30 : vector<16x16x1152xbf16> to vector<256x1152xbf16>
    %c0_8 = arith.constant 0 : index
    %c0_9 = arith.constant 0 : index
    %32 = vector.load %arg2[%c0_8, %c0_9] : memref<1152x128xbf16, #tpu.memory_space<vmem>>, vector<1152x128xbf16>
    %cst_10 = arith.constant dense<0.000000e+00> : vector<256x128xf32>
    %33 = tpu.matmul %31, %32, %cst_10 {dimension_numbers = #tpu.dot_dimension_numbers<[1], [0], [0], [1], [0, 0, 1, 1], [], []>} : vector<256x1152xbf16>, vector<1152x128xbf16>, vector<256x128xf32> -> vector<256x128xf32>
    %cst_11 = arith.constant dense<0.000000e+00> : vector<128xf32>
    %34 = vector.multi_reduction <add>, %33, %cst_11 [0] : vector<256x128xf32> to vector<128xf32>
    %35 = arith.mulf %33, %33 : vector<256x128xf32>
    %cst_12 = arith.constant dense<0.000000e+00> : vector<128xf32>
    %36 = vector.multi_reduction <add>, %35, %cst_12 [0] : vector<256x128xf32> to vector<128xf32>
    %37 = vector.shape_cast %34 : vector<128xf32> to vector<1x128xf32>
    %38 = vector.shape_cast %36 : vector<128xf32> to vector<1x128xf32>
    %39 = tpu.concatenate %37, %38 in 0 : vector<1x128xf32>, vector<1x128xf32> -> vector<2x128xf32>
    %c0_13 = arith.constant 0 : index
    %c0_14 = arith.constant 0 : index
    %c0_15 = arith.constant 0 : index
    %40 = vector.load %arg5[%c0_13, %c0_14, %c0_15] : memref<1x2x128xf32, #tpu.memory_space<vmem>>, vector<1x2x128xf32>
    %41 = vector.shape_cast %40 : vector<1x2x128xf32> to vector<2x128xf32>
    %42 = vector.shape_cast %39 : vector<2x128xf32> to vector<1x2x128xf32>
    tpu.vector_store %arg5[%c0_13, %c0_14, %c0_15], %42 {strides = array<i32>} : memref<1x2x128xf32, #tpu.memory_space<vmem>>, vector<1x2x128xf32>,
    %43 = arith.truncf %33 : vector<256x128xf32> to vector<256x128xbf16>
    %44 = vector.shape_cast %43 : vector<256x128xbf16> to vector<16x16x128xbf16>
    %c0_16 = arith.constant 0 : index
    %c0_17 = arith.constant 0 : index
    %c0_18 = arith.constant 0 : index
    %c0_19 = arith.constant 0 : index
    %45 = vector.load %arg4[%c0_16, %c0_17, %c0_18, %c0_19] : memref<1x16x16x128xbf16, #tpu.memory_space<vmem>>, vector<1x16x16x128xbf16>
    %46 = vector.shape_cast %45 : vector<1x16x16x128xbf16> to vector<16x16x128xbf16>
    %47 = vector.shape_cast %44 : vector<16x16x128xbf16> to vector<1x16x16x128xbf16>
    tpu.vector_store %arg4[%c0_16, %c0_17, %c0_18, %c0_19], %47 {strides = array<i32>} : memref<1x16x16x128xbf16, #tpu.memory_space<vmem>>, vector<1x16x16x128xbf16>,
    return
  }
  func.func @transform_0(%arg0: i32) -> (i32, i32, i32, i32) {
    %c0_i32 = arith.constant 0 : i32
    %c0_i32_0 = arith.constant 0 : i32
    %c0_i32_1 = arith.constant 0 : i32
    %c0_i32_2 = arith.constant 0 : i32
    return %arg0, %c0_i32, %c0_i32_0, %c0_i32_1 : i32, i32, i32, i32
  }
  func.func @transform_1(%arg0: i32) -> (i32, i32) {
    %c0_i32 = arith.constant 0 : i32
    %c0_i32_0 = arith.constant 0 : i32
    %c0_i32_1 = arith.constant 0 : i32
    return %c0_i32, %c0_i32_0 : i32, i32
  }
  func.func @transform_2(%arg0: i32) -> (i32, i32) {
    %c0_i32 = arith.constant 0 : i32
    %c0_i32_0 = arith.constant 0 : i32
    %c0_i32_1 = arith.constant 0 : i32
    return %c0_i32, %c0_i32_0 : i32, i32
  }
  func.func @transform_3(%arg0: i32) -> (i32, i32, i32, i32) {
    %c0_i32 = arith.constant 0 : i32
    %c0_i32_0 = arith.constant 0 : i32
    %c0_i32_1 = arith.constant 0 : i32
    %c0_i32_2 = arith.constant 0 : i32
    return %arg0, %c0_i32, %c0_i32_0, %c0_i32_1 : i32, i32, i32, i32
  }
  func.func @transform_4(%arg0: i32) -> (i32, i32, i32) {
    %c0_i32 = arith.constant 0 : i32
    %c0_i32_0 = arith.constant 0 : i32
    %c0_i32_1 = arith.constant 0 : i32
    return %arg0, %c0_i32, %c0_i32_0 : i32, i32, i32
  }
}

module attributes {stable_mosaic.version = 11 : i64} {
  func.func @_matmul_stats_kernel(%arg0: i32, %arg1: memref<256x64xbf16, #tpu.memory_space<vmem>>, %arg2: memref<64x128xbf16, #tpu.memory_space<vmem>>, %arg3: memref<256x128xbf16, #tpu.memory_space<vmem>>, %arg4: memref<1x2x128xf32, #tpu.memory_space<vmem>>) attributes {dimension_semantics = [#tpu.dimension_semantics<parallel>], iteration_bounds = array<i64: 2>, scalar_prefetch = 0 : i64, scratch_operands = 0 : i64, tpu.core_type = #tpu.core_type<tc>, window_params = [{transform_indices = @transform_0, window_bounds = array<i64: 256, 64>}, {pipeline_mode = #tpu.pipeline_mode<synchronous>, transform_indices = @transform_1, window_bounds = array<i64: 64, 128>}, {transform_indices = @transform_2, window_bounds = array<i64: 256, 128>}, {transform_indices = @transform_3, window_bounds = array<i64: 1, 2, 128>}]} {
    %c0 = arith.constant 0 : index
    %c0_0 = arith.constant 0 : index
    %0 = vector.load %arg1[%c0, %c0_0] : memref<256x64xbf16, #tpu.memory_space<vmem>>, vector<256x64xbf16>
    %c0_1 = arith.constant 0 : index
    %c0_2 = arith.constant 0 : index
    %1 = vector.load %arg2[%c0_1, %c0_2] : memref<64x128xbf16, #tpu.memory_space<vmem>>, vector<64x128xbf16>
    %cst = arith.constant dense<0.000000e+00> : vector<256x128xf32>
    %2 = tpu.matmul %0, %1, %cst {dimension_numbers = #tpu.dot_dimension_numbers<[1], [0], [0], [1], [0, 0, 1, 1], [], []>} : vector<256x64xbf16>, vector<64x128xbf16>, vector<256x128xf32> -> vector<256x128xf32>
    %3 = arith.truncf %2 : vector<256x128xf32> to vector<256x128xbf16>
    %c0_3 = arith.constant 0 : index
    %c0_4 = arith.constant 0 : index
    %4 = vector.load %arg3[%c0_3, %c0_4] : memref<256x128xbf16, #tpu.memory_space<vmem>>, vector<256x128xbf16>
    tpu.vector_store %arg3[%c0_3, %c0_4], %3 {strides = array<i32>} : memref<256x128xbf16, #tpu.memory_space<vmem>>, vector<256x128xbf16>,
    %cst_5 = arith.constant dense<0.000000e+00> : vector<128xf32>
    %5 = vector.multi_reduction <add>, %2, %cst_5 [0] : vector<256x128xf32> to vector<128xf32>
    %6 = arith.mulf %2, %2 : vector<256x128xf32>
    %cst_6 = arith.constant dense<0.000000e+00> : vector<128xf32>
    %7 = vector.multi_reduction <add>, %6, %cst_6 [0] : vector<256x128xf32> to vector<128xf32>
    %8 = vector.shape_cast %5 : vector<128xf32> to vector<1x128xf32>
    %9 = vector.shape_cast %7 : vector<128xf32> to vector<1x128xf32>
    %10 = tpu.concatenate %8, %9 in 0 : vector<1x128xf32>, vector<1x128xf32> -> vector<2x128xf32>
    %c0_7 = arith.constant 0 : index
    %c0_8 = arith.constant 0 : index
    %c0_9 = arith.constant 0 : index
    %11 = vector.load %arg4[%c0_7, %c0_8, %c0_9] : memref<1x2x128xf32, #tpu.memory_space<vmem>>, vector<1x2x128xf32>
    %12 = vector.shape_cast %11 : vector<1x2x128xf32> to vector<2x128xf32>
    %13 = vector.shape_cast %10 : vector<2x128xf32> to vector<1x2x128xf32>
    tpu.vector_store %arg4[%c0_7, %c0_8, %c0_9], %13 {strides = array<i32>} : memref<1x2x128xf32, #tpu.memory_space<vmem>>, vector<1x2x128xf32>,
    return
  }
  func.func @transform_0(%arg0: i32) -> (i32, i32) {
    %c0_i32 = arith.constant 0 : i32
    %c0_i32_0 = arith.constant 0 : i32
    return %arg0, %c0_i32 : i32, i32
  }
  func.func @transform_1(%arg0: i32) -> (i32, i32) {
    %c0_i32 = arith.constant 0 : i32
    %c0_i32_0 = arith.constant 0 : i32
    %c0_i32_1 = arith.constant 0 : i32
    return %c0_i32, %c0_i32_0 : i32, i32
  }
  func.func @transform_2(%arg0: i32) -> (i32, i32) {
    %c0_i32 = arith.constant 0 : i32
    %c0_i32_0 = arith.constant 0 : i32
    return %arg0, %c0_i32 : i32, i32
  }
  func.func @transform_3(%arg0: i32) -> (i32, i32, i32) {
    %c0_i32 = arith.constant 0 : i32
    %c0_i32_0 = arith.constant 0 : i32
    %c0_i32_1 = arith.constant 0 : i32
    return %arg0, %c0_i32, %c0_i32_0 : i32, i32, i32
  }
}

module attributes {stable_mosaic.version = 11 : i64} {
  func.func @_bn_add_relu_nchw_kernel(%arg0: i32, %arg1: memref<1x16x16x128xbf16, #tpu.memory_space<vmem>>, %arg2: memref<1x16x16x128xbf16, #tpu.memory_space<vmem>>, %arg3: memref<3x128xf32, #tpu.memory_space<vmem>>, %arg4: memref<1x128x256xf32, #tpu.memory_space<vmem>>) attributes {dimension_semantics = [#tpu.dimension_semantics<parallel>], iteration_bounds = array<i64: 2>, scalar_prefetch = 0 : i64, scratch_operands = 0 : i64, tpu.core_type = #tpu.core_type<tc>, window_params = [{transform_indices = @transform_0, window_bounds = array<i64: 1, 16, 16, 128>}, {transform_indices = @transform_1, window_bounds = array<i64: 1, 16, 16, 128>}, {pipeline_mode = #tpu.pipeline_mode<synchronous>, transform_indices = @transform_2, window_bounds = array<i64: 3, 128>}, {transform_indices = @transform_3, window_bounds = array<i64: 1, 128, 256>}]} {
    %c0 = arith.constant 0 : index
    %c0_0 = arith.constant 0 : index
    %c0_1 = arith.constant 0 : index
    %c0_2 = arith.constant 0 : index
    %0 = vector.load %arg1[%c0, %c0_0, %c0_1, %c0_2] : memref<1x16x16x128xbf16, #tpu.memory_space<vmem>>, vector<1x16x16x128xbf16>
    %1 = vector.shape_cast %0 : vector<1x16x16x128xbf16> to vector<16x16x128xbf16>
    %2 = arith.extf %1 : vector<16x16x128xbf16> to vector<16x16x128xf32>
    %3 = vector.shape_cast %2 : vector<16x16x128xf32> to vector<256x128xf32>
    %c0_3 = arith.constant 0 : index
    %c0_4 = arith.constant 0 : index
    %c0_5 = arith.constant 0 : index
    %c0_6 = arith.constant 0 : index
    %4 = vector.load %arg2[%c0_3, %c0_4, %c0_5, %c0_6] : memref<1x16x16x128xbf16, #tpu.memory_space<vmem>>, vector<1x16x16x128xbf16>
    %5 = vector.shape_cast %4 : vector<1x16x16x128xbf16> to vector<16x16x128xbf16>
    %6 = arith.extf %5 : vector<16x16x128xbf16> to vector<16x16x128xf32>
    %7 = vector.shape_cast %6 : vector<16x16x128xf32> to vector<256x128xf32>
    %c0_7 = arith.constant 0 : index
    %c0_8 = arith.constant 0 : index
    %8 = vector.load %arg3[%c0_7, %c0_8] : memref<3x128xf32, #tpu.memory_space<vmem>>, vector<1x128xf32>
    %9 = vector.shape_cast %8 : vector<1x128xf32> to vector<128xf32>
    %10 = vector.shape_cast %9 : vector<128xf32> to vector<1x128xf32>
    %11 = vector.broadcast %10 : vector<1x128xf32> to vector<256x128xf32>
    %12 = arith.mulf %3, %11 : vector<256x128xf32>
    %c1 = arith.constant 1 : index
    %c0_9 = arith.constant 0 : index
    %13 = vector.load %arg3[%c1, %c0_9] : memref<3x128xf32, #tpu.memory_space<vmem>>, vector<1x128xf32>
    %14 = vector.shape_cast %13 : vector<1x128xf32> to vector<128xf32>
    %15 = vector.shape_cast %14 : vector<128xf32> to vector<1x128xf32>
    %16 = vector.broadcast %15 : vector<1x128xf32> to vector<256x128xf32>
    %17 = arith.mulf %7, %16 : vector<256x128xf32>
    %18 = arith.addf %12, %17 : vector<256x128xf32>
    %c2 = arith.constant 2 : index
    %c0_10 = arith.constant 0 : index
    %19 = vector.load %arg3[%c2, %c0_10] : memref<3x128xf32, #tpu.memory_space<vmem>>, vector<1x128xf32>
    %20 = vector.shape_cast %19 : vector<1x128xf32> to vector<128xf32>
    %21 = vector.shape_cast %20 : vector<128xf32> to vector<1x128xf32>
    %22 = vector.broadcast %21 : vector<1x128xf32> to vector<256x128xf32>
    %23 = arith.addf %18, %22 : vector<256x128xf32>
    %cst = arith.constant 0.000000e+00 : f32
    %24 = vector.broadcast %cst : f32 to vector<256x128xf32>
    %25 = arith.maximumf %23, %24 : vector<256x128xf32>
    %26 = tpu.transpose %25, [1, 0] : vector<256x128xf32> -> vector<128x256xf32>
    %c0_11 = arith.constant 0 : index
    %c0_12 = arith.constant 0 : index
    %c0_13 = arith.constant 0 : index
    %27 = vector.load %arg4[%c0_11, %c0_12, %c0_13] : memref<1x128x256xf32, #tpu.memory_space<vmem>>, vector<1x128x256xf32>
    %28 = vector.shape_cast %27 : vector<1x128x256xf32> to vector<128x256xf32>
    %29 = vector.shape_cast %26 : vector<128x256xf32> to vector<1x128x256xf32>
    tpu.vector_store %arg4[%c0_11, %c0_12, %c0_13], %29 {strides = array<i32>} : memref<1x128x256xf32, #tpu.memory_space<vmem>>, vector<1x128x256xf32>,
    return
  }
  func.func @transform_0(%arg0: i32) -> (i32, i32, i32, i32) {
    %c0_i32 = arith.constant 0 : i32
    %c0_i32_0 = arith.constant 0 : i32
    %c0_i32_1 = arith.constant 0 : i32
    %c0_i32_2 = arith.constant 0 : i32
    return %arg0, %c0_i32, %c0_i32_0, %c0_i32_1 : i32, i32, i32, i32
  }
  func.func @transform_1(%arg0: i32) -> (i32, i32, i32, i32) {
    %c0_i32 = arith.constant 0 : i32
    %c0_i32_0 = arith.constant 0 : i32
    %c0_i32_1 = arith.constant 0 : i32
    %c0_i32_2 = arith.constant 0 : i32
    return %arg0, %c0_i32, %c0_i32_0, %c0_i32_1 : i32, i32, i32, i32
  }
  func.func @transform_2(%arg0: i32) -> (i32, i32) {
    %c0_i32 = arith.constant 0 : i32
    %c0_i32_0 = arith.constant 0 : i32
    %c0_i32_1 = arith.constant 0 : i32
    return %c0_i32, %c0_i32_0 : i32, i32
  }
  func.func @transform_3(%arg0: i32) -> (i32, i32, i32) {
    %c0_i32 = arith.constant 0 : i32
    %c0_i32_0 = arith.constant 0 : i32
    %c0_i32_1 = arith.constant 0 : i32
    return %arg0, %c0_i32, %c0_i32_0 : i32, i32, i32
  }
}

</mosaic_0001>

<bundles_post_ra>
// kernel: resblock_forward.6
= control target key start
LH: loop header
LB: loop body
LE: loop exit
PB: predicated region body
PF: predicated region fallthrough
CT: control target
= control target key end

     0   :  { %s999_s12 = smov 0   ;;  %s1209_s0 = inlined_call_operand.vmem [shape: bf16[512,64], index: 0, kind: input, shape index: {}]   ;;  %s1210_s1 = inlined_call_operand.vmem [shape: bf16[64,128], index: 1, kind: input, shape index: {}]   ;;  %s1211_s2 = inlined_call_operand.vmem [shape: bf16[512,128], index: 2, kind: output, shape index: {0}]   ;;  %s1212_s3 = inlined_call_operand.vmem [shape: f32[2,2,128], index: 3, kind: output, shape index: {1}]  }
   0x1 LB: > { %s1005_s13 = sadd.s32 4294967295, %s977_s12   ;;  %p732_p0 = scmp.ge.s32.totalorder %s977_s12, 1  ;;  %s977_s12 = sphi %s999_s12, %s14_s12  }
   0x2   : > { %p141_p1 = scmp.lt.s32.totalorder %s977_s12, 3 }
   0x4   : > { %p142_p2 = pnand %p732_p0, %p141_p1 }
   0x5   : > { %s733_s16 = sshll.u32 (!%p142_p2), %s1005_s13, 5  ;;  %p181_p4 = scmp.lt.s32.totalorder (!%p142_p2), %s1005_s13, 1 }
   0x6   : > { %145 = sbr.rel (%p142_p2) target bundleno = 275 (0x113), region = 28  ;;  %p170_p3 = scmp.lt.s32.totalorder (!%p142_p2), %s733_s16, 63 }
   0xb   : > { %v855_v0 = vld [vmem:[%s1210_s1 + $0x18] sm:$0xff]  ;;  %v854_v1 = vld [vmem:[%s1210_s1 + $0x10] sm:$0xff]  ;;  %s1214_s16 = smov (!%p170_p3, %s733_s16), 63  ;;  %v853_v2 = vld [vmem:[%s1210_s1 + $0x8] sm:$0xff]  ;;  %vm330_vm0 = vcmask 523264   ;;  %s1216_s13 = smov (!%p181_p4, %s1005_s13), 1 }
   0xc   : > { %383 = vmatpush.bf16.msra.mxu0 %v855_v0  ;;  %951 = vmatpush.bf16.msra.mxu1 %v855_v0  ;;  %s734_s21 = sshll.u32 %s1214_s16, 2  ;;  %v852_v3 = vld [vmem:[%s1210_s1] sm:$0xff]  ;;  %s737_s30 = sshll.u32 %s1216_s13, 1  ;;  %vm638_vm1 = vcmask 1040384  }
   0xd   : > { %952 = vmatpush.bf16.msra.mxu2 %v855_v0  ;;  %953 = vmatpush.bf16.msra.mxu3 %v855_v0  ;;  %s1030_s26 = scalar_lea.vmem %s1209_s0, %s734_s21  ;;  %s1073_s29 = scalar_lea.vmem %s1211_s2, %s734_s21 }
   0xe   : > { %v836_v4 = vld [vmem:[%s1030_s26] sm:$0xff]  ;;  %v837_v8 = vld [vmem:[%s1030_s26 + $0x8] sm:$0xff]  ;;  %v838_v12 = vld [vmem:[%s1030_s26 + $0x10] sm:$0xff]  ;;  %s184_s6 = scalar_lea.vmem %s1212_s3, %s737_s30 }
   0xf   : > { %v840_v5 = vld [vmem:[%s1030_s26 + $0x20] sm:$0xff]  ;;  %v841_v9 = vld [vmem:[%s1030_s26 + $0x28] sm:$0xff]  ;;  %v842_v13 = vld [vmem:[%s1030_s26 + $0x30] sm:$0xff] }
  0x10   : > { %384 = vmatpush.bf16.msra.mxu0 %v854_v1  ;;  %954 = vmatpush.bf16.msra.mxu1 %v854_v1  ;;  %v844_v6 = vld [vmem:[%s1030_s26 + $0x40] sm:$0xff]  ;;  %v845_v10 = vld [vmem:[%s1030_s26 + $0x48] sm:$0xff]  ;;  %v846_v14 = vld [vmem:[%s1030_s26 + $0x50] sm:$0xff] }
  0x11   : > { %955 = vmatpush.bf16.msra.mxu2 %v854_v1  ;;  %956 = vmatpush.bf16.msra.mxu3 %v854_v1  ;;  %v848_v7 = vld [vmem:[%s1030_s26 + $0x60] sm:$0xff]  ;;  %v849_v11 = vld [vmem:[%s1030_s26 + $0x68] sm:$0xff]  ;;  %v850_v15 = vld [vmem:[%s1030_s26 + $0x70] sm:$0xff] }
  0x12   : > { %v839_v16 = vld [vmem:[%s1030_s26 + $0x18] sm:$0xff] }
  0x13   : > { %v843_v17 = vld [vmem:[%s1030_s26 + $0x38] sm:$0xff] }
  0x14   : > { %385 = vmatpush.bf16.msra.mxu0 %v853_v2  ;;  %957 = vmatpush.bf16.msra.mxu1 %v853_v2  ;;  %v847_v18 = vld [vmem:[%s1030_s26 + $0x58] sm:$0xff] }
  0x15   : > { %958 = vmatpush.bf16.msra.mxu2 %v853_v2  ;;  %959 = vmatpush.bf16.msra.mxu3 %v853_v2  ;;  %v851_v19 = vld [vmem:[%s1030_s26 + $0x78] sm:$0xff] }
  0x18   : > { %386 = vmatpush.bf16.msra.mxu0 %v852_v3  ;;  %960 = vmatpush.bf16.msra.mxu1 %v852_v3 }
  0x19   : > { %961 = vmatpush.bf16.msra.mxu2 %v852_v3  ;;  %962 = vmatpush.bf16.msra.mxu3 %v852_v3 }
  0x1b   : > { %818 = vmatmul.msk.bf16.vlgmr.msra.gmra.mxu0 %vm330_vm0, %v836_v4  ;;  %822 = vmatmul.msk.bf16.vlgmr.msra.gmra.mxu1 %vm330_vm0, %v840_v5 }
  0x1c   : > { %826 = vmatmul.msk.bf16.vlgmr.msra.gmra.mxu2 %vm330_vm0, %v844_v6  ;;  %830 = vmatmul.msk.bf16.vlgmr.msra.gmra.mxu3 %vm330_vm0, %v848_v7 }
  0x2b   : > { %819 = vmatmul.msk.bf16.gmra.mxu0 %vm330_vm0, %v837_v8  ;;  %823 = vmatmul.msk.bf16.gmra.mxu1 %vm330_vm0, %v841_v9 }
  0x2c   : > { %827 = vmatmul.msk.bf16.gmra.mxu2 %vm330_vm0, %v845_v10  ;;  %831 = vmatmul.msk.bf16.gmra.mxu3 %vm330_vm0, %v849_v11 }
  0x3b   : > { %820 = vmatmul.msk.bf16.gmra.mxu0 %vm330_vm0, %v838_v12  ;;  %824 = vmatmul.msk.bf16.gmra.mxu1 %vm330_vm0, %v842_v13 }
  0x3c   : > { %828 = vmatmul.msk.bf16.gmra.mxu2 %vm330_vm0, %v846_v14  ;;  %832 = vmatmul.msk.bf16.gmra.mxu3 %vm330_vm0, %v850_v15 }
  0x4b   : > { %821 = vmatmul.msk.bf16.gmra.mxu0 %vm330_vm0, %v839_v16  ;;  %825 = vmatmul.msk.bf16.gmra.mxu1 %vm330_vm0, %v843_v17 }
  0x4c   : > { %829 = vmatmul.msk.bf16.gmra.mxu2 %vm330_vm0, %v847_v18  ;;  %833 = vmatmul.msk.bf16.gmra.mxu3 %vm330_vm0, %v851_v19 }
  0x98   : > { %v388_v20 = vpop.f32.mrf.mxu0  ;;  %v1064_v21 = vpop.f32.mrf.mxu1 }
  0x99   : > { %v569_v53 = vmul.f32 %v388_v20, %v388_v20 }
  0x9f   : > { %v1066_v22 = vpop.f32.mrf.mxu2  ;;  %v1079_v27 = vpop.f32.mrf.mxu3 }
  0xa0   : > { %v390_v23 = vpop.f32.mrf.mxu0  ;;  %v1075_v24 = vpop.f32.mrf.mxu1 }
  0xa1   : > { %v859_v25 = vpack.c.bf16 %v390_v23, %v388_v20  ;;  %v879_v26 = vpack.c.bf16 %v1075_v24, %v1064_v21  ;;  %v570_v52 = vmul.f32 %v390_v23, %v390_v23  ;;  %v532_v55 = vadd.f32 %v390_v23, %v388_v20 }
  0xa2   : > { %v577_v23 = vmul.f32 %v1064_v21, %v1064_v21 }
  0xa3   : > { %860 = vst [vmem:[%s1073_s29] sm:$0xff] %v859_v25   ;;  %v601_v56 = vadd.f32 %v570_v52, %v569_v53 }
  0xa4   : > { %939 = vst [vmem:[%s1073_s29 + $0x20] sm:$0xff] %v879_v26  }
  0xa7   : > { %v1083_v28 = vpop.f32.mrf.mxu2  ;;  %v1089_v32 = vpop.f32.mrf.mxu3 }
  0xa8   : > { %v393_v29 = vpop.f32.mrf.mxu0  ;;  %v1085_v30 = vpop.f32.mrf.mxu1  ;;  %v899_v31 = vpack.c.bf16 %v1083_v28, %v1066_v22  ;;  %v919_v33 = vpack.c.bf16 %v1089_v32, %v1079_v27 }
  0xa9   : > { %v571_v54 = vmul.f32 %v393_v29, %v393_v29  ;;  %v533_v58 = vadd.f32 %v532_v55, %v393_v29 }
  0xaa   : > { %943 = vst [vmem:[%s1073_s29 + $0x40] sm:$0xff] %v899_v31  }
  0xab   : > { %947 = vst [vmem:[%s1073_s29 + $0x60] sm:$0xff] %v919_v33   ;;  %v602_v60 = vadd.f32 %v601_v56, %v571_v54 }
  0xaf   : > { %v1095_v34 = vpop.f32.mrf.mxu2  ;;  %v1101_v39 = vpop.f32.mrf.mxu3 }
  0xb0   : > { %v395_v35 = vpop.f32.mrf.mxu0  ;;  %v1097_v36 = vpop.f32.mrf.mxu1 }
  0xb1   : > { %v864_v37 = vpack.c.bf16 %v395_v35, %v393_v29  ;;  %v884_v38 = vpack.c.bf16 %v1097_v36, %v1085_v30  ;;  %v572_v57 = vmul.f32 %v395_v35, %v395_v35  ;;  %v534_v1 = vadd.f32 %v533_v58, %v395_v35 }
  0xb2   : > { %v578_v29 = vmul.f32 %v1075_v24, %v1075_v24  ;;  %v579_v35 = vmul.f32 %v1085_v30, %v1085_v30 }
  0xb3   : > { %936 = vst [vmem:[%s1073_s29 + $0x8] sm:$0xff] %v864_v37   ;;  %v603_v3 = vadd.f32 %v602_v60, %v572_v57 }
  0xb4   : > { %940 = vst [vmem:[%s1073_s29 + $0x28] sm:$0xff] %v884_v38  }
  0xb7   : > { %v1105_v40 = vpop.f32.mrf.mxu2  ;;  %v1111_v44 = vpop.f32.mrf.mxu3 }
  0xb8   : > { %v398_v41 = vpop.f32.mrf.mxu0  ;;  %v1107_v42 = vpop.f32.mrf.mxu1  ;;  %v904_v43 = vpack.c.bf16 %v1105_v40, %v1095_v34  ;;  %v924_v45 = vpack.c.bf16 %v1111_v44, %v1101_v39 }
  0xb9   : > { %v573_v61 = vmul.f32 %v398_v41, %v398_v41  ;;  %v535_v6 = vadd.f32 %v534_v1, %v398_v41  ;;  %v586_v1 = vmul.f32 %v1083_v28, %v1083_v28 }
  0xba   : > { %944 = vst [vmem:[%s1073_s29 + $0x48] sm:$0xff] %v904_v43  }
  0xbb   : > { %948 = vst [vmem:[%s1073_s29 + $0x68] sm:$0xff] %v924_v45   ;;  %v604_v7 = vadd.f32 %v603_v3, %v573_v61 }
  0xbf   : > { %v1117_v46 = vpop.f32.mrf.mxu2  ;;  %v1123_v51 = vpop.f32.mrf.mxu3 }
  0xc0   : > { %v400_v47 = vpop.f32.mrf.mxu0  ;;  %v1119_v48 = vpop.f32.mrf.mxu1 }
  0xc1   : > { %v869_v49 = vpack.c.bf16 %v400_v47, %v398_v41  ;;  %v889_v50 = vpack.c.bf16 %v1119_v48, %v1107_v42  ;;  %v574_v4 = vmul.f32 %v400_v47, %v400_v47  ;;  %v536_v9 = vadd.f32 %v535_v6, %v400_v47 }
  0xc2   : > { %v588_v6 = vmul.f32 %v1105_v40, %v1105_v40 }
  0xc3   : > { %937 = vst [vmem:[%s1073_s29 + $0x10] sm:$0xff] %v869_v49   ;;  %v605_v10 = vadd.f32 %v604_v7, %v574_v4 }
  0xc4   : > { %941 = vst [vmem:[%s1073_s29 + $0x30] sm:$0xff] %v889_v50   ;;  %v581_v50 = vmul.f32 %v1107_v42, %v1107_v42 }
  0xc7   : > { %v1127_v59 = vpop.f32.mrf.mxu2  ;;  %v1131_v2 = vpop.f32.mrf.mxu3 }
  0xc8   : > { %v403_v62 = vpop.f32.mrf.mxu0  ;;  %v423_v63 = vpop.f32.mrf.mxu1  ;;  %v909_v0 = vpack.c.bf16 %v1127_v59, %v1117_v46  ;;  %v929_v5 = vpack.c.bf16 %v1131_v2, %v1123_v51 }
  0xc9   : > { %v575_v8 = vmul.f32 %v403_v62, %v403_v62  ;;  %v537_v11 = vadd.f32 %v536_v9, %v403_v62  ;;  %v583_v57 = vmul.f32 %v423_v63, %v423_v63 }
  0xca   : > { %945 = vst [vmem:[%s1073_s29 + $0x50] sm:$0xff] %v909_v0  }
  0xcb   : > { %949 = vst [vmem:[%s1073_s29 + $0x70] sm:$0xff] %v929_v5   ;;  %v606_v13 = vadd.f32 %v605_v10, %v575_v8 }
  0xcf   : > { %v443_v12 = vpop.f32.mrf.mxu2  ;;  %v1137_v20 = vpop.f32.mrf.mxu3 }
  0xd0   : > { %v405_v14 = vpop.f32.mrf.mxu0  ;;  %v425_v15 = vpop.f32.mrf.mxu1 }
  0xd1   : > { %v874_v16 = vpack.c.bf16 %v405_v14, %v403_v62  ;;  %v538_v17 = vadd.f32 %v537_v11, %v405_v14  ;;  %v576_v18 = vmul.f32 %v405_v14, %v405_v14  ;;  %v894_v19 = vpack.c.bf16 %v425_v15, %v423_v63 }
  0xd2   : > { %v584_v61 = vmul.f32 %v425_v15, %v425_v15  ;;  %v585_v62 = vmul.f32 %v1066_v22, %v1066_v22  ;;  %v590_v11 = vmul.f32 %v1127_v59, %v1127_v59 }
  0xd3   : > { %938 = vst [vmem:[%s1073_s29 + $0x18] sm:$0xff] %v874_v16   ;;  %v539_v25 = vadd.f32 %v538_v17, %v1064_v21  ;;  %v607_v26 = vadd.f32 %v606_v13, %v576_v18  ;;  %v580_v21 = vmul.f32 %v1097_v36, %v1097_v36 }
  0xd4   : > { %942 = vst [vmem:[%s1073_s29 + $0x38] sm:$0xff] %v894_v19  }
  0xd5   : > { %v540_v31 = vadd.f32 %v539_v25, %v1075_v24  ;;  %v608_v33 = vadd.f32 %v607_v26, %v577_v23 }
  0xd7   : > { %v541_v37 = vadd.f32 %v540_v31, %v1085_v30  ;;  %v609_v38 = vadd.f32 %v608_v33, %v578_v29  ;;  %v445_v41 = vpop.f32.mrf.mxu2  ;;  %v465_v49 = vpop.f32.mrf.mxu3  ;;  %v582_v30 = vmul.f32 %v1119_v48, %v1119_v48  ;;  %v596_v31 = vmul.f32 %v1111_v44, %v1111_v44 }
  0xd8   : > { %v914_v43 = vpack.c.bf16 %v445_v41, %v443_v12  ;;  %v934_v24 = vpack.c.bf16 %v465_v49, %v1137_v20  ;;  %v592_v18 = vmul.f32 %v445_v41, %v445_v41 }
  0xd9   : > { %v610_v45 = vadd.f32 %v609_v38, %v579_v35  ;;  %v542_v47 = vadd.f32 %v541_v37, %v1097_v36  ;;  %v597_v35 = vmul.f32 %v1123_v51, %v1123_v51 }
  0xda   : > { %946 = vst [vmem:[%s1073_s29 + $0x58] sm:$0xff] %v914_v43  }
  0xdb   : > { %v543_v52 = vadd.f32 %v542_v47, %v1107_v42  ;;  %v611_v53 = vadd.f32 %v610_v45, %v580_v21  ;;  %950 = vst [vmem:[%s1073_s29 + $0x78] sm:$0xff] %v934_v24   ;;  %v599_v45 = vmul.f32 %v1137_v20, %v1137_v20  ;;  %v600_v24 = vmul.f32 %v465_v49, %v465_v49 }
  0xdd   : > { %v544_v54 = vadd.f32 %v543_v52, %v1119_v48  ;;  %v612_v55 = vadd.f32 %v611_v53, %v581_v50  ;;  %v587_v48 = vmul.f32 %v1095_v34, %v1095_v34 }
  0xdf   : > { %v545_v56 = vadd.f32 %v544_v54, %v423_v63  ;;  %v613_v36 = vadd.f32 %v612_v55, %v582_v30 }
  0xe1   : > { %v614_v58 = vadd.f32 %v613_v36, %v583_v57  ;;  %v546_v60 = vadd.f32 %v545_v56, %v425_v15  ;;  %v591_v15 = vmul.f32 %v443_v12, %v443_v12 }
  0xe3   : > { %v547_v0 = vadd.f32 %v546_v60, %v1066_v22  ;;  %v615_v42 = vadd.f32 %v614_v58, %v584_v61  ;;  %v589_v22 = vmul.f32 %v1117_v46, %v1117_v46 }
  0xe5   : > { %v548_v3 = vadd.f32 %v547_v0, %v1083_v28  ;;  %v616_v4 = vadd.f32 %v615_v42, %v585_v62 }
  0xe7   : > { %v549_v63 = vadd.f32 %v548_v3, %v1095_v34  ;;  %v617_v5 = vadd.f32 %v616_v4, %v586_v1 }
  0xe9   : > { %v618_v7 = vadd.f32 %v617_v5, %v587_v48  ;;  %v550_v8 = vadd.f32 %v549_v63, %v1105_v40  ;;  %v593_v40 = vmul.f32 %v1079_v27, %v1079_v27 }
  0xeb   : > { %v551_v9 = vadd.f32 %v550_v8, %v1117_v46  ;;  %v619_v10 = vadd.f32 %v618_v7, %v588_v6  ;;  %v594_v46 = vmul.f32 %v1089_v32, %v1089_v32 }
  0xed   : > { %v552_v28 = vadd.f32 %v551_v9, %v1127_v59  ;;  %v620_v13 = vadd.f32 %v619_v10, %v589_v22  ;;  %v595_v59 = vmul.f32 %v1101_v39, %v1101_v39 }
  0xef   : > { %v621_v34 = vadd.f32 %v620_v13, %v590_v11  ;;  %v553_v14 = vadd.f32 %v552_v28, %v443_v12 }
  0xf1   : > { %v622_v16 = vadd.f32 %v621_v34, %v591_v15  ;;  %v554_v17 = vadd.f32 %v553_v14, %v445_v41 }
  0xf3   : > { %v555_v19 = vadd.f32 %v554_v17, %v1079_v27  ;;  %v623_v23 = vadd.f32 %v622_v16, %v592_v18 }
  0xf5   : > { %v556_v25 = vadd.f32 %v555_v19, %v1089_v32  ;;  %v624_v26 = vadd.f32 %v623_v23, %v593_v40 }
  0xf7   : > { %v557_v12 = vadd.f32 %v556_v25, %v1101_v39  ;;  %v625_v29 = vadd.f32 %v624_v26, %v594_v46  ;;  %v598_v39 = vmul.f32 %v1131_v2, %v1131_v2 }
  0xf9   : > { %v626_v33 = vadd.f32 %v625_v29, %v595_v59  ;;  %v558_v27 = vadd.f32 %v557_v12, %v1111_v44 }
  0xfb   : > { %v559_v37 = vadd.f32 %v558_v27, %v1123_v51  ;;  %v627_v32 = vadd.f32 %v626_v33, %v596_v31 }
  0xfd   : > { %v560_v38 = vadd.f32 %v559_v37, %v1131_v2  ;;  %v628_v41 = vadd.f32 %v627_v32, %v597_v35 }
  0xff   : > { %v629_v43 = vadd.f32 %v628_v41, %v598_v39  ;;  %v561_v21 = vadd.f32 %v560_v38, %v1137_v20 }
 0x101   : > { %v630_v44 = vadd.f32 %v629_v43, %v599_v45  ;;  %v562_v47 = vadd.f32 %v561_v21, %v465_v49 }
 0x103   : > { %v563_v50 = vrot.slane %v562_v47, 4  ;;  %v631_v52 = vadd.f32 %v630_v44, %v600_v24 }
 0x105   : > { %v564_v51 = vadd.f32 %v563_v50, %v562_v47  ;;  %v632_v53 = vrot.slane %v631_v52, 4 }
 0x107   : > { %v565_v30 = vrot.slane %v564_v51, 2  ;;  %v633_v54 = vadd.f32 %v632_v53, %v631_v52 }
 0x109   : > { %v566_v55 = vadd.f32 %v565_v30, %v564_v51  ;;  %v634_v2 = vrot.slane %v633_v54, 2 }
 0x10b   : > { %v567_v56 = vrot.slane %v566_v55, 1  ;;  %v635_v57 = vadd.f32 %v634_v2, %v633_v54 }
 0x10d   : > { %v636_v36 = vrot.slane %v635_v57, 1  ;;  %v568_v20 = vadd.f32 %v567_v56, %v566_v55 }
 0x10f   : > { %v637_v49 = vadd.f32 %v636_v36, %v635_v57 }
 0x111   : > { %v639_v58 = vsel %vm638_vm1, %v568_v20, %v637_v49 }
 0x112   : > { %640 = vst [vmem:[%s184_s6] sm:$0x3] %v639_v58 }
 0x113 PF: > { %s14_s12 = sadd.s32 1, %s977_s12  }
 0x114   : > { %p11_p5 = scmp.ge.s32.totalorder %s14_s12, 4  }
 0x116   :  { %13 = sbr.rel (!%p11_p5) target bundleno = 1 (0x1), region = 70 }

// kernel: resblock_forward.7
= control target key start
LH: loop header
LB: loop body
LE: loop exit
PB: predicated region body
PF: predicated region fallthrough
CT: control target
= control target key end

     0   :  { %s861_s12 = smov 0   ;;  %s1066_s0 = inlined_call_operand.vmem [shape: bf16[2,16,16,128], index: 0, kind: input, shape index: {}]   ;;  %s1067_s1 = inlined_call_operand.vmem [shape: bf16[2,16,16,128], index: 1, kind: input, shape index: {}]   ;;  %s1068_s2 = inlined_call_operand.vmem [shape: f32[3,128], index: 2, kind: input, shape index: {}]   ;;  %s1069_s3 = inlined_call_operand.vmem [shape: f32[2,128,256], index: 3, kind: output, shape index: {}]  }
   0x1 LB: > { %s648_s13 = sadd.s32 4294967295, %s839_s12   ;;  %p652_p0 = scmp.ge.s32.totalorder %s839_s12, 1  ;;  %s839_s12 = sphi %s861_s12, %s13_s12  }
   0x2   : > { %p147_p1 = scmp.lt.s32.totalorder %s839_s12, 3 }
   0x4   : > { %p148_p2 = pnand %p652_p0, %p147_p1 }
   0x5   : > { %p176_p3 = scmp.lt.s32.totalorder (!%p148_p2), %s648_s13, 1 }
   0x6   : > { %151 = sbr.rel (%p148_p2) target bundleno = 314 (0x13a), region = 32 }
   0xb   : > { %s1071_s13 = smov (!%p176_p3, %s648_s13), 1  ;;  %v885_v0 = vld [vmem:[%s1068_s2] ss:$0 sm:$0xff]  ;;  %v890_v1 = vld [vmem:[%s1068_s2 + $0x1] ss:$0 sm:$0xff] }
   0xc   : > { %s661_s14 = sshll.u32 %s1071_s13, 7  ;;  %v901_v16 = vld [vmem:[%s1068_s2 + $0x2] ss:$0 sm:$0xff]  ;;  %s663_s27 = sshll.u32 %s1071_s13, 8 }
   0xd   : > { %s875_s17 = scalar_lea.vmem %s1066_s0, %s661_s14  ;;  %s880_s20 = scalar_lea.vmem %s1067_s1, %s661_s14 }
   0xe   : > { %v799_v2 = vld [vmem:[%s875_s17 + $0x40] sm:$0xff]   ;;  %v800_v23 = vld [vmem:[%s875_s17 + $0x48] sm:$0xff]   ;;  %v801_v59 = vld [vmem:[%s875_s17 + $0x50] sm:$0xff]   ;;  %s1029_s30 = scalar_lea.vmem %s1069_s3, %s663_s27 }
   0xf   : > { %v814_v3 = vld [vmem:[%s880_s20 + $0x40] sm:$0xff]   ;;  %v698_v5 = vunpack.c.l.bf16 %v799_v2  ;;  %v699_v9 = vunpack.c.h.bf16 %v799_v2  ;;  %v815_v24 = vld [vmem:[%s880_s20 + $0x48] sm:$0xff]   ;;  %v702_v31 = vunpack.c.l.bf16 %v800_v23  ;;  %v703_v47 = vunpack.c.h.bf16 %v800_v23  ;;  %v816_v60 = vld [vmem:[%s880_s20 + $0x50] sm:$0xff]  }
  0x10   : > { %v665_v4 = vld [vmem:[%s875_s17] sm:$0xff]   ;;  %v762_v6 = vunpack.c.l.bf16 %v814_v3  ;;  %v763_v11 = vunpack.c.h.bf16 %v814_v3  ;;  %v792_v26 = vld [vmem:[%s875_s17 + $0x8] sm:$0xff]   ;;  %v766_v32 = vunpack.c.l.bf16 %v815_v24  ;;  %v767_v48 = vunpack.c.h.bf16 %v815_v24  ;;  %v793_v61 = vld [vmem:[%s875_s17 + $0x10] sm:$0xff]  }
  0x11   : > { %v666_v7 = vunpack.c.l.bf16 %v665_v4  ;;  %v729_v8 = vld [vmem:[%s880_s20] sm:$0xff]   ;;  %v667_v12 = vunpack.c.h.bf16 %v665_v4  ;;  %v337_v14 = vmul.f32 %v885_v0, %v698_v5  ;;  %v338_v18 = vmul.f32 %v885_v0, %v699_v9  ;;  %v807_v27 = vld [vmem:[%s880_s20 + $0x8] sm:$0xff]   ;;  %v808_v62 = vld [vmem:[%s880_s20 + $0x10] sm:$0xff]  }
  0x12   : > { %v730_v10 = vunpack.c.l.bf16 %v729_v8  ;;  %v731_v13 = vunpack.c.h.bf16 %v729_v8  ;;  %v371_v15 = vmul.f32 %v890_v1, %v762_v6  ;;  %v372_v20 = vmul.f32 %v890_v1, %v763_v11 }
  0x13   : > { %v321_v17 = vmul.f32 %v885_v0, %v666_v7  ;;  %v322_v21 = vmul.f32 %v885_v0, %v667_v12  ;;  %v670_v35 = vunpack.c.l.bf16 %v792_v26  ;;  %v734_v36 = vunpack.c.l.bf16 %v807_v27 }
  0x14   : > { %v355_v19 = vmul.f32 %v890_v1, %v730_v10  ;;  %v356_v22 = vmul.f32 %v890_v1, %v731_v13  ;;  %v403_v25 = vadd.f32 %v371_v15, %v337_v14  ;;  %v404_v30 = vadd.f32 %v372_v20, %v338_v18 }
  0x15   : > { %v339_v40 = vmul.f32 %v885_v0, %v702_v31  ;;  %v373_v41 = vmul.f32 %v890_v1, %v766_v32  ;;  %v323_v43 = vmul.f32 %v885_v0, %v670_v35  ;;  %v357_v44 = vmul.f32 %v890_v1, %v734_v36  ;;  %v817_v31 = vld [vmem:[%s880_s20 + $0x58] sm:$0xff]  }
  0x16   : > { %v387_v28 = vadd.f32 %v355_v19, %v321_v17  ;;  %v437_v29 = vadd.f32 %v901_v16, %v403_v25  ;;  %v388_v34 = vadd.f32 %v356_v22, %v322_v21  ;;  %v438_v39 = vadd.f32 %v901_v16, %v404_v30  ;;  %v802_v30 = vld [vmem:[%s875_s17 + $0x58] sm:$0xff]  }
  0x17   : > { %v405_v46 = vadd.f32 %v373_v41, %v339_v40  ;;  %v389_v50 = vadd.f32 %v357_v44, %v323_v43  ;;  %v671_v51 = vunpack.c.h.bf16 %v792_v26  ;;  %v735_v52 = vunpack.c.h.bf16 %v807_v27  ;;  %v794_v32 = vld [vmem:[%s875_s17 + $0x18] sm:$0xff]  }
  0x18   : > { %v421_v33 = vadd.f32 %v901_v16, %v387_v28  ;;  %v469_v37 = vmax.f32 %v437_v29, 0.0  ;;  %v422_v42 = vadd.f32 %v901_v16, %v388_v34  ;;  %v470_v45 = vmax.f32 %v438_v39, 0.0 }
  0x19   : > { %v439_v53 = vadd.f32 %v901_v16, %v405_v46  ;;  %v340_v54 = vmul.f32 %v885_v0, %v703_v47  ;;  %v374_v55 = vmul.f32 %v890_v1, %v767_v48  ;;  %v423_v56 = vadd.f32 %v901_v16, %v389_v50 }
  0x1a   : > { %v453_v38 = vmax.f32 %v421_v33, 0.0  ;;  %517 = vxpose.xlu1.b32.start [1/16] %v469_v37, 128  ;;  %v454_v49 = vmax.f32 %v422_v42, 0.0  ;;  %v324_v57 = vmul.f32 %v885_v0, %v671_v51  ;;  %v358_v58 = vmul.f32 %v890_v1, %v735_v52  ;;  %v809_v33 = vld [vmem:[%s880_s20 + $0x18] sm:$0xff]  }
  0x1b   : > { %v471_v63 = vmax.f32 %v439_v53, 0.0  ;;  %v406_v2 = vadd.f32 %v374_v55, %v340_v54  ;;  %v706_v3 = vunpack.c.l.bf16 %v801_v59  ;;  %v770_v4 = vunpack.c.l.bf16 %v816_v60 }
  0x1c   : > { %485 = vxpose.xlu0.b32.start [1/16] %v453_v38, 128  ;;  %v455_v5 = vmax.f32 %v423_v56, 0.0  ;;  %v390_v6 = vadd.f32 %v358_v58, %v324_v57  ;;  %v674_v7 = vunpack.c.l.bf16 %v793_v61  ;;  %v738_v8 = vunpack.c.l.bf16 %v808_v62 }
  0x1d   : > { %v440_v9 = vadd.f32 %v901_v16, %v406_v2  ;;  %v341_v10 = vmul.f32 %v885_v0, %v706_v3  ;;  %v375_v11 = vmul.f32 %v890_v1, %v770_v4  ;;  %v707_v18 = vunpack.c.h.bf16 %v801_v59  ;;  %v795_v2 = vld [vmem:[%s875_s17 + $0x20] sm:$0xff]  }
  0x1e   : > { %v424_v12 = vadd.f32 %v901_v16, %v390_v6  ;;  %v325_v13 = vmul.f32 %v885_v0, %v674_v7  ;;  %v359_v14 = vmul.f32 %v890_v1, %v738_v8  ;;  %v771_v19 = vunpack.c.h.bf16 %v816_v60  ;;  %v810_v3 = vld [vmem:[%s880_s20 + $0x20] sm:$0xff]  }
  0x1f   : > { %v472_v15 = vmax.f32 %v440_v9, 0.0  ;;  %v407_v17 = vadd.f32 %v375_v11, %v341_v10  ;;  %v675_v22 = vunpack.c.h.bf16 %v793_v61  ;;  %v739_v23 = vunpack.c.h.bf16 %v808_v62  ;;  %v803_v62 = vld [vmem:[%s875_s17 + $0x60] sm:$0xff]  }
  0x20   : > { %v456_v20 = vmax.f32 %v424_v12, 0.0  ;;  %v391_v21 = vadd.f32 %v359_v14, %v325_v13  ;;  %v342_v25 = vmul.f32 %v885_v0, %v707_v18  ;;  %v376_v26 = vmul.f32 %v890_v1, %v771_v19 }
  0x21   : > { %v441_v24 = vadd.f32 %v901_v16, %v407_v17  ;;  %v326_v28 = vmul.f32 %v885_v0, %v675_v22  ;;  %v360_v29 = vmul.f32 %v890_v1, %v739_v23  ;;  %v710_v36 = vunpack.c.l.bf16 %v802_v30 }
  0x22   : > { %518 = vxpose.xlu1.b32.cont [2/16] %v470_v45, 128  ;;  %v425_v27 = vadd.f32 %v901_v16, %v391_v21  ;;  %v408_v35 = vadd.f32 %v376_v26, %v342_v25  ;;  %v774_v37 = vunpack.c.l.bf16 %v817_v31  ;;  %v678_v40 = vunpack.c.l.bf16 %v794_v32 }
  0x23   : > { %v473_v34 = vmax.f32 %v441_v24, 0.0  ;;  %v392_v39 = vadd.f32 %v360_v29, %v326_v28  ;;  %v742_v41 = vunpack.c.l.bf16 %v809_v33  ;;  %v343_v43 = vmul.f32 %v885_v0, %v710_v36  ;;  %v811_v36 = vld [vmem:[%s880_s20 + $0x28] sm:$0xff]  }
  0x24   : > { %486 = vxpose.xlu0.b32.cont [2/16] %v454_v49, 128  ;;  %v457_v38 = vmax.f32 %v425_v27, 0.0  ;;  %v442_v42 = vadd.f32 %v901_v16, %v408_v35  ;;  %v377_v44 = vmul.f32 %v890_v1, %v774_v37  ;;  %v327_v46 = vmul.f32 %v885_v0, %v678_v40  ;;  %v796_v35 = vld [vmem:[%s875_s17 + $0x28] sm:$0xff]  }
  0x25   : > { %v426_v45 = vadd.f32 %v901_v16, %v392_v39  ;;  %v361_v47 = vmul.f32 %v890_v1, %v742_v41  ;;  %v711_v50 = vunpack.c.h.bf16 %v802_v30  ;;  %v775_v51 = vunpack.c.h.bf16 %v817_v31 }
  0x26   : > { %v474_v48 = vmax.f32 %v442_v42, 0.0  ;;  %v409_v49 = vadd.f32 %v377_v44, %v343_v43  ;;  %v679_v54 = vunpack.c.h.bf16 %v794_v32  ;;  %v743_v55 = vunpack.c.h.bf16 %v809_v33  ;;  %v804_v33 = vld [vmem:[%s875_s17 + $0x68] sm:$0xff]  }
  0x27   : > { %v458_v52 = vmax.f32 %v426_v45, 0.0  ;;  %v393_v53 = vadd.f32 %v361_v47, %v327_v46  ;;  %v344_v57 = vmul.f32 %v885_v0, %v711_v50  ;;  %v378_v58 = vmul.f32 %v890_v1, %v775_v51 }
  0x28   : > { %v443_v56 = vadd.f32 %v901_v16, %v409_v49  ;;  %v328_v60 = vmul.f32 %v885_v0, %v679_v54  ;;  %v362_v61 = vmul.f32 %v890_v1, %v743_v55  ;;  %v714_v6 = vunpack.c.l.bf16 %v803_v62 }
  0x29   : > { %v427_v59 = vadd.f32 %v901_v16, %v393_v53  ;;  %v682_v10 = vunpack.c.l.bf16 %v795_v2  ;;  %v746_v11 = vunpack.c.l.bf16 %v810_v3  ;;  %v715_v21 = vunpack.c.h.bf16 %v803_v62 }
  0x2a   : > { %519 = vxpose.xlu1.b32.cont [3/16] %v471_v63, 128  ;;  %v818_v63 = vld [vmem:[%s880_s20 + $0x60] sm:$0xff]   ;;  %v475_v4 = vmax.f32 %v443_v56, 0.0  ;;  %v394_v9 = vadd.f32 %v362_v61, %v328_v60  ;;  %v345_v13 = vmul.f32 %v885_v0, %v714_v6  ;;  %v683_v25 = vunpack.c.h.bf16 %v795_v2  ;;  %v812_v6 = vld [vmem:[%s880_s20 + $0x30] sm:$0xff]  }
  0x2b   : > { %v778_v7 = vunpack.c.l.bf16 %v818_v63  ;;  %v459_v8 = vmax.f32 %v427_v59, 0.0  ;;  %v329_v17 = vmul.f32 %v885_v0, %v682_v10  ;;  %v363_v18 = vmul.f32 %v890_v1, %v746_v11 }
  0x2c   : > { %487 = vxpose.xlu0.b32.cont [3/16] %v455_v5, 128  ;;  %v410_v5 = vadd.f32 %v378_v58, %v344_v57  ;;  %v779_v22 = vunpack.c.h.bf16 %v818_v63  ;;  %v747_v26 = vunpack.c.h.bf16 %v810_v3  ;;  %v346_v28 = vmul.f32 %v885_v0, %v715_v21  ;;  %v805_v3 = vld [vmem:[%s875_s17 + $0x70] sm:$0xff]  }
  0x2d   : > { %v379_v14 = vmul.f32 %v890_v1, %v778_v7  ;;  %v395_v24 = vadd.f32 %v363_v18, %v329_v17  ;;  %v330_v31 = vmul.f32 %v885_v0, %v683_v25  ;;  %v718_v39 = vunpack.c.l.bf16 %v804_v33 }
  0x2e   : > { %v444_v12 = vadd.f32 %v901_v16, %v410_v5  ;;  %v380_v29 = vmul.f32 %v890_v1, %v779_v22  ;;  %v364_v32 = vmul.f32 %v890_v1, %v747_v26  ;;  %v686_v43 = vunpack.c.l.bf16 %v796_v35  ;;  %v797_v5 = vld [vmem:[%s875_s17 + $0x30] sm:$0xff]  }
  0x2f   : > { %v429_v30 = vadd.f32 %v901_v16, %v395_v24  ;;  %v750_v44 = vunpack.c.l.bf16 %v811_v36  ;;  %v347_v46 = vmul.f32 %v885_v0, %v718_v39  ;;  %v719_v53 = vunpack.c.h.bf16 %v804_v33  ;;  %v813_v39 = vld [vmem:[%s880_s20 + $0x38] sm:$0xff]  }
  0x30   : > { %v476_v19 = vmax.f32 %v444_v12, 0.0  ;;  %v396_v42 = vadd.f32 %v364_v32, %v330_v31  ;;  %v331_v49 = vmul.f32 %v885_v0, %v686_v43  ;;  %v687_v57 = vunpack.c.h.bf16 %v796_v35 }
  0x31   : > { %v461_v41 = vmax.f32 %v429_v30, 0.0  ;;  %v365_v50 = vmul.f32 %v890_v1, %v750_v44  ;;  %v751_v58 = vunpack.c.h.bf16 %v811_v36  ;;  %v348_v60 = vmul.f32 %v885_v0, %v719_v53  ;;  %v806_v36 = vld [vmem:[%s875_s17 + $0x78] sm:$0xff]  }
  0x32   : > { %520 = vxpose.xlu1.b32.cont [4/16] %v472_v15, 128  ;;  %v428_v15 = vadd.f32 %v901_v16, %v394_v9  ;;  %v332_v63 = vmul.f32 %v885_v0, %v687_v57  ;;  %v722_v9 = vunpack.c.l.bf16 %v805_v3  ;;  %v723_v24 = vunpack.c.h.bf16 %v805_v3 }
  0x33   : > { %v397_v56 = vadd.f32 %v365_v50, %v331_v49  ;;  %v366_v2 = vmul.f32 %v890_v1, %v751_v58 }
  0x34   : > { %488 = vxpose.xlu0.b32.cont [4/16] %v456_v20, 128  ;;  %v411_v20 = vadd.f32 %v379_v14, %v345_v13  ;;  %v460_v23 = vmax.f32 %v428_v15, 0.0  ;;  %v690_v13 = vunpack.c.l.bf16 %v797_v5  ;;  %v754_v14 = vunpack.c.l.bf16 %v812_v6 }
  0x35   : > { %v431_v62 = vadd.f32 %v901_v16, %v397_v56  ;;  %v398_v12 = vadd.f32 %v366_v2, %v332_v63  ;;  %v349_v17 = vmul.f32 %v885_v0, %v722_v9  ;;  %v350_v31 = vmul.f32 %v885_v0, %v723_v24 }
  0x36   : > { %v445_v27 = vadd.f32 %v901_v16, %v411_v20  ;;  %v333_v20 = vmul.f32 %v885_v0, %v690_v13  ;;  %v367_v21 = vmul.f32 %v890_v1, %v754_v14  ;;  %v727_v56 = vunpack.c.h.bf16 %v806_v36 }
  0x37   : > { %v463_v11 = vmax.f32 %v431_v62, 0.0 }
  0x38   : > { %v477_v37 = vmax.f32 %v445_v27, 0.0  ;;  %v399_v27 = vadd.f32 %v367_v21, %v333_v20  ;;  %v352_v63 = vmul.f32 %v885_v0, %v727_v56 }
  0x3a   : > { %521 = vxpose.xlu1.b32.cont [5/16] %v473_v34, 128  ;;  %v819_v34 = vld [vmem:[%s880_s20 + $0x68] sm:$0xff]   ;;  %v433_v33 = vadd.f32 %v901_v16, %v399_v27 }
  0x3b   : > { %v782_v40 = vunpack.c.l.bf16 %v819_v34  ;;  %v783_v54 = vunpack.c.h.bf16 %v819_v34 }
  0x3c   : > { %489 = vxpose.xlu0.b32.cont [5/16] %v457_v38, 128  ;;  %v412_v38 = vadd.f32 %v380_v29, %v346_v28  ;;  %v691_v28 = vunpack.c.h.bf16 %v797_v5  ;;  %v755_v29 = vunpack.c.h.bf16 %v812_v6  ;;  %v465_v44 = vmax.f32 %v433_v33, 0.0 }
  0x3d   : > { %v381_v47 = vmul.f32 %v890_v1, %v782_v40  ;;  %v382_v61 = vmul.f32 %v890_v1, %v783_v54 }
  0x3e   : > { %v446_v45 = vadd.f32 %v901_v16, %v412_v38  ;;  %v334_v34 = vmul.f32 %v885_v0, %v691_v28  ;;  %v368_v35 = vmul.f32 %v890_v1, %v755_v29  ;;  %v798_v38 = vld [vmem:[%s875_s17 + $0x38] sm:$0xff]  }
  0x40   : > { %v478_v51 = vmax.f32 %v446_v45, 0.0  ;;  %v400_v45 = vadd.f32 %v368_v35, %v334_v34 }
  0x42   : > { %522 = vxpose.xlu1.b32.cont [6/16] %v474_v48, 128  ;;  %v430_v48 = vadd.f32 %v901_v16, %v396_v42  ;;  %v726_v42 = vunpack.c.l.bf16 %v806_v36 }
  0x44   : > { %490 = vxpose.xlu0.b32.cont [6/16] %v458_v52, 128  ;;  %v413_v52 = vadd.f32 %v381_v47, %v347_v46  ;;  %v462_v55 = vmax.f32 %v430_v48, 0.0  ;;  %v694_v46 = vunpack.c.l.bf16 %v798_v38  ;;  %v758_v47 = vunpack.c.l.bf16 %v813_v39 }
  0x45   : > { %v351_v49 = vmul.f32 %v885_v0, %v726_v42 }
  0x46   : > { %v447_v59 = vadd.f32 %v901_v16, %v413_v52  ;;  %v335_v52 = vmul.f32 %v885_v0, %v694_v46  ;;  %v369_v53 = vmul.f32 %v890_v1, %v758_v47 }
  0x48   : > { %v479_v7 = vmax.f32 %v447_v59, 0.0  ;;  %v401_v59 = vadd.f32 %v369_v53, %v335_v52 }
  0x4a   : > { %523 = vxpose.xlu1.b32.cont [7/16] %v475_v4, 128  ;;  %v820_v4 = vld [vmem:[%s880_s20 + $0x70] sm:$0xff]   ;;  %v435_v3 = vadd.f32 %v901_v16, %v401_v59 }
  0x4b   : > { %v786_v10 = vunpack.c.l.bf16 %v820_v4  ;;  %v787_v25 = vunpack.c.h.bf16 %v820_v4 }
  0x4c   : > { %491 = vxpose.xlu0.b32.cont [7/16] %v459_v8, 128  ;;  %v414_v8 = vadd.f32 %v382_v61, %v348_v60  ;;  %v695_v60 = vunpack.c.h.bf16 %v798_v38  ;;  %v759_v61 = vunpack.c.h.bf16 %v813_v39 }
  0x4d   : > { %v383_v18 = vmul.f32 %v890_v1, %v786_v10  ;;  %v384_v32 = vmul.f32 %v890_v1, %v787_v25 }
  0x4e   : > { %v448_v15 = vadd.f32 %v901_v16, %v414_v8  ;;  %v336_v4 = vmul.f32 %v885_v0, %v695_v60  ;;  %v370_v5 = vmul.f32 %v890_v1, %v759_v61  ;;  %v467_v8 = vmax.f32 %v435_v3, 0.0 }
  0x50   : > { %v480_v22 = vmax.f32 %v448_v15, 0.0  ;;  %v402_v9 = vadd.f32 %v370_v5, %v336_v4 }
  0x52   : > { %524 = vxpose.xlu1.b32.cont [8/16] %v476_v19, 128  ;;  %v432_v19 = vadd.f32 %v901_v16, %v398_v12 }
  0x54   : > { %492 = vxpose.xlu0.b32.cont [8/16] %v460_v23, 128  ;;  %v415_v23 = vadd.f32 %v383_v18, %v349_v17  ;;  %v464_v26 = vmax.f32 %v432_v19, 0.0 }
  0x56   : > { %v449_v30 = vadd.f32 %v901_v16, %v415_v23 }
  0x58   : > { %v481_v40 = vmax.f32 %v449_v30, 0.0 }
  0x5a   : > { %525 = vxpose.xlu1.b32.cont [9/16] %v477_v37, 128  ;;  %v821_v37 = vld [vmem:[%s880_s20 + $0x78] sm:$0xff]  }
  0x5b   : > { %v790_v43 = vunpack.c.l.bf16 %v821_v37  ;;  %v791_v57 = vunpack.c.h.bf16 %v821_v37 }
  0x5c   : > { %493 = vxpose.xlu0.b32.cont [9/16] %v461_v41, 128  ;;  %v416_v41 = vadd.f32 %v384_v32, %v350_v31 }
  0x5d   : > { %v385_v50 = vmul.f32 %v890_v1, %v790_v43  ;;  %v386_v2 = vmul.f32 %v890_v1, %v791_v57 }
  0x5e   : > { %v450_v48 = vadd.f32 %v901_v16, %v416_v41 }
  0x60   : > { %v482_v54 = vmax.f32 %v450_v48, 0.0 }
  0x62   : > { %526 = vxpose.xlu1.b32.cont [10/16] %v478_v51, 128  ;;  %v434_v51 = vadd.f32 %v901_v16, %v400_v45 }
  0x64   : > { %494 = vxpose.xlu0.b32.cont [10/16] %v462_v55, 128  ;;  %v417_v55 = vadd.f32 %v385_v50, %v351_v49  ;;  %v466_v58 = vmax.f32 %v434_v51, 0.0 }
  0x66   : > { %v451_v62 = vadd.f32 %v901_v16, %v417_v55 }
  0x68   : > { %v483_v6 = vmax.f32 %v451_v62, 0.0 }
  0x6a   : > { %527 = vxpose.xlu1.b32.cont [11/16] %v479_v7, 128  ;;  %v418_v7 = vadd.f32 %v386_v2, %v352_v63 }
  0x6c   : > { %495 = vxpose.xlu0.b32.cont [11/16] %v463_v11, 128  ;;  %v452_v10 = vadd.f32 %v901_v16, %v418_v7  ;;  %v436_v11 = vadd.f32 %v901_v16, %v402_v9 }
  0x6e   : > { %v484_v12 = vmax.f32 %v452_v10, 0.0  ;;  %v468_v13 = vmax.f32 %v436_v11, 0.0 }
  0x72   : > { %528 = vxpose.xlu1.b32.cont [12/16] %v480_v22, 128 }
  0x74   : > { %496 = vxpose.xlu0.b32.cont [12/16] %v464_v26, 128 }
  0x7a   : > { %529 = vxpose.xlu1.b32.cont [13/16] %v481_v40, 128 }
  0x7c   : > { %497 = vxpose.xlu0.b32.cont [13/16] %v465_v44, 128 }
  0x82   : > { %530 = vxpose.xlu1.b32.cont [14/16] %v482_v54, 128 }
  0x84   : > { %498 = vxpose.xlu0.b32.cont [14/16] %v466_v58, 128 }
  0x8a   : > { %531 = vxpose.xlu1.b32.cont [15/16] %v483_v6, 128 }
  0x8c   : > { %499 = vxpose.xlu0.b32.cont [15/16] %v467_v8, 128 }
  0x92   : > { %532 = vxpose.xlu1.b32.end [16/16] %v484_v12, 128 }
  0x94   : > { %500 = vxpose.xlu0.b32.end [16/16] %v468_v13, 128 }
  0xbe   : > { %v533_v0 = vpop.trf.xlu1 }
  0xbf   : > { %550 = vst [vmem:[%s1029_s30 + $0x8] sm:$0xff] %v533_v0 }
  0xc0   : > { %v501_v1 = vpop.trf.xlu0 }
  0xc1   : > { %549 = vst [vmem:[%s1029_s30] sm:$0xff] %v501_v1 }
  0xc6   : > { %v534_v16 = vpop.trf.xlu1 }
  0xc7   : > { %552 = vst [vmem:[%s1029_s30 + $0x18] sm:$0xff] %v534_v16 }
  0xc8   : > { %v502_v14 = vpop.trf.xlu0 }
  0xc9   : > { %551 = vst [vmem:[%s1029_s30 + $0x10] sm:$0xff] %v502_v14 }
  0xce   : > { %v535_v15 = vpop.trf.xlu1 }
  0xcf   : > { %554 = vst [vmem:[%s1029_s30 + $0x28] sm:$0xff] %v535_v15 }
  0xd0   : > { %v503_v17 = vpop.trf.xlu0 }
  0xd1   : > { %553 = vst [vmem:[%s1029_s30 + $0x20] sm:$0xff] %v503_v17 }
  0xd6   : > { %v536_v18 = vpop.trf.xlu1 }
  0xd7   : > { %556 = vst [vmem:[%s1029_s30 + $0x38] sm:$0xff] %v536_v18 }
  0xd8   : > { %v504_v19 = vpop.trf.xlu0 }
  0xd9   : > { %555 = vst [vmem:[%s1029_s30 + $0x30] sm:$0xff] %v504_v19 }
  0xde   : > { %v537_v20 = vpop.trf.xlu1 }
  0xdf   : > { %558 = vst [vmem:[%s1029_s30 + $0x48] sm:$0xff] %v537_v20 }
  0xe0   : > { %v505_v21 = vpop.trf.xlu0 }
  0xe1   : > { %557 = vst [vmem:[%s1029_s30 + $0x40] sm:$0xff] %v505_v21 }
  0xe6   : > { %v538_v22 = vpop.trf.xlu1 }
  0xe7   : > { %560 = vst [vmem:[%s1029_s30 + $0x58] sm:$0xff] %v538_v22 }
  0xe8   : > { %v506_v23 = vpop.trf.xlu0 }
  0xe9   : > { %559 = vst [vmem:[%s1029_s30 + $0x50] sm:$0xff] %v506_v23 }
  0xee   : > { %v539_v24 = vpop.trf.xlu1 }
  0xef   : > { %562 = vst [vmem:[%s1029_s30 + $0x68] sm:$0xff] %v539_v24 }
  0xf0   : > { %v507_v25 = vpop.trf.xlu0 }
  0xf1   : > { %561 = vst [vmem:[%s1029_s30 + $0x60] sm:$0xff] %v507_v25 }
  0xf6   : > { %v540_v26 = vpop.trf.xlu1 }
  0xf7   : > { %564 = vst [vmem:[%s1029_s30 + $0x78] sm:$0xff] %v540_v26 }
  0xf8   : > { %v508_v27 = vpop.trf.xlu0 }
  0xf9   : > { %563 = vst [vmem:[%s1029_s30 + $0x70] sm:$0xff] %v508_v27 }
  0xfe   : > { %v541_v28 = vpop.trf.xlu1 }
  0xff   : > { %566 = vst [vmem:[%s1029_s30 + $0x88] sm:$0xff] %v541_v28 }
 0x100   : > { %v509_v29 = vpop.trf.xlu0 }
 0x101   : > { %565 = vst [vmem:[%s1029_s30 + $0x80] sm:$0xff] %v509_v29 }
 0x106   : > { %v542_v30 = vpop.trf.xlu1 }
 0x107   : > { %568 = vst [vmem:[%s1029_s30 + $0x98] sm:$0xff] %v542_v30 }
 0x108   : > { %v510_v31 = vpop.trf.xlu0 }
 0x109   : > { %567 = vst [vmem:[%s1029_s30 + $0x90] sm:$0xff] %v510_v31 }
 0x10e   : > { %v543_v32 = vpop.trf.xlu1 }
 0x10f   : > { %570 = vst [vmem:[%s1029_s30 + $0xa8] sm:$0xff] %v543_v32 }
 0x110   : > { %v511_v33 = vpop.trf.xlu0 }
 0x111   : > { %569 = vst [vmem:[%s1029_s30 + $0xa0] sm:$0xff] %v511_v33 }
 0x116   : > { %v544_v34 = vpop.trf.xlu1 }
 0x117   : > { %572 = vst [vmem:[%s1029_s30 + $0xb8] sm:$0xff] %v544_v34 }
 0x118   : > { %v512_v35 = vpop.trf.xlu0 }
 0x119   : > { %571 = vst [vmem:[%s1029_s30 + $0xb0] sm:$0xff] %v512_v35 }
 0x11e   : > { %v545_v36 = vpop.trf.xlu1 }
 0x11f   : > { %574 = vst [vmem:[%s1029_s30 + $0xc8] sm:$0xff] %v545_v36 }
 0x120   : > { %v513_v37 = vpop.trf.xlu0 }
 0x121   : > { %573 = vst [vmem:[%s1029_s30 + $0xc0] sm:$0xff] %v513_v37 }
 0x126   : > { %v546_v38 = vpop.trf.xlu1 }
 0x127   : > { %576 = vst [vmem:[%s1029_s30 + $0xd8] sm:$0xff] %v546_v38 }
 0x128   : > { %v514_v39 = vpop.trf.xlu0 }
 0x129   : > { %575 = vst [vmem:[%s1029_s30 + $0xd0] sm:$0xff] %v514_v39 }
 0x12e   : > { %v547_v40 = vpop.trf.xlu1 }
 0x12f   : > { %578 = vst [vmem:[%s1029_s30 + $0xe8] sm:$0xff] %v547_v40 }
 0x130   : > { %v515_v41 = vpop.trf.xlu0 }
 0x131   : > { %577 = vst [vmem:[%s1029_s30 + $0xe0] sm:$0xff] %v515_v41 }
 0x136   : > { %v548_v42 = vpop.trf.xlu1 }
 0x137   : > { %580 = vst [vmem:[%s1029_s30 + $0xf8] sm:$0xff] %v548_v42 }
 0x138   : > { %v516_v43 = vpop.trf.xlu0 }
 0x139   : > { %579 = vst [vmem:[%s1029_s30 + $0xf0] sm:$0xff] %v516_v43 }
 0x13a PF: > { %s13_s12 = sadd.s32 1, %s839_s12  }
 0x13b   : > { %p10_p4 = scmp.ge.s32.totalorder %s13_s12, 4  }
 0x13d   :  { %12 = sbr.rel (!%p10_p4) target bundleno = 1 (0x1), region = 65 }

// kernel: resblock_forward.4
= control target key start
LH: loop header
LB: loop body
LE: loop exit
PB: predicated region body
PF: predicated region fallthrough
CT: control target
= control target key end

     0   :  { %s2802_s12 = smov 0   ;;  %s3809_s0 = inlined_call_operand.vmem [shape: bf16[2,18,18,64], index: 0, kind: input, shape index: {}]   ;;  %s3810_s1 = inlined_call_operand.vmem [shape: bf16[576,128], index: 1, kind: input, shape index: {}]   ;;  %s3811_s2 = inlined_call_operand.vmem [shape: bf16[2,18,18,128], index: 2, kind: output, shape index: {0}]   ;;  %s3812_s3 = inlined_call_operand.vmem [shape: f32[2,2,128], index: 3, kind: output, shape index: {1}]  }
   0x1 LB: > { %s2441_s13 = sadd.s32 4294967295, %s2778_s12   ;;  %p2445_p0 = scmp.ge.s32.totalorder %s2778_s12, 1  ;;  %s2778_s12 = sphi %s2802_s12, %s14_s12  }
   0x2   : > { %p140_p1 = scmp.lt.s32.totalorder %s2778_s12, 3 }
   0x4   : > { %p141_p2 = pnand %p2445_p0, %p140_p1 }
   0x6   : > { %144 = sbr.rel (%p141_p2) target bundleno = 619 (0x26b), region = 28 }
   0xb   : > { %p168_p3 = scmp.lt.s32.totalorder %s2441_s13, 1  ;;  %vm365_vm0 = vsmask.f32 7424  ;;  %s2780_s18 = smov 64   ;;  %vm590_vm1 = vcmask 1046528   ;;  %vm753_vm2 = vcmask 523264  }
   0xc   : > { %vm1809_vm3 = vcmask 1040384   ;;  %vm2078_vm4 = vsmask.f32 256 }
   0xd   : > { %s3842_s13 = smov (!%p168_p3, %s2441_s13), 1  ;;  %vm3528_vm5 = vmand %vm1809_vm3, %vm2078_vm4 }
   0xe   : > { %s2761_s14 = smul.u32 216, %s3842_s13 }
  0x10   : > { %s2818_s17 = scalar_lea.vmem %s3809_s0, %s2761_s14  ;;  %s3540_s25 = scalar_lea.vmem %s3811_s2, %s2761_s14 }
  0x11   : > { %v2821_v0 = vld [vmem:[%s2818_s17 + $0x60] sm:$0xff]  ;;  %v209_v1 = vld [vmem:[%s2818_s17 + $0x68] sm:$0x1]  ;;  %v2825_v2 = vld [vmem:[%s2818_s17 + $0x30] sm:$0xff]  ;;  %s2448_s14 = sshll.u32 %s3842_s13, 1 }
  0x12   : > { %v341_v3 = vunpack.c.l.b16 %v209_v1  ;;  %v197_v4 = vld [vmem:[%s2818_s17 + $0x38] sm:$0x1]  ;;  %v2829_v5 = vld [vmem:[%s2818_s17 + $0x90] sm:$0xff]  ;;  %v463_v7 = vshrl.u32 %v2821_v0, 16  ;;  %v465_v8 = vshll.u32 %v2821_v0, 16  ;;  %v415_v10 = vshrl.u32 %v2825_v2, 16  ;;  %s181_s28 = scalar_lea.vmem %s3812_s3, %s2448_s14 }
  0x13   : > { %v221_v6 = vld [vmem:[%s2818_s17 + $0x98] sm:$0x1]  ;;  %v337_v9 = vunpack.c.l.b16 %v197_v4  ;;  %v185_v11 = vld [vmem:[%s2818_s17 + $0x8] sm:$0x1]  ;;  %v417_v13 = vshll.u32 %v2825_v2, 16  ;;  %v511_v15 = vshrl.u32 %v2829_v5, 16 }
  0x14   : > { %v2836_v12 = vpack.c.b16 %v341_v3, %v341_v3  ;;  %v345_v14 = vunpack.c.l.b16 %v221_v6  ;;  %v2841_v16 = vld [vmem:[%s2818_s17] sm:$0xff]  ;;  %v467_v17 = vrot.slane %v465_v8, 1  ;;  %v513_v19 = vshll.u32 %v2829_v5, 16  ;;  %v2861_v38 = vld [vmem:[%s2818_s17 + $0xc] sm:$0xff]  ;;  %v188_v39 = vld [vmem:[%s2818_s17 + $0x14] sm:$0x1] }
  0x15   : > { %v2843_v18 = vpack.c.b16 %v337_v9, %v337_v9  ;;  %v333_v20 = vunpack.c.l.b16 %v185_v11  ;;  %v419_v22 = vrot.slane %v417_v13, 1  ;;  %v367_v24 = vshrl.u32 %v2841_v16, 16  ;;  %v200_v25 = vld [vmem:[%s2818_s17 + $0x44] sm:$0x1]  ;;  %v2855_v30 = vld [vmem:[%s2818_s17 + $0x3c] sm:$0xff]  ;;  %v2880_v52 = vld [vmem:[%s2818_s17 + $0x6c] sm:$0xff] }
  0x16   : > { %v470_v21 = vshll.u32 %v2836_v12, 16  ;;  %v2847_v23 = vpack.c.b16 %v345_v14, %v345_v14  ;;  %v468_v26 = vor.u32 %v467_v17, %v463_v7  ;;  %v515_v28 = vrot.slane %v513_v19, 1  ;;  %v203_v51 = vld [vmem:[%s2818_s17 + $0x50] sm:$0x1]  ;;  %v212_v53 = vld [vmem:[%s2818_s17 + $0x74] sm:$0x1] }
  0x17   : > { %v422_v27 = vshll.u32 %v2843_v18, 16  ;;  %v2852_v29 = vpack.c.b16 %v333_v20, %v333_v20  ;;  %v420_v32 = vor.u32 %v419_v22, %v415_v10  ;;  %v369_v34 = vshll.u32 %v2841_v16, 16  ;;  %v2891_v59 = vld [vmem:[%s2818_s17 + $0xa8] sm:$0xff]  ;;  %v227_v60 = vld [vmem:[%s2818_s17 + $0xb0] sm:$0x1]  ;;  %v2907_v14 = vld [vmem:[%s2818_s17 + $0x9c] sm:$0xff] }
  0x18   : > { %v472_v31 = vrot.slane %v470_v21, 1  ;;  %v518_v33 = vshll.u32 %v2847_v23, 16  ;;  %v338_v37 = vunpack.c.l.b16 %v200_v25  ;;  %v516_v41 = vor.u32 %v515_v28, %v511_v15  ;;  %v2897_v63 = vld [vmem:[%s2818_s17 + $0x48] sm:$0xff]  ;;  %v224_v9 = vld [vmem:[%s2818_s17 + $0xa4] sm:$0x1] }
  0x19   : > { %v424_v35 = vrot.slane %v422_v27, 1  ;;  %v374_v36 = vshll.u32 %v2852_v29, 16  ;;  %v371_v42 = vrot.slane %v369_v34, 1  ;;  %v429_v46 = vshll.u32 %v2855_v30, 16 }
  0x1a   : > { %v2865_v40 = vsel %vm365_vm0, %v468_v26, %v472_v31  ;;  %v520_v44 = vrot.slane %v518_v33, 1  ;;  %v2872_v45 = vpack.c.b16 %v338_v37, %v338_v37  ;;  %v334_v49 = vunpack.c.l.b16 %v188_v39  ;;  %v2925_v37 = vld [vmem:[%s2818_s17 + $0x78] sm:$0xff]  ;;  %v215_v39 = vld [vmem:[%s2818_s17 + $0x80] sm:$0x1] }
  0x1b   : > { %574 = vrot.lane.b32.xlu0 %v2865_v40, %s2780_s18  ;;  %v2870_v43 = vsel %vm365_vm0, %v420_v32, %v424_v35  ;;  %v372_v47 = vor.u32 %v371_v42, %v367_v24  ;;  %v376_v48 = vrot.slane %v374_v36, 1  ;;  %v381_v50 = vshll.u32 %v2861_v38, 16  ;;  %v218_v32 = vld [vmem:[%s2818_s17 + $0x8c] sm:$0x1] }
  0x1c   : > { %566 = vrot.lane.b32.xlu1 %v2870_v43, %s2780_s18  ;;  %v2883_v54 = vpack.c.b16 %v334_v49, %v334_v49  ;;  %v2886_v55 = vsel %vm365_vm0, %v516_v41, %v520_v44  ;;  %v427_v56 = vshrl.u32 %v2855_v30, 16  ;;  %v431_v57 = vrot.slane %v429_v46, 1 }
  0x1d   : > { %v434_v58 = vshll.u32 %v2872_v45, 16  ;;  %v377_v61 = vsel %vm365_vm0, %v372_v47, %v376_v48  ;;  %v379_v62 = vshrl.u32 %v2861_v38, 16  ;;  %v339_v1 = vunpack.c.l.b16 %v203_v51  ;;  %v2934_v47 = vld [vmem:[%s2818_s17 + $0x84] sm:$0xff] }
  0x1e   : > { %v342_v3 = vunpack.c.l.b16 %v212_v53  ;;  %v383_v4 = vrot.slane %v381_v50, 1  ;;  %v386_v6 = vshll.u32 %v2883_v54, 16  ;;  %v475_v7 = vshrl.u32 %v2880_v52, 16 }
  0x1f   : > { %v477_v8 = vshll.u32 %v2880_v52, 16  ;;  %v439_v10 = vshrl.u32 %v2897_v63, 16  ;;  %v347_v13 = vunpack.c.l.b16 %v227_v60  ;;  %v432_v15 = vor.u32 %v431_v57, %v427_v56 }
  0x20   : > { %v2904_v11 = vpack.c.b16 %v342_v3, %v342_v3  ;;  %v436_v17 = vrot.slane %v434_v58, 1  ;;  %v537_v20 = vshll.u32 %v2891_v59, 16  ;;  %v441_v21 = vshll.u32 %v2897_v63, 16  ;;  %v230_v3 = vld [vmem:[%s2818_s17 + $0xbc] sm:$0x1] }
  0x21   : > { %v479_v19 = vrot.slane %v477_v8, 1  ;;  %v2915_v24 = vpack.c.b16 %v347_v13, %v347_v13  ;;  %v346_v25 = vunpack.c.l.b16 %v224_v9  ;;  %v384_v26 = vor.u32 %v383_v4, %v379_v62  ;;  %v2708_v13 = vld [vmem:[%s3810_s1 + $0x38] sm:$0xff] }
  0x22   : > { %v482_v22 = vshll.u32 %v2904_v11, 16  ;;  %v388_v27 = vrot.slane %v386_v6, 1  ;;  %v2917_v28 = vpack.c.b16 %v339_v1, %v339_v1  ;;  %v523_v35 = vshrl.u32 %v2907_v14, 16  ;;  %v2948_v1 = vld [vmem:[%s2818_s17 + $0xb4] sm:$0xff]  ;;  %2737 = vmatpush.bf16.msra.mxu1 %v2708_v13  ;;  %2738 = vmatpush.bf16.msra.mxu2 %v2708_v13 }
  0x23   : > { %582 = vrot.lane.b32.xlu0 %v2886_v55, %s2780_s18  ;;  %v480_v31 = vor.u32 %v479_v19, %v475_v7  ;;  %v2920_v34 = vpack.c.b16 %v346_v25, %v346_v25  ;;  %v525_v36 = vshll.u32 %v2907_v14, 16  ;;  %v2929_v41 = vsel %vm365_vm0, %v432_v15, %v436_v17  ;;  %1258 = vmatpush.bf16.msra.mxu0 %v2708_v13 }
  0x24   : > { %558 = vrot.lane.b32.xlu1 %v377_v61, %s2780_s18  ;;  %v484_v33 = vrot.slane %v482_v22, 1  ;;  %v535_v42 = vshrl.u32 %v2891_v59, 16  ;;  %v539_v44 = vrot.slane %v537_v20, 1  ;;  %v542_v46 = vshll.u32 %v2915_v24, 16  ;;  %v194_v20 = vld [vmem:[%s2818_s17 + $0x2c] sm:$0x1]  ;;  %2739 = vmatpush.bf16.msra.mxu3 %v2708_v13 }
  0x25   : > { %v527_v49 = vrot.slane %v525_v36, 1  ;;  %v530_v50 = vshll.u32 %v2920_v34, 16  ;;  %v344_v51 = vunpack.c.l.b16 %v218_v32  ;;  %v2941_v53 = vsel %vm365_vm0, %v384_v26, %v388_v27  ;;  %v191_v22 = vld [vmem:[%s2818_s17 + $0x20] sm:$0x1]  ;;  %v2972_v32 = vld [vmem:[%s2818_s17 + $0x18] sm:$0xff] }
  0x26   : > { %v2937_v48 = vsel %vm365_vm0, %v480_v31, %v484_v33  ;;  %v443_v56 = vrot.slane %v441_v21, 1  ;;  %v446_v57 = vshll.u32 %v2917_v28, 16  ;;  %v343_v58 = vunpack.c.l.b16 %v215_v39 }
  0x27   : > { %576 = vrot.lane.b32.xlu2 %v2937_v48, %s2780_s18  ;;  %v528_v60 = vor.u32 %v527_v49, %v523_v35  ;;  %v532_v61 = vrot.slane %v530_v50, 1  ;;  %v489_v62 = vshll.u32 %v2925_v37, 16  ;;  %v501_v4 = vshll.u32 %v2934_v47, 16 }
  0x28   : > { %v2954_v6 = vpack.c.b16 %v343_v58, %v343_v58  ;;  %v540_v7 = vor.u32 %v539_v44, %v535_v42  ;;  %v544_v8 = vrot.slane %v542_v46, 1  ;;  %v2958_v9 = vpack.c.b16 %v344_v51, %v344_v51  ;;  %v2982_v42 = vld [vmem:[%s2818_s17 + $0x24] sm:$0xff] }
  0x29   : > { %v444_v15 = vor.u32 %v443_v56, %v439_v10  ;;  %v448_v17 = vrot.slane %v446_v57, 1  ;;  %v487_v19 = vshrl.u32 %v2925_v37, 16  ;;  %v348_v21 = vunpack.c.l.b16 %v230_v3  ;;  %v2707_v57 = vld [vmem:[%s3810_s1 + $0x30] sm:$0xff]  ;;  %v206_v3 = vld [vmem:[%s2818_s17 + $0x5c] sm:$0x1] }
  0x2a   : > { %v2967_v25 = vsel %vm365_vm0, %v528_v60, %v532_v61  ;;  %v491_v26 = vrot.slane %v489_v62, 1  ;;  %v494_v27 = vshll.u32 %v2954_v6, 16  ;;  %v549_v31 = vshll.u32 %v2948_v1, 16  ;;  %2740 = vmatpush.bf16.msra.mxu1 %v2707_v57  ;;  %2741 = vmatpush.bf16.msra.mxu2 %v2707_v57 }
  0x2b   : > { %568 = vrot.lane.b32.xlu0 %v2929_v41, %s2780_s18  ;;  %v499_v10 = vshrl.u32 %v2934_v47, 16  ;;  %v503_v33 = vrot.slane %v501_v4, 1  ;;  %v2975_v35 = vpack.c.b16 %v348_v21, %v348_v21  ;;  %v2978_v36 = vsel %vm365_vm0, %v540_v7, %v544_v8  ;;  %v2706_v4 = vld [vmem:[%s3810_s1 + $0x28] sm:$0xff]  ;;  %1259 = vmatpush.bf16.msra.mxu0 %v2707_v57 }
  0x2c   : > { %560 = vrot.lane.b32.xlu1 %v2941_v53, %s2780_s18  ;;  %v506_v39 = vshll.u32 %v2958_v9, 16  ;;  %v336_v44 = vunpack.c.l.b16 %v194_v20  ;;  %v335_v46 = vunpack.c.l.b16 %v191_v22  ;;  %v2985_v49 = vsel %vm365_vm0, %v444_v15, %v448_v17  ;;  %2742 = vmatpush.bf16.msra.mxu3 %v2707_v57 }
  0x2d   : > { %v547_v50 = vshrl.u32 %v2948_v1, 16  ;;  %v551_v51 = vrot.slane %v549_v31, 1  ;;  %v554_v56 = vshll.u32 %v2975_v35, 16  ;;  %v492_v58 = vor.u32 %v491_v26, %v487_v19 }
  0x2e   : > { %v496_v60 = vrot.slane %v494_v27, 1  ;;  %v2994_v61 = vpack.c.b16 %v335_v46, %v335_v46  ;;  %v393_v62 = vshll.u32 %v2972_v32, 16  ;;  %v504_v7 = vor.u32 %v503_v33, %v499_v10  ;;  %v3014_v27 = vld [vmem:[%s2818_s17 + $0x54] sm:$0xff]  ;;  %2743 = vmatpush.bf16.msra.mxu1 %v2706_v4  ;;  %v2705_v10 = vld [vmem:[%s3810_s1 + $0x20] sm:$0xff]  ;;  %2744 = vmatpush.bf16.msra.mxu2 %v2706_v4 }
  0x2f   : > { %584 = vrot.lane.b32.xlu2 %v2967_v25, %s2780_s18  ;;  %v508_v8 = vrot.slane %v506_v39, 1  ;;  %v3005_v13 = vpack.c.b16 %v336_v44, %v336_v44  ;;  %v405_v15 = vshll.u32 %v2982_v42, 16  ;;  %v552_v17 = vor.u32 %v551_v51, %v547_v50  ;;  %1260 = vmatpush.bf16.msra.mxu0 %v2706_v4 }
  0x30   : > { %v556_v19 = vrot.slane %v554_v56, 1  ;;  %v391_v20 = vshrl.u32 %v2972_v32, 16  ;;  %v3010_v21 = vsel %vm365_vm0, %v492_v58, %v496_v60  ;;  %v395_v22 = vrot.slane %v393_v62, 1  ;;  %2745 = vmatpush.bf16.msra.mxu3 %v2706_v4  ;;  %v2704_v60 = vld [vmem:[%s3810_s1 + $0x18] sm:$0xff] }
  0x31   : > { %v398_v26 = vshll.u32 %v2994_v61, 16  ;;  %v340_v31 = vunpack.c.l.b16 %v206_v3  ;;  %v3020_v33 = vsel %vm365_vm0, %v504_v7, %v508_v8  ;;  %v403_v39 = vshrl.u32 %v2982_v42, 16 }
  0x32   : > { %v407_v44 = vrot.slane %v405_v15, 1  ;;  %v410_v46 = vshll.u32 %v3005_v13, 16  ;;  %v3027_v50 = vsel %vm365_vm0, %v552_v17, %v556_v19  ;;  %v396_v51 = vor.u32 %v395_v22, %v391_v20  ;;  %2746 = vmatpush.bf16.msra.mxu1 %v2705_v10  ;;  %2747 = vmatpush.bf16.msra.mxu2 %v2705_v10  ;;  %v2703_v20 = vld [vmem:[%s3810_s1 + $0x10] sm:$0xff] }
  0x33   : > { %586 = vrot.lane.b32.xlu0 %v2978_v36, %s2780_s18  ;;  %v400_v56 = vrot.slane %v398_v26, 1  ;;  %v3029_v57 = vpack.c.b16 %v340_v31, %v340_v31  ;;  %v453_v58 = vshll.u32 %v3014_v27, 16  ;;  %v594_v7 = vrot.slane %v2861_v38, 1  ;;  %1261 = vmatpush.bf16.msra.mxu0 %v2705_v10 }
  0x34   : > { %570 = vrot.lane.b32.xlu1 %v2985_v49, %s2780_s18  ;;  %v408_v62 = vor.u32 %v407_v44, %v403_v39  ;;  %v412_v3 = vrot.slane %v410_v46, 1  ;;  %v595_v8 = vrot.slane %v2883_v54, 1  ;;  %v451_v15 = vshrl.u32 %v3014_v27, 16  ;;  %2748 = vmatpush.bf16.msra.mxu3 %v2705_v10  ;;  %v2702_v10 = vld [vmem:[%s3810_s1 + $0x8] sm:$0xff] }
  0x35   : > { %v3042_v4 = vsel %vm365_vm0, %v396_v51, %v400_v56  ;;  %v455_v17 = vrot.slane %v453_v58, 1  ;;  %v458_v19 = vshll.u32 %v3029_v57, 16  ;;  %v597_v39 = vrot.slane %v2972_v32, 1  ;;  %v2701_v51 = vld [vmem:[%s3810_s1] sm:$0xff] }
  0x36   : > { %2749 = vmatpush.bf16.msra.mxu1 %v2704_v60  ;;  %v3050_v22 = vsel %vm365_vm0, %v408_v62, %v412_v3  ;;  %2750 = vmatpush.bf16.msra.mxu2 %v2704_v60  ;;  %v3055_v54 = vsel %vm590_vm1, %v594_v7, %v595_v8  ;;  %v598_v44 = vrot.slane %v2994_v61, 1  ;;  %v603_v61 = vrot.slane %v2825_v2, 1  ;;  %v2724_v3 = vld [vmem:[%s3810_s1 + $0xb8] sm:$0xff] }
  0x37   : > { %578 = vrot.lane.b32.xlu2 %v3010_v21, %s2780_s18  ;;  %1262 = vmatpush.bf16.msra.mxu0 %v2704_v60  ;;  %v456_v26 = vor.u32 %v455_v17, %v451_v15  ;;  %v460_v31 = vrot.slane %v458_v19, 1  ;;  %v604_v58 = vrot.slane %v2843_v18, 1  ;;  %v600_v62 = vrot.slane %v2982_v42, 1  ;;  %v2732_v8 = vld [vmem:[%s3810_s1 + $0xf8] sm:$0xff]  ;;  %v2723_v19 = vld [vmem:[%s3810_s1 + $0xb0] sm:$0xff] }
  0x38   : > { %2751 = vmatpush.bf16.msra.mxu3 %v2704_v60  ;;  %v3073_v56 = vsel %vm590_vm1, %v597_v39, %v598_v44  ;;  %v601_v18 = vrot.slane %v3005_v13, 1  ;;  %v2716_v15 = vld [vmem:[%s3810_s1 + $0x78] sm:$0xff]  ;;  %v606_v13 = vrot.slane %v2855_v30, 1  ;;  %v607_v17 = vrot.slane %v2872_v45, 1  ;;  %v2731_v45 = vld [vmem:[%s3810_s1 + $0xf0] sm:$0xff]  ;;  %v2730_v39 = vld [vmem:[%s3810_s1 + $0xe8] sm:$0xff] }
  0x39   : > { %v3067_v46 = vsel %vm365_vm0, %v456_v26, %v460_v31  ;;  %v3086_v60 = vsel %vm590_vm1, %v603_v61, %v604_v58  ;;  %v2736_v26 = vld [vmem:[%s3810_s1 + $0x118] sm:$0xff]  ;;  %v2715_v31 = vld [vmem:[%s3810_s1 + $0x70] sm:$0xff]  ;;  %v2714_v44 = vld [vmem:[%s3810_s1 + $0x68] sm:$0xff] }
  0x3a   : > { %2752 = vmatpush.bf16.msra.mxu1 %v2703_v20  ;;  %2753 = vmatpush.bf16.msra.mxu2 %v2703_v20  ;;  %v3100_v7 = vsel %vm590_vm1, %v600_v62, %v601_v18 }
  0x3b   : > { %580 = vrot.lane.b32.xlu0 %v3020_v33, %s2780_s18  ;;  %1263 = vmatpush.bf16.msra.mxu0 %v2703_v20 }
  0x3c   : > { %588 = vrot.lane.b32.xlu1 %v3027_v50, %s2780_s18  ;;  %2754 = vmatpush.bf16.msra.mxu3 %v2703_v20  ;;  %v3116_v20 = vsel %vm590_vm1, %v606_v13, %v607_v17 }
  0x3e   : > { %2755 = vmatpush.bf16.msra.mxu1 %v2702_v10  ;;  %2756 = vmatpush.bf16.msra.mxu2 %v2702_v10 }
  0x3f   : > { %562 = vrot.lane.b32.xlu2 %v3042_v4, %s2780_s18  ;;  %1264 = vmatpush.bf16.msra.mxu0 %v2702_v10 }
  0x40   : > { %2757 = vmatpush.bf16.msra.mxu3 %v2702_v10  ;;  %v2722_v10 = vld [vmem:[%s3810_s1 + $0xa8] sm:$0xff] }
  0x42   : > { %2758 = vmatpush.bf16.msra.mxu1 %v2701_v51  ;;  %2759 = vmatpush.bf16.msra.mxu2 %v2701_v51 }
  0x43   : > { %564 = vrot.lane.b32.xlu0 %v3050_v22, %s2780_s18  ;;  %1265 = vmatpush.bf16.msra.mxu0 %v2701_v51 }
  0x44   : > { %694 = vrot.lane.b32.xlu1 %v3055_v54, %s2780_s18  ;;  %2760 = vmatpush.bf16.msra.mxu3 %v2701_v51  ;;  %v2721_v51 = vld [vmem:[%s3810_s1 + $0xa0] sm:$0xff] }
  0x46   : > { %1436 = vmatpush.bf16.msrb.mxu2 %v2724_v3  ;;  %1347 = vmatpush.bf16.msrb.mxu1 %v2716_v15  ;;  %v2729_v3 = vld [vmem:[%s3810_s1 + $0xe0] sm:$0xff] }
  0x47   : > { %572 = vrot.lane.b32.xlu2 %v3067_v46, %s2780_s18  ;;  %1618 = vmatpush.bf16.msrb.mxu0 %v2736_v26  ;;  %v2713_v15 = vld [vmem:[%s3810_s1 + $0x60] sm:$0xff] }
  0x48   : > { %1525 = vmatpush.bf16.msrb.mxu3 %v2732_v8  ;;  %v2735_v8 = vld [vmem:[%s3810_s1 + $0x110] sm:$0xff] }
  0x4a   : > { %1437 = vmatpush.bf16.msrb.mxu2 %v2723_v19  ;;  %1348 = vmatpush.bf16.msrb.mxu1 %v2715_v31  ;;  %v2728_v31 = vld [vmem:[%s3810_s1 + $0xd8] sm:$0xff] }
  0x4b   : > { %696 = vrot.lane.b32.xlu0 %v3073_v56, %s2780_s18  ;;  %1619 = vmatpush.bf16.msrb.mxu0 %v2735_v8 }
  0x4c   : > { %646 = vrot.lane.b32.xlu1 %v2972_v32, %s2780_s18  ;;  %1526 = vmatpush.bf16.msrb.mxu3 %v2731_v45 }
  0x4e   : > { %1438 = vmatpush.bf16.msrb.mxu2 %v2722_v10  ;;  %1349 = vmatpush.bf16.msrb.mxu1 %v2714_v44  ;;  %v2712_v10 = vld [vmem:[%s3810_s1 + $0x58] sm:$0xff]  ;;  %v613_v44 = vrot.slane %v3029_v57, 1 }
  0x4f   : > { %644 = vrot.lane.b32.xlu2 %v2861_v38, %s2780_s18 }
  0x50   : > { %1527 = vmatpush.bf16.msrb.mxu3 %v2730_v39  ;;  %v612_v39 = vrot.slane %v3014_v27, 1 }
  0x52   : > { %1439 = vmatpush.bf16.msrb.mxu2 %v2721_v51  ;;  %1350 = vmatpush.bf16.msrb.mxu1 %v2713_v15  ;;  %v2719_v51 = vld [vmem:[%s3810_s1 + $0x90] sm:$0xff] }
  0x53   : > { %648 = vrot.lane.b32.xlu0 %v2982_v42, %s2780_s18 }
  0x54   : > { %700 = vrot.lane.b32.xlu1 %v3086_v60, %s2780_s18  ;;  %1528 = vmatpush.bf16.msrb.mxu3 %v2729_v3 }
  0x56   : > { %1351 = vmatpush.bf16.msrb.mxu1 %v2712_v10 }
  0x57   : > { %698 = vrot.lane.b32.xlu2 %v3100_v7, %s2780_s18 }
  0x58   : > { %1529 = vmatpush.bf16.msrb.mxu3 %v2728_v31 }
  0x5b   : > { %702 = vrot.lane.b32.xlu0 %v3116_v20, %s2780_s18 }
  0x5c   : > { %652 = vrot.lane.b32.xlu1 %v2855_v30, %s2780_s18 }
  0x5f   : > { %650 = vrot.lane.b32.xlu2 %v2825_v2, %s2780_s18 }
  0x63   : > { %654 = vrot.lane.b32.xlu0 %v2897_v63, %s2780_s18 }
  0x81   : > { %v577_v13 = vpop.permute.xlu2 %576 }
  0x89   : > { %v585_v3 = vpop.permute.xlu2 %584 }
  0x8a   : > { %v3221_v10 = vsel %vm753_vm2, %v2907_v14, %v585_v3  ;;  %v615_v3 = vrot.slane %v2821_v0, 1 }
  0x8d   : > { %v575_v61 = vpop.permute.xlu0 %574 }
  0x8e   : > { %v567_v58 = vpop.permute.xlu1 %566  ;;  %v3147_v62 = vsel %vm753_vm2, %v2821_v0, %v575_v61  ;;  %v3186_v61 = vsel %vm590_vm1, %v612_v39, %v613_v44  ;;  %v2710_v44 = vld [vmem:[%s3810_s1 + $0x48] sm:$0xff] }
  0x8f   : > { %v3151_v18 = vsel %vm753_vm2, %v2825_v2, %v567_v58  ;;  %1306 = vmatmul.bf16.vlgmr.msra.gmra.mxu2 %v3147_v62  ;;  %v2720_v2 = vld [vmem:[%s3810_s1 + $0x98] sm:$0xff]  ;;  %706 = vrot.lane.b32.xlu1 %v3186_v61, %s2780_s18  ;;  %v3192_v58 = vsel %vm753_vm2, %v2880_v52, %v577_v13  ;;  %v2734_v13 = vld [vmem:[%s3810_s1 + $0x108] sm:$0xff] }
  0x90   : > { %1286 = vmatmul.bf16.vlgmr.msra.gmra.mxu1 %v3151_v18  ;;  %1440 = vmatpush.bf16.msrb.mxu2 %v2720_v2  ;;  %v2727_v2 = vld [vmem:[%s3810_s1 + $0xd0] sm:$0xff] }
  0x91   : > { %1530 = vmatpush.bf16.msrb.mxu3 %v2727_v2  ;;  %1620 = vmatpush.bf16.msrb.mxu0 %v2734_v13  ;;  %v579_v39 = vpop.permute.xlu2 %578 }
  0x94   : > { %1441 = vmatpush.bf16.msrb.mxu2 %v2719_v51  ;;  %v2726_v51 = vld [vmem:[%s3810_s1 + $0xc8] sm:$0xff] }
  0x95   : > { %v583_v17 = vpop.permute.xlu0 %582  ;;  %1531 = vmatpush.bf16.msrb.mxu3 %v2726_v51 }
  0x96   : > { %v559_v19 = vpop.permute.xlu1 %558  ;;  %v3169_v45 = vsel %vm753_vm2, %v2829_v5, %v583_v17  ;;  %v2711_v17 = vld [vmem:[%s3810_s1 + $0x50] sm:$0xff] }
  0x97   : > { %v755_v26 = vsel %vm753_vm2, %v2841_v16, %v559_v19  ;;  %1326 = vmatmul.bf16.vlgmr.msra.gmra.mxu3 %v3169_v45  ;;  %v610_v19 = vrot.slane %v2917_v28, 1  ;;  %1352 = vmatpush.bf16.msrb.mxu1 %v2711_v17 }
  0x98   : > { %1266 = vmatmul.bf16.vlgmr.msra.gmra.mxu0 %v755_v26  ;;  %v2718_v26 = vld [vmem:[%s3810_s1 + $0x88] sm:$0xff]  ;;  %658 = vrot.lane.b32.xlu1 %v2821_v0, %s2780_s18  ;;  %v3251_v0 = vsel %vm753_vm2, %v2925_v37, %v579_v39 }
  0x99   : > { %1442 = vmatpush.bf16.msrb.mxu2 %v2718_v26  ;;  %v2733_v26 = vld [vmem:[%s3810_s1 + $0x100] sm:$0xff] }
  0x9a   : > { %1621 = vmatpush.bf16.msrb.mxu0 %v2733_v26 }
  0x9b   : > { %1353 = vmatpush.bf16.msrb.mxu1 %v2710_v44 }
  0x9d   : > { %v569_v8 = vpop.permute.xlu0 %568 }
  0x9e   : > { %v3196_v57 = vsel %vm753_vm2, %v2855_v30, %v569_v8  ;;  %v561_v15 = vpop.permute.xlu1 %560  ;;  %v609_v30 = vrot.slane %v2897_v63, 1  ;;  %v616_v8 = vrot.slane %v2836_v12, 1 }
  0x9f   : > { %1311 = vmatmul.bf16.gmra.mxu2 %v3192_v58  ;;  %v758_v28 = vsel %vm753_vm2, %v2861_v38, %v561_v15  ;;  %v2717_v38 = vld [vmem:[%s3810_s1 + $0x80] sm:$0xff] }
  0xa0   : > { %1291 = vmatmul.bf16.gmra.mxu1 %v3196_v57  ;;  %v3215_v31 = vsel %vm590_vm1, %v609_v30, %v610_v19  ;;  %v2709_v15 = vld [vmem:[%s3810_s1 + $0x40] sm:$0xff]  ;;  %v3243_v13 = vsel %vm590_vm1, %v615_v3, %v616_v8  ;;  %1443 = vmatpush.bf16.msrb.mxu2 %v2717_v38  ;;  %v563_v30 = vpop.permute.xlu2 %562 }
  0xa1   : > { %704 = vrot.lane.b32.xlu2 %v3215_v31, %s2780_s18  ;;  %708 = vrot.lane.b32.xlu0 %v3243_v13, %s2780_s18  ;;  %v2725_v19 = vld [vmem:[%s3810_s1 + $0xc0] sm:$0xff] }
  0xa2   : > { %1354 = vmatpush.bf16.msrb.mxu1 %v2709_v15  ;;  %1532 = vmatpush.bf16.msrb.mxu3 %v2725_v19 }
  0xa5   : > { %v587_v17 = vpop.permute.xlu0 %586 }
  0xa6   : > { %v571_v2 = vpop.permute.xlu1 %570 }
  0xa7   : > { %1331 = vmatmul.bf16.gmra.mxu3 %v3221_v10  ;;  %v3255_v12 = vsel %vm753_vm2, %v2897_v63, %v571_v2  ;;  %v3269_v63 = vsel %vm753_vm2, %v2891_v59, %v587_v17  ;;  %v591_v2 = vrot.slane %v2841_v16, 1  ;;  %v592_v17 = vrot.slane %v2852_v29, 1 }
  0xa8   : > { %1271 = vmatmul.bf16.gmra.mxu0 %v758_v28  ;;  %v761_v28 = vsel %vm753_vm2, %v2972_v32, %v563_v30  ;;  %v573_v44 = vpop.permute.xlu2 %572  ;;  %v622_v30 = vrot.slane %v2954_v6, 1  ;;  %v619_v6 = vrot.slane %v2904_v11, 1 }
  0xa9   : > { %656 = vrot.lane.b32.xlu2 %v3014_v27, %s2780_s18  ;;  %660 = vrot.lane.b32.xlu0 %v2880_v52, %s2780_s18  ;;  %v3280_v3 = vsel %vm753_vm2, %v3014_v27, %v573_v44  ;;  %v621_v27 = vrot.slane %v2925_v37, 1 }
  0xab   : > { %v3297_v44 = vsel %vm590_vm1, %v621_v27, %v622_v30  ;;  %v631_v27 = vrot.slane %v2920_v34, 1 }
  0xac   : > { %712 = vrot.lane.b32.xlu1 %v3297_v44, %s2780_s18 }
  0xad   : > { %v581_v39 = vpop.permute.xlu0 %580 }
  0xae   : > { %v3276_v51 = vsel %vm753_vm2, %v2934_v47, %v581_v39  ;;  %v589_v8 = vpop.permute.xlu1 %588  ;;  %v593_v39 = vsel %vm590_vm1, %v591_v2, %v592_v17 }
  0xaf   : > { %1316 = vmatmul.bf16.gmra.mxu2 %v3251_v0  ;;  %v3286_v32 = vsel %vm753_vm2, %v2948_v1, %v589_v8 }
  0xb0   : > { %1296 = vmatmul.bf16.gmra.mxu1 %v3255_v12  ;;  %v645_v26 = vpop.permute.xlu2 %644 }
  0xb1   : > { %v804_v29 = vsel %vm753_vm2, %v593_v39, %v645_v26  ;;  %v628_v26 = vrot.slane %v2847_v23, 1 }
  0xb4   : > { %664 = vrot.lane.b32.xlu1 %v2934_v47, %s2780_s18 }
  0xb5   : > { %v565_v38 = vpop.permute.xlu0 %564 }
  0xb6   : > { %v764_v15 = vsel %vm753_vm2, %v2982_v42, %v565_v38  ;;  %v695_v19 = vpop.permute.xlu1 %694  ;;  %v618_v42 = vrot.slane %v2880_v52, 1  ;;  %v625_v38 = vrot.slane %v2958_v9, 1 }
  0xb7   : > { %1336 = vmatmul.bf16.gmra.mxu3 %v3269_v63  ;;  %v868_v16 = vsel %vm753_vm2, %v2941_v53, %v695_v19  ;;  %v624_v53 = vrot.slane %v2934_v47, 1 }
  0xb8   : > { %1276 = vmatmul.bf16.gmra.mxu0 %v761_v28  ;;  %v3307_v8 = vsel %vm590_vm1, %v618_v42, %v619_v6  ;;  %v699_v47 = vpop.permute.xlu2 %698 }
  0xb9   : > { %710 = vrot.lane.b32.xlu2 %v3307_v8, %s2780_s18  ;;  %v3318_v11 = vsel %vm590_vm1, %v624_v53, %v625_v38  ;;  %v233_v53 = vld [vmem:[%s2818_s17 + $0xc8] sm:$0x1]  ;;  %v3394_v38 = vld [vmem:[%s2818_s17 + $0xc0] sm:$0xff] }
  0xba   : > { %714 = vrot.lane.b32.xlu0 %v3318_v11, %s2780_s18 }
  0xbd   : > { %v697_v52 = vpop.permute.xlu0 %696 }
  0xbe   : > { %v647_v2 = vpop.permute.xlu1 %646 }
  0xbf   : > { %1321 = vmatmul.bf16.gmra.mxu2 %v3276_v51  ;;  %v808_v17 = vsel %vm753_vm2, %v3055_v54, %v647_v2 }
  0xc0   : > { %1301 = vmatmul.bf16.gmra.mxu1 %v3280_v3  ;;  %v651_v30 = vpop.permute.xlu2 %650 }
  0xc1   : > { %662 = vrot.lane.b32.xlu2 %v2925_v37, %s2780_s18  ;;  %v876_v37 = vsel %vm753_vm2, %v3050_v22, %v699_v47 }
  0xc2   : > { %666 = vrot.lane.b32.xlu0 %v2829_v5, %s2780_s18 }
  0xc5   : > { %v649_v9 = vpop.permute.xlu0 %648 }
  0xc6   : > { %v701_v54 = vpop.permute.xlu1 %700 }
  0xc7   : > { %1341 = vmatmul.bf16.gmra.mxu3 %v3286_v32  ;;  %v880_v22 = vsel %vm753_vm2, %v2870_v43, %v701_v54 }
  0xc8   : > { %1281 = vmatmul.bf16.gmra.mxu0 %v764_v15 }
  0xcd   : > { %v703_v43 = vpop.permute.xlu0 %702 }
  0xce   : > { %v653_v23 = vpop.permute.xlu1 %652 }
  0xcf   : > { %1444 = vmatmul.bf16.vlgmr.msrb.gmra.mxu2 %v868_v16  ;;  %v884_v16 = vsel %vm753_vm2, %v2929_v41, %v703_v43 }
  0xd0   : > { %1355 = vmatmul.bf16.vlgmr.msrb.gmra.mxu1 %v804_v29 }
  0xd7   : > { %1533 = vmatmul.bf16.vlgmr.msrb.gmra.mxu3 %v761_v28  ;;  %v872_v28 = vsel %vm753_vm2, %v3042_v4, %v697_v52  ;;  %v812_v4 = vsel %vm753_vm2, %v3073_v56, %v649_v9  ;;  %v677_v52 = vunpack.c.l.b16 %v233_v53  ;;  %v682_v9 = vshll.u32 %v3394_v38, 16 }
  0xd8   : > { %2665 = vmatmul.msk.bf16.vlgmr.msrb.gmra.mxu0 %vm753_vm2, %v3073_v56  ;;  %v816_v56 = vsel %vm753_vm2, %v3100_v7, %v651_v30 }
  0xd9   : > { %v3404_v47 = vpack.c.b16 %v677_v52, %v677_v52 }
  0xdf   : > { %1449 = vmatmul.bf16.gmra.mxu2 %v872_v28 }
  0xe0   : > { %1360 = vmatmul.bf16.gmra.mxu1 %v808_v17 }
  0xe7   : > { %1538 = vmatmul.bf16.gmra.mxu3 %v764_v15  ;;  %v630_v15 = vrot.slane %v2907_v14, 1 }
  0xe8   : > { %2666 = vmatmul.msk.bf16.gmra.mxu0 %vm753_vm2, %v3100_v7  ;;  %v633_v7 = vrot.slane %v2891_v59, 1 }
  0xe9   : > { %v3342_v19 = vsel %vm590_vm1, %v630_v15, %v631_v27 }
  0xea   : > { %718 = vrot.lane.b32.xlu1 %v3342_v19, %s2780_s18 }
  0xef   : > { %1454 = vmatmul.bf16.gmra.mxu2 %v876_v37  ;;  %v680_v37 = vshrl.u32 %v3394_v38, 16 }
  0xf0   : > { %1365 = vmatmul.bf16.gmra.mxu1 %v812_v4  ;;  %v684_v4 = vrot.slane %v682_v9, 1 }
  0xf2   : > { %670 = vrot.lane.b32.xlu1 %v2891_v59, %s2780_s18  ;;  %v820_v59 = vsel %vm753_vm2, %v3086_v60, %v653_v23  ;;  %v685_v54 = vor.u32 %v684_v4, %v680_v37  ;;  %v3433_v23 = vld [vmem:[%s2818_s17 + $0xcc] sm:$0xff]  ;;  %v637_v4 = vrot.slane %v2975_v35, 1 }
  0xf3   : > { %v737_v52 = vshll.u32 %v3433_v23, 16 }
  0xf7   : > { %1543 = vmatmul.bf16.gmra.mxu3 %v3151_v18  ;;  %v627_v18 = vrot.slane %v2829_v5, 1  ;;  %v634_v5 = vrot.slane %v2915_v24, 1 }
  0xf8   : > { %2667 = vmatmul.msk.bf16.gmra.mxu0 %vm753_vm2, %v3086_v60 }
  0xf9   : > { %v3353_v34 = vsel %vm590_vm1, %v627_v18, %v628_v26  ;;  %v3365_v39 = vsel %vm590_vm1, %v633_v7, %v634_v5  ;;  %v236_v5 = vld [vmem:[%s2818_s17 + $0xd4] sm:$0x1] }
  0xfa   : > { %716 = vrot.lane.b32.xlu2 %v3353_v34, %s2780_s18  ;;  %720 = vrot.lane.b32.xlu0 %v3365_v39, %s2780_s18 }
  0xfb   : > { %672 = vrot.lane.b32.xlu1 %v2948_v1, %s2780_s18  ;;  %v705_v42 = vpop.permute.xlu2 %704 }
  0xfc   : > { %v888_v2 = vsel %vm753_vm2, %v2985_v49, %v705_v42  ;;  %v687_v49 = vshll.u32 %v3404_v47, 16 }
  0xfe   : > { %v689_v27 = vrot.slane %v687_v49, 1 }
  0xff   : > { %1459 = vmatmul.bf16.gmra.mxu2 %v880_v22 }
 0x100   : > { %1370 = vmatmul.bf16.gmra.mxu1 %v816_v56  ;;  %v3416_v30 = vsel %vm365_vm0, %v685_v54, %v689_v27 }
 0x101   : > { %v707_v26 = vpop.permute.xlu1 %706 }
 0x102   : > { %668 = vrot.lane.b32.xlu2 %v2907_v14, %s2780_s18  ;;  %v655_v14 = vpop.permute.xlu0 %654  ;;  %746 = vrot.lane.b32.xlu0 %v3416_v30, %s2780_s18 }
 0x103   : > { %674 = vrot.lane.b32.xlu1 %v3394_v38, %s2780_s18  ;;  %v657_v18 = vpop.permute.xlu2 %656 }
 0x107   : > { %1548 = vmatmul.bf16.gmra.mxu3 %v3196_v57 }
 0x108   : > { %2668 = vmatmul.msk.bf16.gmra.mxu0 %vm753_vm2, %v3116_v20 }
 0x10a   : > { %v659_v35 = vpop.permute.xlu1 %658 }
 0x10d   : > { %v3373_v57 = vpop.f32.mrf.mxu1 }
 0x10f   : > { %1464 = vmatmul.bf16.gmra.mxu2 %v884_v16  ;;  %v732_v16 = vunpack.c.l.b16 %v236_v5 }
 0x110   : > { %1375 = vmatmul.bf16.gmra.mxu1 %v820_v59  ;;  %v892_v59 = vsel %vm753_vm2, %v3067_v46, %v707_v26  ;;  %v636_v46 = vrot.slane %v2948_v1, 1 }
 0x111   : > { %v3443_v53 = vpack.c.b16 %v732_v16, %v732_v16 }
 0x112   : > { %v3379_v24 = vpop.f32.mrf.mxu2  ;;  %v3455_v27 = vsel %vm590_vm1, %v636_v46, %v637_v4 }
 0x113   : > { %v742_v9 = vshll.u32 %v3443_v53, 16  ;;  %722 = vrot.lane.b32.xlu2 %v3455_v27, %s2780_s18  ;;  %v709_v1 = vpop.permute.xlu0 %708 }
 0x115   : > { %v3381_v41 = vpop.f32.mrf.mxu0  ;;  %v3383_v29 = vpop.f32.mrf.mxu1 }
 0x117   : > { %1553 = vmatmul.bf16.gmra.mxu3 %v3255_v12  ;;  %v824_v12 = vsel %vm753_vm2, %v3116_v20, %v655_v14 }
 0x118   : > { %2669 = vmatmul.msk.bf16.gmra.mxu0 %vm753_vm2, %v3215_v31 }
 0x11a   : > { %v3388_v6 = vpop.f32.mrf.mxu2  ;;  %v3390_v60 = vpop.f32.mrf.mxu3 }
 0x11b   : > { %3813 = vst [vmem:[#allocation2_spill] sm:$0xff] %v3390_v60 }
 0x11d   : > { %v3398_v28 = vpop.f32.mrf.mxu0  ;;  %v3400_v17 = vpop.f32.mrf.mxu1 }
 0x11f   : > { %1469 = vmatmul.bf16.gmra.mxu2 %v888_v2  ;;  %v735_v2 = vshrl.u32 %v3433_v23, 16 }
 0x120   : > { %1380 = vmatmul.bf16.gmra.mxu1 %v824_v12  ;;  %v739_v12 = vrot.slane %v737_v52, 1 }
 0x122   : > { %v3411_v15 = vpop.f32.mrf.mxu2  ;;  %v3413_v20 = vpop.f32.mrf.mxu3  ;;  %v740_v37 = vor.u32 %v739_v12, %v735_v2  ;;  %v832_v12 = vsel %vm753_vm2, %v3186_v61, %v659_v35 }
 0x123   : > { %3814 = vst [vmem:[#allocation3_spill] sm:$0xff] %v3413_v20 }
 0x125   : > { %v3418_v22 = vpop.f32.mrf.mxu0  ;;  %v3420_v56 = vpop.f32.mrf.mxu1 }
 0x127   : > { %1558 = vmatmul.bf16.gmra.mxu3 %v3280_v3  ;;  %v828_v3 = vsel %vm753_vm2, %v3215_v31, %v657_v18  ;;  %v744_v31 = vrot.slane %v742_v9, 1  ;;  %v692_v9 = vrot.slane %v3404_v47, 1  ;;  %v711_v47 = vpop.permute.xlu2 %710 }
 0x128   : > { %2670 = vmatmul.msk.bf16.gmra.mxu0 %vm753_vm2, %v3186_v61  ;;  %v661_v61 = vpop.permute.xlu0 %660  ;;  %v900_v35 = vsel %vm753_vm2, %v2937_v48, %v711_v47 }
 0x129   : > { %v745_v18 = vsel %vm365_vm0, %v740_v37, %v744_v31 }
 0x12a   : > { %v3427_v43 = vpop.f32.mrf.mxu2  ;;  %v3429_v7 = vpop.f32.mrf.mxu3  ;;  %748 = vrot.lane.b32.xlu0 %v745_v18, %s2780_s18 }
 0x12b   : > { %3815 = vst [vmem:[#allocation4_spill] sm:$0xff] %v3427_v43 }
 0x12c   : > { %3816 = vst [vmem:[#allocation5_spill] sm:$0xff] %v3429_v7 }
 0x12d   : > { %v3437_v14 = vpop.f32.mrf.mxu0  ;;  %v3439_v42 = vpop.f32.mrf.mxu1 }
 0x12f   : > { %1474 = vmatmul.bf16.gmra.mxu2 %v892_v59  ;;  %v663_v47 = vpop.permute.xlu2 %662 }
 0x130   : > { %1385 = vmatmul.bf16.gmra.mxu1 %v828_v3  ;;  %v896_v3 = vsel %vm753_vm2, %v2865_v40, %v709_v1 }
 0x132   : > { %v3450_v49 = vpop.f32.mrf.mxu2  ;;  %v3452_v54 = vpop.f32.mrf.mxu3 }
 0x133   : > { %3817 = vst [vmem:[#allocation6_spill] sm:$0xff] %v3450_v49 }
 0x134   : > { %3818 = vst [vmem:[#allocation7_spill] sm:$0xff] %v3452_v54 }
 0x135   : > { %v3460_v26 = vpop.f32.mrf.mxu0  ;;  %v3462_v5 = vpop.f32.mrf.mxu1 }
 0x137   : > { %1563 = vmatmul.bf16.gmra.mxu3 %v3147_v62  ;;  %v691_v62 = vrot.slane %v3394_v38, 1 }
 0x138   : > { %2671 = vmatmul.msk.bf16.gmra.mxu0 %vm753_vm2, %v3243_v13 }
 0x139   : > { %v3487_v4 = vsel %vm590_vm1, %v691_v62, %v692_v9  ;;  %v836_v62 = vsel %vm753_vm2, %v3243_v13, %v661_v61 }
 0x13a   : > { %v3468_v16 = vpop.f32.mrf.mxu2  ;;  %v3470_v59 = vpop.f32.mrf.mxu3  ;;  %724 = vrot.lane.b32.xlu2 %v3487_v4, %s2780_s18 }
 0x13b   : > { %3819 = vst [vmem:[#allocation8_spill] sm:$0xff] %v3468_v16 }
 0x13c   : > { %3820 = vst [vmem:[#allocation9_spill] sm:$0xff] %v3470_v59 }
 0x13d   : > { %v3474_v52 = vpop.f32.mrf.mxu0  ;;  %v3476_v2 = vpop.f32.mrf.mxu1 }
 0x13f   : > { %1479 = vmatmul.bf16.gmra.mxu2 %v896_v3 }
 0x140   : > { %1390 = vmatmul.bf16.gmra.mxu1 %v832_v12 }
 0x142   : > { %v3482_v37 = vpop.f32.mrf.mxu2  ;;  %v3484_v46 = vpop.f32.mrf.mxu3 }
 0x143   : > { %3821 = vst [vmem:[#allocation10_spill] sm:$0xff] %v3482_v37 }
 0x144   : > { %3822 = vst [vmem:[#allocation11_spill] sm:$0xff] %v3484_v46 }
 0x145   : > { %v3491_v40 = vpop.f32.mrf.mxu0  ;;  %v3493_v31 = vpop.f32.mrf.mxu1 }
 0x147   : > { %1568 = vmatmul.bf16.gmra.mxu3 %v3192_v58 }
 0x148   : > { %2672 = vmatmul.msk.bf16.gmra.mxu0 %vm753_vm2, %v3307_v8 }
 0x14a   : > { %v3498_v18 = vpop.f32.mrf.mxu2  ;;  %v3500_v1 = vpop.f32.mrf.mxu3 }
 0x14b   : > { %3823 = vst [vmem:[#allocation12_spill] sm:$0xff] %v3498_v18 }
 0x14c   : > { %3824 = vst [vmem:[#allocation13_spill] sm:$0xff] %v3500_v1  ;;  %v713_v1 = vpop.permute.xlu1 %712 }
 0x14d   : > { %v3504_v3 = vpop.f32.mrf.mxu0  ;;  %v1356_v12 = vpop.f32.mrf.mxu1  ;;  %v904_v13 = vsel %vm753_vm2, %v3010_v21, %v713_v1 }
 0x14e   : > { %v1357_v48 = vadd.f32 %v1356_v12, %v3381_v41 }
 0x14f   : > { %1484 = vmatmul.bf16.gmra.mxu2 %v900_v35 }
 0x150   : > { %1395 = vmatmul.bf16.gmra.mxu1 %v836_v62 }
 0x152   : > { %v3508_v58 = vpop.f32.mrf.mxu3  ;;  %v1445_v9 = vpop.f32.mrf.mxu2 }
 0x153   : > { %3825 = vst [vmem:[#allocation14_spill] sm:$0xff] %v3508_v58  ;;  %v1446_v20 = vadd.f32 %v1445_v9, %v1357_v48  ;;  %v840_v58 = vsel %vm753_vm2, %v3307_v8, %v663_v47 }
 0x155   : > { %v1358_v46 = vpop.f32.mrf.mxu1  ;;  %v1623_v59 = vpop.f32.mrf.mxu0 }
 0x157   : > { %1573 = vmatmul.bf16.gmra.mxu3 %v3251_v0  ;;  %v1359_v0 = vadd.f32 %v1358_v46, %v3398_v28  ;;  %v665_v46 = vpop.permute.xlu1 %664 }
 0x158   : > { %2673 = vmatmul.msk.bf16.gmra.mxu0 %vm753_vm2, %v3297_v44 }
 0x15a   : > { %v1447_v54 = vpop.f32.mrf.mxu2  ;;  %v1534_v7 = vpop.f32.mrf.mxu3 }
 0x15b   : > { %v1535_v61 = vadd.f32 %v1534_v7, %v1446_v20  ;;  %v1448_v60 = vadd.f32 %v1447_v54, %v1359_v0 }
 0x15d   : > { %v1361_v35 = vpop.f32.mrf.mxu1  ;;  %v1625_v62 = vpop.f32.mrf.mxu0  ;;  %v1624_v41 = vadd.f32 %v1623_v59, %v1535_v61 }
 0x15e   : > { %v1362_v21 = vadd.f32 %v1361_v35, %v3418_v22 }
 0x15f   : > { %1489 = vmatmul.bf16.gmra.mxu2 %v904_v13  ;;  %v1812_v16 = vpack.c.bf16 %v1624_v41, %v1624_v41  ;;  %v1740_v20 = vmul.f32 %v1624_v41, %v1624_v41 }
 0x160   : > { %1400 = vmatmul.bf16.gmra.mxu1 %v840_v58 }
 0x161   : > { %v1876_v8 = vunpack.c.l.b16 %v1812_v16  ;;  %v844_v16 = vsel %vm753_vm2, %v3297_v44, %v665_v46 }
 0x162   : > { %v1450_v12 = vpop.f32.mrf.mxu2  ;;  %v1536_v18 = vpop.f32.mrf.mxu3 }
 0x163   : > { %v1537_v37 = vadd.f32 %v1536_v18, %v1448_v60  ;;  %v1451_v28 = vadd.f32 %v1450_v12, %v1362_v21  ;;  %v715_v60 = vpop.permute.xlu0 %714 }
 0x164   : > { %v908_v47 = vsel %vm753_vm2, %v3020_v33, %v715_v60 }
 0x165   : > { %v1626_v9 = vadd.f32 %v1625_v62, %v1537_v37  ;;  %v1363_v48 = vpop.f32.mrf.mxu1  ;;  %v1628_v49 = vpop.f32.mrf.mxu0 }
 0x166   : > { %v1364_v62 = vadd.f32 %v1363_v48, %v3437_v14 }
 0x167   : > { %v1703_v7 = vadd.f32 %v1626_v9, %v1624_v41  ;;  %v1741_v1 = vmul.f32 %v1626_v9, %v1626_v9  ;;  %v1813_v43 = vpack.c.bf16 %v1626_v9, %v1626_v9  ;;  %1578 = vmatmul.bf16.gmra.mxu3 %v3276_v51 }
 0x168   : > { %2674 = vmatmul.msk.bf16.gmra.mxu0 %vm753_vm2, %v3318_v11 }
 0x169   : > { %v1772_v54 = vadd.f32 %v1741_v1, %v1740_v20  ;;  %v1877_v59 = vunpack.c.l.b16 %v1813_v43 }
 0x16a   : > { %v1452_v37 = vpop.f32.mrf.mxu2  ;;  %v1539_v18 = vpop.f32.mrf.mxu3 }
 0x16b   : > { %v1908_v58 = vpack.c.b16 %v1877_v59, %v1876_v8  ;;  %v1540_v22 = vadd.f32 %v1539_v18, %v1451_v28  ;;  %v1453_v21 = vadd.f32 %v1452_v37, %v1364_v62 }
 0x16d   : > { %v1932_v13 = vshrl.u32 %v1908_v58, 16  ;;  %v1629_v51 = vadd.f32 %v1628_v49, %v1540_v22  ;;  %v1366_v61 = vpop.f32.mrf.mxu1  ;;  %v1630_v35 = vpop.f32.mrf.mxu0  ;;  %v1935_v41 = vshll.u32 %v1908_v58, 16 }
 0x16e   : > { %v1367_v22 = vadd.f32 %v1366_v61, %v3460_v26 }
 0x16f   : > { %v1934_v0 = vrot.slane %v1932_v13, 7  ;;  %v1704_v12 = vadd.f32 %v1703_v7, %v1629_v51  ;;  %v1742_v9 = vmul.f32 %v1629_v51, %v1629_v51  ;;  %1494 = vmatmul.bf16.gmra.mxu2 %v908_v47 }
 0x170   : > { %1405 = vmatmul.bf16.gmra.mxu1 %v844_v16 }
 0x171   : > { %v1937_v33 = vor.u32 %v1935_v41, %v1934_v0  ;;  %v2098_v49 = vsel %vm3528_vm5, %v1934_v0, 0  ;;  %v1773_v44 = vadd.f32 %v1772_v54, %v1742_v9  ;;  %v1814_v54 = vpack.c.bf16 %v1629_v51, %v1629_v51  ;;  %v667_v41 = vpop.permute.xlu0 %666  ;;  %v717_v9 = vpop.permute.xlu2 %716 }
 0x172   : > { %v2153_v20 = vunpack.c.l.b16 %v2098_v49  ;;  %v1455_v1 = vpop.f32.mrf.mxu2  ;;  %v1541_v8 = vpop.f32.mrf.mxu3  ;;  %v912_v61 = vsel %vm753_vm2, %v2886_v55, %v717_v9 }
 0x173   : > { %v2081_v14 = vsel %vm3528_vm5, 0, %v1937_v33  ;;  %v1542_v48 = vadd.f32 %v1541_v8, %v1453_v21  ;;  %v1878_v62 = vunpack.c.l.b16 %v1814_v54  ;;  %v1456_v51 = vadd.f32 %v1455_v1, %v1367_v22 }
 0x174   : > { %v2151_v7 = vunpack.c.l.b16 %v2081_v14  ;;  %v2152_v28 = vunpack.c.h.b16 %v2081_v14  ;;  %v2204_v59 = vpack.c.b16 %v2153_v20, %v2153_v20  ;;  %v848_v14 = vsel %vm753_vm2, %v3318_v11, %v667_v41 }
 0x175   : > { %v1631_v60 = vadd.f32 %v1630_v35, %v1542_v48  ;;  %v1368_v46 = vpop.f32.mrf.mxu1  ;;  %v1633_v37 = vpop.f32.mrf.mxu0 }
 0x176   : > { %v2202_v18 = vpack.c.b16 %v2151_v7, %v2151_v7  ;;  %v2203_v58 = vpack.c.b16 %v2152_v28, %v2152_v28  ;;  %2306 = vst [vmem:[%s3540_s25 + $0x14] sm:$0x1] %v2204_v59  ;;  %v1369_v1 = vadd.f32 %v1368_v46, %v3474_v52 }
 0x177   : > { %v1705_v47 = vadd.f32 %v1704_v12, %v1631_v60  ;;  %v1743_v13 = vmul.f32 %v1631_v60, %v1631_v60  ;;  %v1815_v16 = vpack.c.bf16 %v1631_v60, %v1631_v60  ;;  %1583 = vmatmul.bf16.gmra.mxu3 %v3169_v45 }
 0x178   : > { %2304 = vst [vmem:[%s3540_s25 + $0xc] sm:$0xf] %v2202_v18  ;;  %2675 = vmatmul.msk.bf16.gmra.mxu0 %vm753_vm2, %v3353_v34 }
 0x179   : > { %2305 = vst [vmem:[%s3540_s25 + $0x10] sm:$0xf] %v2203_v58  ;;  %v1774_v35 = vadd.f32 %v1773_v44, %v1743_v13  ;;  %v1879_v0 = vunpack.c.l.b16 %v1815_v16 }
 0x17a   : > { %v1457_v33 = vpop.f32.mrf.mxu2  ;;  %v1544_v49 = vpop.f32.mrf.mxu3 }
 0x17b   : > { %v1909_v21 = vpack.c.b16 %v1879_v0, %v1878_v62  ;;  %v1545_v26 = vadd.f32 %v1544_v49, %v1456_v51  ;;  %v1458_v55 = vadd.f32 %v1457_v33, %v1369_v1 }
 0x17d   : > { %v1939_v12 = vshrl.u32 %v1909_v21, 16  ;;  %v1634_v45 = vadd.f32 %v1633_v37, %v1545_v26  ;;  %v1371_v20 = vpop.f32.mrf.mxu1  ;;  %v1635_v8 = vpop.f32.mrf.mxu0  ;;  %v1942_v48 = vshll.u32 %v1909_v21, 16 }
 0x17f   : > { %v1941_v44 = vrot.slane %v1939_v12, 7  ;;  %v1706_v7 = vadd.f32 %v1705_v47, %v1634_v45  ;;  %v1744_v28 = vmul.f32 %v1634_v45, %v1634_v45  ;;  %1499 = vmatmul.bf16.gmra.mxu2 %v912_v61  ;;  %v1816_v13 = vpack.c.bf16 %v1634_v45, %v1634_v45  ;;  %v669_v45 = vpop.permute.xlu2 %668 }
 0x180   : > { %1410 = vmatmul.bf16.gmra.mxu1 %v848_v14 }
 0x181   : > { %v1944_v59 = vor.u32 %v1942_v48, %v1941_v44  ;;  %v2099_v54 = vsel %vm3528_vm5, %v1941_v44, 0  ;;  %v1775_v60 = vadd.f32 %v1774_v35, %v1744_v28  ;;  %v1372_v35 = vadd.f32 %v1371_v20, %v3491_v40 }
 0x182   : > { %v2156_v37 = vunpack.c.l.b16 %v2099_v54  ;;  %v1460_v18 = vpop.f32.mrf.mxu2  ;;  %v1546_v58 = vpop.f32.mrf.mxu3  ;;  %v1880_v21 = vunpack.c.l.b16 %v1816_v13 }
 0x183   : > { %v2082_v11 = vsel %vm3528_vm5, 0, %v1944_v59  ;;  %v1547_v52 = vadd.f32 %v1546_v58, %v1458_v55  ;;  %v1461_v26 = vadd.f32 %v1460_v18, %v1372_v35  ;;  %v852_v59 = vsel %vm753_vm2, %v3353_v34, %v669_v45 }
 0x184   : > { %v2154_v46 = vunpack.c.l.b16 %v2082_v11  ;;  %v2155_v22 = vunpack.c.h.b16 %v2082_v11  ;;  %v2207_v47 = vpack.c.b16 %v2156_v37, %v2156_v37 }
 0x185   : > { %v1636_v16 = vadd.f32 %v1635_v8, %v1547_v52  ;;  %v1373_v62 = vpop.f32.mrf.mxu1  ;;  %v1638_v51 = vpop.f32.mrf.mxu0 }
 0x186   : > { %v2205_v0 = vpack.c.b16 %v2154_v46, %v2154_v46  ;;  %v2206_v41 = vpack.c.b16 %v2155_v22, %v2155_v22  ;;  %2309 = vst [vmem:[%s3540_s25 + $0x20] sm:$0x1] %v2207_v47  ;;  %v719_v8 = vpop.permute.xlu1 %718  ;;  %v1374_v54 = vadd.f32 %v1373_v62, %v3504_v3 }
 0x187   : > { %v1707_v9 = vadd.f32 %v1706_v7, %v1636_v16  ;;  %v1745_v33 = vmul.f32 %v1636_v16, %v1636_v16  ;;  %v1817_v49 = vpack.c.bf16 %v1636_v16, %v1636_v16  ;;  %1588 = vmatmul.bf16.gmra.mxu3 %v3221_v10  ;;  %v916_v20 = vsel %vm753_vm2, %v2967_v25, %v719_v8 }
 0x188   : > { %2307 = vst [vmem:[%s3540_s25 + $0x18] sm:$0xf] %v2205_v0  ;;  %2676 = vmatmul.msk.bf16.gmra.mxu0 %vm753_vm2, %v3342_v19 }
 0x189   : > { %2308 = vst [vmem:[%s3540_s25 + $0x1c] sm:$0xf] %v2206_v41  ;;  %v1776_v61 = vadd.f32 %v1775_v60, %v1745_v33  ;;  %v1881_v12 = vunpack.c.l.b16 %v1817_v49 }
 0x18a   : > { %v1462_v14 = vpop.f32.mrf.mxu2  ;;  %v1549_v1 = vpop.f32.mrf.mxu3 }
 0x18b   : > { %v1910_v44 = vpack.c.b16 %v1881_v12, %v1880_v21  ;;  %v1550_v40 = vadd.f32 %v1549_v1, %v1461_v26  ;;  %v1463_v25 = vadd.f32 %v1462_v14, %v1374_v54  ;;  %v721_v1 = vpop.permute.xlu0 %720 }
 0x18d   : > { %v1946_v48 = vshrl.u32 %v1910_v44, 16  ;;  %v1639_v10 = vadd.f32 %v1638_v51, %v1550_v40  ;;  %v1376_v7 = vpop.f32.mrf.mxu1  ;;  %v1640_v28 = vpop.f32.mrf.mxu0  ;;  %v1949_v60 = vshll.u32 %v1910_v44, 16 }
 0x18e   : > { %v1377_v49 = vadd.f32 %v1376_v7, %v3373_v57  ;;  %v671_v44 = vpop.permute.xlu1 %670 }
 0x18f   : > { %v1948_v55 = vrot.slane %v1946_v48, 7  ;;  %v1708_v37 = vadd.f32 %v1707_v9, %v1639_v10  ;;  %v1746_v18 = vmul.f32 %v1639_v10, %v1639_v10  ;;  %1504 = vmatmul.bf16.gmra.mxu2 %v916_v20  ;;  %v1818_v51 = vpack.c.bf16 %v1639_v10, %v1639_v10 }
 0x190   : > { %1415 = vmatmul.bf16.gmra.mxu1 %v852_v59  ;;  %v920_v10 = vsel %vm753_vm2, %v2978_v36, %v721_v1  ;;  %v856_v54 = vsel %vm753_vm2, %v3342_v19, %v671_v44 }
 0x191   : > { %v1951_v58 = vor.u32 %v1949_v60, %v1948_v55  ;;  %v2100_v11 = vsel %vm3528_vm5, %v1948_v55, 0  ;;  %v1777_v52 = vadd.f32 %v1776_v61, %v1746_v18  ;;  %v1882_v12 = vunpack.c.l.b16 %v1818_v51 }
 0x192   : > { %v2159_v46 = vunpack.c.l.b16 %v2100_v11  ;;  %v1465_v22 = vpop.f32.mrf.mxu2  ;;  %v1551_v47 = vpop.f32.mrf.mxu3 }
 0x193   : > { %v2083_v34 = vsel %vm3528_vm5, 0, %v1951_v58  ;;  %v1552_v3 = vadd.f32 %v1551_v47, %v1463_v25  ;;  %v1466_v45 = vadd.f32 %v1465_v22, %v1377_v49 }
 0x194   : > { %v2157_v13 = vunpack.c.l.b16 %v2083_v34  ;;  %v2158_v16 = vunpack.c.h.b16 %v2083_v34  ;;  %v2210_v62 = vpack.c.b16 %v2159_v46, %v2159_v46 }
 0x195   : > { %v1641_v0 = vadd.f32 %v1640_v28, %v1552_v3  ;;  %v1378_v41 = vpop.f32.mrf.mxu1  ;;  %v1643_v35 = vpop.f32.mrf.mxu0 }
 0x196   : > { %v2208_v9 = vpack.c.b16 %v2157_v13, %v2157_v13  ;;  %v2209_v33 = vpack.c.b16 %v2158_v16, %v2158_v16  ;;  %2312 = vst [vmem:[%s3540_s25 + $0x2c] sm:$0x1] %v2210_v62  ;;  %v1379_v55 = vadd.f32 %v1378_v41, %v3383_v29 }
 0x197   : > { %v1709_v21 = vadd.f32 %v1708_v37, %v1641_v0  ;;  %v1747_v26 = vmul.f32 %v1641_v0, %v1641_v0  ;;  %v1819_v61 = vpack.c.bf16 %v1641_v0, %v1641_v0  ;;  %1593 = vmatmul.bf16.gmra.mxu3 %v3269_v63 }
 0x198   : > { %2310 = vst [vmem:[%s3540_s25 + $0x24] sm:$0xf] %v2208_v9  ;;  %2677 = vmatmul.msk.bf16.gmra.mxu0 %vm753_vm2, %v3365_v39 }
 0x199   : > { %2311 = vst [vmem:[%s3540_s25 + $0x28] sm:$0xf] %v2209_v33  ;;  %v1778_v8 = vadd.f32 %v1777_v52, %v1747_v26  ;;  %v1883_v14 = vunpack.c.l.b16 %v1819_v61 }
 0x19a   : > { %v1467_v40 = vpop.f32.mrf.mxu2  ;;  %v1554_v20 = vpop.f32.mrf.mxu3 }
 0x19b   : > { %v1911_v48 = vpack.c.b16 %v1883_v14, %v1882_v12  ;;  %v1555_v57 = vadd.f32 %v1554_v20, %v1466_v45  ;;  %v1468_v36 = vadd.f32 %v1467_v40, %v1379_v55  ;;  %v673_v14 = vpop.permute.xlu1 %672 }
 0x19d   : > { %v1953_v7 = vshrl.u32 %v1911_v48, 16  ;;  %v1644_v63 = vadd.f32 %v1643_v35, %v1555_v57  ;;  %v1381_v28 = vpop.f32.mrf.mxu1  ;;  %v1645_v59 = vpop.f32.mrf.mxu0  ;;  %v1956_v37 = vshll.u32 %v1911_v48, 16 }
 0x19e   : > { %v1382_v9 = vadd.f32 %v1381_v28, %v3400_v17 }
 0x19f   : > { %v1955_v60 = vrot.slane %v1953_v7, 7  ;;  %v1710_v18 = vadd.f32 %v1709_v21, %v1644_v63  ;;  %v1748_v58 = vmul.f32 %v1644_v63, %v1644_v63  ;;  %1509 = vmatmul.bf16.gmra.mxu2 %v920_v10  ;;  %v1820_v16 = vpack.c.bf16 %v1644_v63, %v1644_v63 }
 0x1a0   : > { %1420 = vmatmul.bf16.gmra.mxu1 %v856_v54  ;;  %v860_v7 = vsel %vm753_vm2, %v3365_v39, %v673_v14 }
 0x1a1   : > { %v1958_v11 = vor.u32 %v1956_v37, %v1955_v60  ;;  %v2101_v25 = vsel %vm3528_vm5, %v1955_v60, 0  ;;  %v1779_v52 = vadd.f32 %v1778_v8, %v1748_v58  ;;  %v1884_v26 = vunpack.c.l.b16 %v1820_v16  ;;  %v723_v8 = vpop.permute.xlu2 %722  ;;  %v747_v58 = vpop.permute.xlu0 %746 }
 0x1a2   : > { %v2162_v46 = vunpack.c.l.b16 %v2101_v25  ;;  %v1470_v22 = vpop.f32.mrf.mxu2  ;;  %v1556_v47 = vpop.f32.mrf.mxu3  ;;  %v924_v20 = vsel %vm753_vm2, %v3027_v50, %v723_v8 }
 0x1a3   : > { %v2084_v19 = vsel %vm3528_vm5, 0, %v1958_v11  ;;  %v1557_v29 = vadd.f32 %v1556_v47, %v1468_v36  ;;  %v1471_v61 = vadd.f32 %v1470_v22, %v1382_v9  ;;  %v931_v47 = vsel %vm753_vm2, %v3394_v38, %v747_v58 }
 0x1a4   : > { %v2160_v34 = vunpack.c.l.b16 %v2084_v19  ;;  %v2161_v3 = vunpack.c.h.b16 %v2084_v19  ;;  %v2213_v13 = vpack.c.b16 %v2162_v46, %v2162_v46 }
 0x1a5   : > { %v1646_v62 = vadd.f32 %v1645_v59, %v1557_v29  ;;  %v1383_v51 = vpop.f32.mrf.mxu1  ;;  %v1648_v0 = vpop.f32.mrf.mxu0 }
 0x1a6   : > { %v2211_v41 = vpack.c.b16 %v2160_v34, %v2160_v34  ;;  %v2212_v35 = vpack.c.b16 %v2161_v3, %v2161_v3  ;;  %2315 = vst [vmem:[%s3540_s25 + $0x38] sm:$0x1] %v2213_v13  ;;  %v1384_v63 = vadd.f32 %v1383_v51, %v3420_v56 }
 0x1a7   : > { %v1711_v33 = vadd.f32 %v1710_v18, %v1646_v62  ;;  %v1749_v49 = vmul.f32 %v1646_v62, %v1646_v62  ;;  %v1821_v21 = vpack.c.bf16 %v1646_v62, %v1646_v62  ;;  %1598 = vmatmul.bf16.gmra.mxu3 %v3286_v32 }
 0x1a8   : > { %2313 = vst [vmem:[%s3540_s25 + $0x30] sm:$0xf] %v2211_v41  ;;  %2678 = vmatmul.msk.bf16.gmra.mxu0 %vm753_vm2, %v3455_v27 }
 0x1a9   : > { %2314 = vst [vmem:[%s3540_s25 + $0x34] sm:$0xf] %v2212_v35  ;;  %v1780_v12 = vadd.f32 %v1779_v52, %v1749_v49  ;;  %v1885_v45 = vunpack.c.l.b16 %v1821_v21  ;;  %v725_v49 = vpop.permute.xlu2 %724  ;;  %v675_v21 = vpop.permute.xlu1 %674 }
 0x1aa   : > { %v1472_v1 = vpop.f32.mrf.mxu2  ;;  %v1559_v44 = vpop.f32.mrf.mxu3 }
 0x1ab   : > { %v1912_v40 = vpack.c.b16 %v1885_v45, %v1884_v26  ;;  %v1560_v17 = vadd.f32 %v1559_v44, %v1471_v61  ;;  %v1473_v50 = vadd.f32 %v1472_v1, %v1384_v63 }
 0x1ad   : > { %v1960_v48 = vshrl.u32 %v1912_v40, 16  ;;  %v1649_v32 = vadd.f32 %v1648_v0, %v1560_v17  ;;  %v1386_v57 = vpop.f32.mrf.mxu1  ;;  %v1650_v10 = vpop.f32.mrf.mxu0  ;;  %v1963_v59 = vshll.u32 %v1912_v40, 16 }
 0x1ae   : > { %v1387_v62 = vadd.f32 %v1386_v57, %v3439_v42  ;;  %v928_v42 = vsel %vm753_vm2, %v3416_v30, %v725_v49  ;;  %v750_v57 = vrot.slane %v3433_v23, 1 }
 0x1af   : > { %v1962_v28 = vrot.slane %v1960_v48, 7  ;;  %v1712_v54 = vadd.f32 %v1711_v33, %v1649_v32  ;;  %v1750_v55 = vmul.f32 %v1649_v32, %v1649_v32  ;;  %1514 = vmatmul.bf16.gmra.mxu2 %v924_v20  ;;  %v1822_v19 = vpack.c.bf16 %v1649_v32, %v1649_v32 }
 0x1b0   : > { %1425 = vmatmul.bf16.gmra.mxu1 %v860_v7 }
 0x1b1   : > { %v1965_v60 = vor.u32 %v1963_v59, %v1962_v28  ;;  %v2102_v37 = vsel %vm3528_vm5, %v1962_v28, 0  ;;  %v1781_v18 = vadd.f32 %v1780_v12, %v1750_v55  ;;  %v1886_v35 = vunpack.c.l.b16 %v1822_v19  ;;  %v749_v59 = vpop.permute.xlu0 %748 }
 0x1b2   : > { %v2165_v11 = vunpack.c.l.b16 %v2102_v37  ;;  %v1475_v25 = vpop.f32.mrf.mxu2  ;;  %v1561_v36 = vpop.f32.mrf.mxu3 }
 0x1b3   : > { %v2085_v39 = vsel %vm3528_vm5, 0, %v1965_v60  ;;  %v1562_v56 = vadd.f32 %v1561_v36, %v1473_v50  ;;  %v1476_v38 = vadd.f32 %v1475_v25, %v1387_v62 }
 0x1b4   : > { %v2163_v52 = vunpack.c.l.b16 %v2085_v39  ;;  %v2164_v46 = vunpack.c.h.b16 %v2085_v39  ;;  %v2216_v22 = vpack.c.b16 %v2165_v11, %v2165_v11 }
 0x1b5   : > { %v1651_v29 = vadd.f32 %v1650_v10, %v1562_v56  ;;  %v1388_v34 = vpop.f32.mrf.mxu1  ;;  %v1653_v3 = vpop.f32.mrf.mxu0  ;;  %v751_v10 = vrot.slane %v3443_v53, 1  ;;  %v934_v53 = vsel %vm753_vm2, %v3433_v23, %v749_v59 }
 0x1b6   : > { %v2214_v13 = vpack.c.b16 %v2163_v52, %v2163_v52  ;;  %v2215_v16 = vpack.c.b16 %v2164_v46, %v2164_v46  ;;  %2318 = vst [vmem:[%s3540_s25 + $0x44] sm:$0x1] %v2216_v22  ;;  %v1389_v40 = vadd.f32 %v1388_v34, %v3462_v5 }
 0x1b7   : > { %v1713_v51 = vadd.f32 %v1712_v54, %v1651_v29  ;;  %v1751_v0 = vmul.f32 %v1651_v29, %v1651_v29  ;;  %v1823_v41 = vpack.c.bf16 %v1651_v29, %v1651_v29  ;;  %1603 = vmatmul.bf16.gmra.mxu3 %v931_v47  ;;  %v752_v39 = vsel %vm590_vm1, %v750_v57, %v751_v10 }
 0x1b8   : > { %2316 = vst [vmem:[%s3540_s25 + $0x3c] sm:$0xf] %v2214_v13  ;;  %2679 = vmatmul.msk.bf16.gmra.mxu0 %vm753_vm2, %v3487_v4  ;;  %v864_v4 = vsel %vm753_vm2, %v3455_v27, %v675_v21 }
 0x1b9   : > { %2317 = vst [vmem:[%s3540_s25 + $0x40] sm:$0xf] %v2215_v16  ;;  %v1782_v9 = vadd.f32 %v1781_v18, %v1751_v0  ;;  %v1887_v33 = vunpack.c.l.b16 %v1823_v41 }
 0x1ba   : > { %v1477_v26 = vpop.f32.mrf.mxu2  ;;  %v1564_v61 = vpop.f32.mrf.mxu3 }
 0x1bb   : > { %v1913_v12 = vpack.c.b16 %v1887_v33, %v1886_v35  ;;  %v1565_v45 = vadd.f32 %v1564_v61, %v1476_v38  ;;  %v1478_v63 = vadd.f32 %v1477_v26, %v1389_v40 }
 0x1bd   : > { %v1967_v8 = vshrl.u32 %v1913_v12, 16  ;;  %v1654_v14 = vadd.f32 %v1653_v3, %v1565_v45  ;;  %v1391_v1 = vpop.f32.mrf.mxu1  ;;  %v1655_v44 = vpop.f32.mrf.mxu0  ;;  %v1970_v20 = vshll.u32 %v1913_v12, 16 }
 0x1be   : > { %v1392_v46 = vadd.f32 %v1391_v1, %v3476_v2 }
 0x1bf   : > { %v1969_v17 = vrot.slane %v1967_v8, 7  ;;  %v1714_v48 = vadd.f32 %v1713_v51, %v1654_v14  ;;  %v1752_v32 = vmul.f32 %v1654_v14, %v1654_v14  ;;  %1519 = vmatmul.bf16.gmra.mxu2 %v928_v42  ;;  %v1824_v58 = vpack.c.bf16 %v1654_v14, %v1654_v14 }
 0x1c0   : > { %1430 = vmatmul.bf16.gmra.mxu1 %v864_v4 }
 0x1c1   : > { %v1972_v30 = vor.u32 %v1970_v20, %v1969_v17  ;;  %v2103_v7 = vsel %vm3528_vm5, %v1969_v17, 0  ;;  %v1783_v28 = vadd.f32 %v1782_v9, %v1752_v32  ;;  %v1888_v23 = vunpack.c.l.b16 %v1824_v58 }
 0x1c2   : > { %v2168_v27 = vunpack.c.l.b16 %v2103_v7  ;;  %v1480_v5 = vpop.f32.mrf.mxu2  ;;  %v1566_v54 = vpop.f32.mrf.mxu3 }
 0x1c3   : > { %v2086_v55 = vsel %vm3528_vm5, 0, %v1972_v30  ;;  %v1567_v60 = vadd.f32 %v1566_v54, %v1478_v63  ;;  %v1481_v29 = vadd.f32 %v1480_v5, %v1392_v46 }
 0x1c4   : > { %v2166_v37 = vunpack.c.l.b16 %v2086_v55  ;;  %v2167_v50 = vunpack.c.h.b16 %v2086_v55  ;;  %v2219_v18 = vpack.c.b16 %v2168_v27, %v2168_v27 }
 0x1c5   : > { %v1656_v11 = vadd.f32 %v1655_v44, %v1567_v60  ;;  %v1393_v25 = vpop.f32.mrf.mxu1  ;;  %v1658_v36 = vpop.f32.mrf.mxu0 }
 0x1c6   : > { %v2217_v56 = vpack.c.b16 %v2166_v37, %v2166_v37  ;;  %v2218_v52 = vpack.c.b16 %v2167_v50, %v2167_v50  ;;  %2321 = vst [vmem:[%s3540_s25 + $0x50] sm:$0x1] %v2219_v18  ;;  %v1394_v38 = vadd.f32 %v1393_v25, %v3493_v31 }
 0x1c7   : > { %v1715_v22 = vadd.f32 %v1714_v48, %v1656_v11  ;;  %v1753_v47 = vmul.f32 %v1656_v11, %v1656_v11  ;;  %v1825_v19 = vpack.c.bf16 %v1656_v11, %v1656_v11  ;;  %1608 = vmatmul.bf16.gmra.mxu3 %v934_v53 }
 0x1c8   : > { %2319 = vst [vmem:[%s3540_s25 + $0x48] sm:$0xf] %v2217_v56  ;;  %2680 = vmatmul.msk.bf16.gmra.mxu0 %vm753_vm2, %v752_v39 }
 0x1c9   : > { %2320 = vst [vmem:[%s3540_s25 + $0x4c] sm:$0xf] %v2218_v52  ;;  %v1784_v34 = vadd.f32 %v1783_v28, %v1753_v47  ;;  %v1889_v3 = vunpack.c.l.b16 %v1825_v19 }
 0x1ca   : > { %v1482_v13 = vpop.f32.mrf.mxu2  ;;  %v1569_v16 = vpop.f32.mrf.mxu3 }
 0x1cb   : > { %v1914_v62 = vpack.c.b16 %v1889_v3, %v1888_v23  ;;  %v1570_v51 = vadd.f32 %v1569_v16, %v1481_v29  ;;  %v1483_v12 = vadd.f32 %v1482_v13, %v1394_v38 }
 0x1cd   : > { %v1974_v0 = vshrl.u32 %v1914_v62, 16  ;;  %v1659_v41 = vadd.f32 %v1658_v36, %v1570_v51  ;;  %v1396_v35 = vpop.f32.mrf.mxu1  ;;  %v1660_v2 = vpop.f32.mrf.mxu0  ;;  %v1977_v33 = vshll.u32 %v1914_v62, 16 }
 0x1ce   : > { %v1397_v30 = vadd.f32 %v1396_v35, %v3379_v24 }
 0x1cf   : > { %v1976_v9 = vrot.slane %v1974_v0, 7  ;;  %v1716_v49 = vadd.f32 %v1715_v22, %v1659_v41  ;;  %v1754_v21 = vmul.f32 %v1659_v41, %v1659_v41  ;;  %v1826_v17 = vpack.c.bf16 %v1659_v41, %v1659_v41 }
 0x1d1   : > { %v1979_v26 = vor.u32 %v1977_v33, %v1976_v9  ;;  %v2104_v61 = vsel %vm3528_vm5, %v1976_v9, 0  ;;  %v1785_v45 = vadd.f32 %v1784_v34, %v1754_v21  ;;  %v1890_v59 = vunpack.c.l.b16 %v1826_v17 }
 0x1d2   : > { %v2171_v42 = vunpack.c.l.b16 %v2104_v61  ;;  %v1485_v8 = vpop.f32.mrf.mxu2  ;;  %v1571_v14 = vpop.f32.mrf.mxu3 }
 0x1d3   : > { %v2087_v1 = vsel %vm3528_vm5, 0, %v1979_v26  ;;  %v1572_v44 = vadd.f32 %v1571_v14, %v1483_v12  ;;  %v1486_v27 = vadd.f32 %v1485_v8, %v1397_v30 }
 0x1d4   : > { %v2169_v31 = vunpack.c.l.b16 %v2087_v1  ;;  %v2170_v4 = vunpack.c.h.b16 %v2087_v1  ;;  %v2222_v40 = vpack.c.b16 %v2171_v42, %v2171_v42 }
 0x1d5   : > { %v1661_v20 = vadd.f32 %v1660_v2, %v1572_v44  ;;  %v1398_v48 = vpop.f32.mrf.mxu1  ;;  %v1663_v32 = vpop.f32.mrf.mxu0 }
 0x1d6   : > { %v2220_v57 = vpack.c.b16 %v2169_v31, %v2169_v31  ;;  %v2221_v10 = vpack.c.b16 %v2170_v4, %v2170_v4  ;;  %2324 = vst [vmem:[%s3540_s25 + $0x5c] sm:$0x1] %v2222_v40  ;;  %v1399_v25 = vadd.f32 %v1398_v48, %v3388_v6  ;;  %v3828_v40 = vld [vmem:[#allocation4_spill] sm:$0xff] }
 0x1d7   : > { %v1717_v7 = vadd.f32 %v1716_v49, %v1661_v20  ;;  %v1755_v63 = vmul.f32 %v1661_v20, %v1661_v20  ;;  %v1827_v28 = vpack.c.bf16 %v1661_v20, %v1661_v20 }
 0x1d8   : > { %2322 = vst [vmem:[%s3540_s25 + $0x54] sm:$0xf] %v2220_v57 }
 0x1d9   : > { %2323 = vst [vmem:[%s3540_s25 + $0x58] sm:$0xf] %v2221_v10  ;;  %v1786_v5 = vadd.f32 %v1785_v45, %v1755_v63  ;;  %v1891_v54 = vunpack.c.l.b16 %v1827_v28 }
 0x1da   : > { %v1487_v55 = vpop.f32.mrf.mxu2  ;;  %v1574_v60 = vpop.f32.mrf.mxu3 }
 0x1db   : > { %v1915_v37 = vpack.c.b16 %v1891_v54, %v1890_v59  ;;  %v1575_v50 = vadd.f32 %v1574_v60, %v1486_v27  ;;  %v1488_v22 = vadd.f32 %v1487_v55, %v1399_v25 }
 0x1dd   : > { %v1981_v18 = vshrl.u32 %v1915_v37, 16  ;;  %v1664_v53 = vadd.f32 %v1663_v32, %v1575_v50  ;;  %v1401_v58 = vpop.f32.mrf.mxu1  ;;  %v1665_v11 = vpop.f32.mrf.mxu0  ;;  %v1984_v36 = vshll.u32 %v1915_v37, 16 }
 0x1de   : > { %v1402_v38 = vadd.f32 %v1401_v58, %v3411_v15 }
 0x1df   : > { %v1983_v24 = vrot.slane %v1981_v18, 7  ;;  %v1718_v39 = vadd.f32 %v1717_v7, %v1664_v53  ;;  %v1756_v56 = vmul.f32 %v1664_v53, %v1664_v53  ;;  %v1828_v62 = vpack.c.bf16 %v1664_v53, %v1664_v53 }
 0x1e1   : > { %v1986_v52 = vor.u32 %v1984_v36, %v1983_v24  ;;  %v2105_v46 = vsel %vm3528_vm5, %v1983_v24, 0  ;;  %v1787_v47 = vadd.f32 %v1786_v5, %v1756_v56  ;;  %v1892_v21 = vunpack.c.l.b16 %v1828_v62  ;;  %v3829_v56 = vld [vmem:[#allocation6_spill] sm:$0xff] }
 0x1e2   : > { %v2174_v19 = vunpack.c.l.b16 %v2105_v46  ;;  %v1490_v23 = vpop.f32.mrf.mxu2  ;;  %v1576_v29 = vpop.f32.mrf.mxu3 }
 0x1e3   : > { %v2088_v34 = vsel %vm3528_vm5, 0, %v1986_v52  ;;  %v1577_v3 = vadd.f32 %v1576_v29, %v1488_v22  ;;  %v1491_v26 = vadd.f32 %v1490_v23, %v1402_v38 }
 0x1e4   : > { %v2172_v6 = vunpack.c.l.b16 %v2088_v34  ;;  %v2173_v13 = vunpack.c.h.b16 %v2088_v34  ;;  %v2225_v16 = vpack.c.b16 %v2174_v19, %v2174_v19 }
 0x1e5   : > { %v1666_v51 = vadd.f32 %v1665_v11, %v1577_v3  ;;  %v1403_v0 = vpop.f32.mrf.mxu1  ;;  %v1668_v41 = vpop.f32.mrf.mxu0 }
 0x1e6   : > { %v2223_v35 = vpack.c.b16 %v2172_v6, %v2172_v6  ;;  %v2224_v2 = vpack.c.b16 %v2173_v13, %v2173_v13  ;;  %2327 = vst [vmem:[%s3540_s25 + $0x68] sm:$0x1] %v2225_v16  ;;  %v1404_v17 = vadd.f32 %v1403_v0, %v3828_v40 }
 0x1e7   : > { %v1719_v9 = vadd.f32 %v1718_v39, %v1666_v51  ;;  %v1757_v33 = vmul.f32 %v1666_v51, %v1666_v51  ;;  %v1829_v49 = vpack.c.bf16 %v1666_v51, %v1666_v51  ;;  %v3830_v51 = vld [vmem:[#allocation8_spill] sm:$0xff] }
 0x1e8   : > { %2325 = vst [vmem:[%s3540_s25 + $0x60] sm:$0xf] %v2223_v35 }
 0x1e9   : > { %2326 = vst [vmem:[%s3540_s25 + $0x64] sm:$0xf] %v2224_v2  ;;  %v1788_v61 = vadd.f32 %v1787_v47, %v1757_v33  ;;  %v1893_v12 = vunpack.c.l.b16 %v1829_v49 }
 0x1ea   : > { %v1492_v45 = vpop.f32.mrf.mxu2  ;;  %v1579_v42 = vpop.f32.mrf.mxu3 }
 0x1eb   : > { %v1916_v8 = vpack.c.b16 %v1893_v12, %v1892_v21  ;;  %v1580_v14 = vadd.f32 %v1579_v42, %v1491_v26  ;;  %v1493_v30 = vadd.f32 %v1492_v45, %v1404_v17  ;;  %v3831_v17 = vld [vmem:[#allocation10_spill] sm:$0xff] }
 0x1ed   : > { %v1988_v1 = vshrl.u32 %v1916_v8, 16  ;;  %v1669_v44 = vadd.f32 %v1668_v41, %v1580_v14  ;;  %v1406_v31 = vpop.f32.mrf.mxu1  ;;  %v1670_v4 = vpop.f32.mrf.mxu0  ;;  %v1991_v20 = vshll.u32 %v1916_v8, 16 }
 0x1ee   : > { %v1407_v52 = vadd.f32 %v1406_v31, %v3829_v56 }
 0x1ef   : > { %v1990_v15 = vrot.slane %v1988_v1, 7  ;;  %v1720_v48 = vadd.f32 %v1719_v9, %v1669_v44  ;;  %v1758_v32 = vmul.f32 %v1669_v44, %v1669_v44  ;;  %v1830_v37 = vpack.c.bf16 %v1669_v44, %v1669_v44 }
 0x1f1   : > { %v1993_v57 = vor.u32 %v1991_v20, %v1990_v15  ;;  %v2106_v10 = vsel %vm3528_vm5, %v1990_v15, 0  ;;  %v1789_v7 = vadd.f32 %v1788_v61, %v1758_v32  ;;  %v1894_v39 = vunpack.c.l.b16 %v1830_v37 }
 0x1f2   : > { %v2177_v63 = vunpack.c.l.b16 %v2106_v10  ;;  %v1495_v28 = vpop.f32.mrf.mxu2  ;;  %v1581_v59 = vpop.f32.mrf.mxu3 }
 0x1f3   : > { %v2089_v27 = vsel %vm3528_vm5, 0, %v1993_v57  ;;  %v1582_v5 = vadd.f32 %v1581_v59, %v1493_v30  ;;  %v1496_v23 = vadd.f32 %v1495_v28, %v1407_v52 }
 0x1f4   : > { %v2175_v54 = vunpack.c.l.b16 %v2089_v27  ;;  %v2176_v55 = vunpack.c.h.b16 %v2089_v27  ;;  %v2228_v60 = vpack.c.b16 %v2177_v63, %v2177_v63 }
 0x1f5   : > { %v1671_v50 = vadd.f32 %v1670_v4, %v1582_v5  ;;  %v1408_v18 = vpop.f32.mrf.mxu1  ;;  %v1673_v53 = vpop.f32.mrf.mxu0  ;;  %v3832_v5 = vld [vmem:[#allocation12_spill] sm:$0xff] }
 0x1f6   : > { %v2226_v58 = vpack.c.b16 %v2175_v54, %v2175_v54  ;;  %v2227_v11 = vpack.c.b16 %v2176_v55, %v2176_v55  ;;  %2330 = vst [vmem:[%s3540_s25 + $0x74] sm:$0x1] %v2228_v60  ;;  %v1409_v0 = vadd.f32 %v1408_v18, %v3830_v51 }
 0x1f7   : > { %v3659_v25 = vadd.f32 %v1720_v48, %v1671_v50  ;;  %v1759_v24 = vmul.f32 %v1671_v50, %v1671_v50  ;;  %v1831_v36 = vpack.c.bf16 %v1671_v50, %v1671_v50 }
 0x1f8   : > { %2328 = vst [vmem:[%s3540_s25 + $0x6c] sm:$0xf] %v2226_v58 }
 0x1f9   : > { %2329 = vst [vmem:[%s3540_s25 + $0x70] sm:$0xf] %v2227_v11  ;;  %v3664_v46 = vadd.f32 %v1789_v7, %v1759_v24  ;;  %v1895_v22 = vunpack.c.l.b16 %v1831_v36 }
 0x1fa   : > { %v1497_v47 = vpop.f32.mrf.mxu2  ;;  %v1584_v19 = vpop.f32.mrf.mxu3 }
 0x1fb   : > { %v1917_v29 = vpack.c.b16 %v1895_v22, %v1894_v39  ;;  %v1585_v3 = vadd.f32 %v1584_v19, %v1496_v23  ;;  %v1498_v2 = vadd.f32 %v1497_v47, %v1409_v0 }
 0x1fd   : > { %v1995_v34 = vshrl.u32 %v1917_v29, 16  ;;  %v1411_v6 = vpop.f32.mrf.mxu1  ;;  %v1675_v13 = vpop.f32.mrf.mxu0  ;;  %v1998_v62 = vshll.u32 %v1917_v29, 16  ;;  %v3669_v38 = vadd.f32 %v1673_v53, %v1585_v3 }
 0x1fe   : > { %v1412_v15 = vadd.f32 %v1411_v6, %v3831_v17  ;;  %v3833_v6 = vld [vmem:[#allocation2_spill] sm:$0xff] }
 0x1ff   : > { %v1997_v16 = vrot.slane %v1995_v34, 7  ;;  %v1832_v42 = vpack.c.bf16 %v3669_v38, %v3669_v38 }
 0x201   : > { %v2000_v41 = vor.u32 %v1998_v62, %v1997_v16  ;;  %v2107_v35 = vsel %vm3528_vm5, %v1997_v16, 0  ;;  %v1896_v40 = vunpack.c.l.b16 %v1832_v42 }
 0x202   : > { %v2180_v9 = vunpack.c.l.b16 %v2107_v35  ;;  %v1500_v33 = vpop.f32.mrf.mxu2  ;;  %v1586_v49 = vpop.f32.mrf.mxu3 }
 0x203   : > { %v2090_v21 = vsel %vm3528_vm5, 0, %v2000_v41  ;;  %v1587_v26 = vadd.f32 %v1586_v49, %v1498_v2  ;;  %v1501_v57 = vadd.f32 %v1500_v33, %v1412_v15 }
 0x204   : > { %v2178_v61 = vunpack.c.l.b16 %v2090_v21  ;;  %v2179_v12 = vunpack.c.h.b16 %v2090_v21  ;;  %v2231_v45 = vpack.c.b16 %v2180_v9, %v2180_v9 }
 0x205   : > { %v3675_v8 = vadd.f32 %v1675_v13, %v1587_v26  ;;  %v1413_v14 = vpop.f32.mrf.mxu1  ;;  %v1678_v1 = vpop.f32.mrf.mxu0  ;;  %v3834_v26 = vld [vmem:[#allocation3_spill] sm:$0xff] }
 0x206   : > { %v2229_v44 = vpack.c.b16 %v2178_v61, %v2178_v61  ;;  %v2230_v31 = vpack.c.b16 %v2179_v12, %v2179_v12  ;;  %2333 = vst [vmem:[%s3540_s25 + $0x80] sm:$0x1] %v2231_v45  ;;  %v1414_v54 = vadd.f32 %v1413_v14, %v3832_v5 }
 0x207   : > { %v1833_v4 = vpack.c.bf16 %v3675_v8, %v3675_v8 }
 0x208   : > { %2331 = vst [vmem:[%s3540_s25 + $0x78] sm:$0xf] %v2229_v44 }
 0x209   : > { %2332 = vst [vmem:[%s3540_s25 + $0x7c] sm:$0xf] %v2230_v31  ;;  %v1897_v20 = vunpack.c.l.b16 %v1833_v4 }
 0x20a   : > { %v1502_v48 = vpop.f32.mrf.mxu2  ;;  %v1589_v32 = vpop.f32.mrf.mxu3 }
 0x20b   : > { %v1918_v10 = vpack.c.b16 %v1897_v20, %v1896_v40  ;;  %v1590_v7 = vadd.f32 %v1589_v32, %v1501_v57  ;;  %v1503_v37 = vadd.f32 %v1502_v48, %v1414_v54 }
 0x20d   : > { %v2002_v30 = vshrl.u32 %v1918_v10, 16  ;;  %v1416_v63 = vpop.f32.mrf.mxu1  ;;  %v1680_v28 = vpop.f32.mrf.mxu0  ;;  %v2005_v27 = vshll.u32 %v1918_v10, 16  ;;  %v3686_v50 = vadd.f32 %v1678_v1, %v1590_v7 }
 0x20e   : > { %v1417_v13 = vadd.f32 %v1416_v63, %v3833_v6 }
 0x20f   : > { %v2004_v59 = vrot.slane %v2002_v30, 7  ;;  %v1834_v52 = vpack.c.bf16 %v3686_v50, %v3686_v50 }
 0x211   : > { %v2007_v55 = vor.u32 %v2005_v27, %v2004_v59  ;;  %v2108_v60 = vsel %vm3528_vm5, %v2004_v59, 0  ;;  %v1898_v3 = vunpack.c.l.b16 %v1834_v52  ;;  %v3835_v59 = vld [vmem:[#allocation5_spill] sm:$0xff] }
 0x212   : > { %v2183_v18 = vunpack.c.l.b16 %v2108_v60  ;;  %v1505_v53 = vpop.f32.mrf.mxu2  ;;  %v1591_v58 = vpop.f32.mrf.mxu3 }
 0x213   : > { %v2091_v11 = vsel %vm3528_vm5, 0, %v2007_v55  ;;  %v1592_v24 = vadd.f32 %v1591_v58, %v1503_v37  ;;  %v1506_v0 = vadd.f32 %v1505_v53, %v1417_v13 }
 0x214   : > { %v2181_v36 = vunpack.c.l.b16 %v2091_v11  ;;  %v2182_v39 = vunpack.c.h.b16 %v2091_v11  ;;  %v2234_v56 = vpack.c.b16 %v2183_v18, %v2183_v18 }
 0x215   : > { %v3692_v22 = vadd.f32 %v1680_v28, %v1592_v24  ;;  %v1418_v47 = vpop.f32.mrf.mxu1  ;;  %v1683_v19 = vpop.f32.mrf.mxu0 }
 0x216   : > { %v2232_v23 = vpack.c.b16 %v2181_v36, %v2181_v36  ;;  %v2233_v29 = vpack.c.b16 %v2182_v39, %v2182_v39  ;;  %2336 = vst [vmem:[%s3540_s25 + $0x8c] sm:$0x1] %v2234_v56  ;;  %v1419_v61 = vadd.f32 %v1418_v47, %v3834_v26  ;;  %v3836_v39 = vld [vmem:[#allocation7_spill] sm:$0xff]  ;;  %v3837_v26 = vld [vmem:[#allocation9_spill] sm:$0xff] }
 0x217   : > { %v1835_v34 = vpack.c.bf16 %v3692_v22, %v3692_v22 }
 0x218   : > { %2334 = vst [vmem:[%s3540_s25 + $0x84] sm:$0xf] %v2232_v23 }
 0x219   : > { %2335 = vst [vmem:[%s3540_s25 + $0x88] sm:$0xf] %v2233_v29  ;;  %v1899_v16 = vunpack.c.l.b16 %v1835_v34 }
 0x21a   : > { %v1507_v62 = vpop.f32.mrf.mxu2  ;;  %v1594_v51 = vpop.f32.mrf.mxu3 }
 0x21b   : > { %v1919_v41 = vpack.c.b16 %v1899_v16, %v1898_v3  ;;  %v1595_v2 = vadd.f32 %v1594_v51, %v1506_v0  ;;  %v1508_v42 = vadd.f32 %v1507_v62, %v1419_v61 }
 0x21d   : > { %v2009_v35 = vshrl.u32 %v1919_v41, 16  ;;  %v1421_v9 = vpop.f32.mrf.mxu1  ;;  %v1685_v33 = vpop.f32.mrf.mxu0  ;;  %v2012_v21 = vshll.u32 %v1919_v41, 16  ;;  %v3703_v14 = vadd.f32 %v1683_v19, %v1595_v2 }
 0x21e   : > { %v1422_v27 = vadd.f32 %v1421_v9, %v3835_v59 }
 0x21f   : > { %v2011_v49 = vrot.slane %v2009_v35, 7  ;;  %v1836_v48 = vpack.c.bf16 %v3703_v14, %v3703_v14 }
 0x221   : > { %v2014_v12 = vor.u32 %v2012_v21, %v2011_v49  ;;  %v2109_v45 = vsel %vm3528_vm5, %v2011_v49, 0  ;;  %v1900_v28 = vunpack.c.l.b16 %v1836_v48  ;;  %v1762_v48 = vmul.f32 %v3686_v50, %v3686_v50 }
 0x222   : > { %v2186_v1 = vunpack.c.l.b16 %v2109_v45  ;;  %v1510_v44 = vpop.f32.mrf.mxu2  ;;  %v1596_v31 = vpop.f32.mrf.mxu3  ;;  %v1760_v45 = vmul.f32 %v3669_v38, %v3669_v38 }
 0x223   : > { %v2092_v4 = vsel %vm3528_vm5, 0, %v2014_v12  ;;  %v1597_v40 = vadd.f32 %v1596_v31, %v1508_v42  ;;  %v1511_v60 = vadd.f32 %v1510_v44, %v1422_v27 }
 0x224   : > { %v2184_v17 = vunpack.c.l.b16 %v2092_v4  ;;  %v2185_v15 = vunpack.c.h.b16 %v2092_v4  ;;  %v2237_v20 = vpack.c.b16 %v2186_v1, %v2186_v1  ;;  %v1761_v4 = vmul.f32 %v3675_v8, %v3675_v8 }
 0x225   : > { %v3709_v32 = vadd.f32 %v1685_v33, %v1597_v40  ;;  %v1423_v57 = vpop.f32.mrf.mxu1  ;;  %v1688_v10 = vpop.f32.mrf.mxu0 }
 0x226   : > { %v2235_v30 = vpack.c.b16 %v2184_v17, %v2184_v17  ;;  %v2236_v7 = vpack.c.b16 %v2185_v15, %v2185_v15  ;;  %2339 = vst [vmem:[%s3540_s25 + $0x98] sm:$0x1] %v2237_v20  ;;  %v1424_v56 = vadd.f32 %v1423_v57, %v3836_v39  ;;  %v1722_v15 = vadd.f32 %v3659_v25, %v3669_v38 }
 0x227   : > { %v1837_v63 = vpack.c.bf16 %v3709_v32, %v3709_v32  ;;  %v1791_v20 = vadd.f32 %v3664_v46, %v1760_v45 }
 0x228   : > { %2337 = vst [vmem:[%s3540_s25 + $0x90] sm:$0xf] %v2235_v30  ;;  %v3838_v30 = vld [vmem:[#allocation11_spill] sm:$0xff] }
 0x229   : > { %2338 = vst [vmem:[%s3540_s25 + $0x94] sm:$0xf] %v2236_v7  ;;  %v1901_v5 = vunpack.c.l.b16 %v1837_v63  ;;  %v1723_v63 = vadd.f32 %v1722_v15, %v3675_v8 }
 0x22a   : > { %v1512_v54 = vpop.f32.mrf.mxu2  ;;  %v1599_v55 = vpop.f32.mrf.mxu3 }
 0x22b   : > { %v1920_v37 = vpack.c.b16 %v1901_v5, %v1900_v28  ;;  %v1600_v53 = vadd.f32 %v1599_v55, %v1511_v60  ;;  %v1513_v19 = vadd.f32 %v1512_v54, %v1424_v56  ;;  %v1792_v28 = vadd.f32 %v1791_v20, %v1761_v4 }
 0x22c   : > { %v1724_v25 = vadd.f32 %v1723_v63, %v3686_v50 }
 0x22d   : > { %v2016_v18 = vshrl.u32 %v1920_v37, 16  ;;  %v1690_v58 = vpop.f32.mrf.mxu0  ;;  %v1426_v11 = vpop.f32.mrf.mxu1  ;;  %v2019_v36 = vshll.u32 %v1920_v37, 16  ;;  %v3720_v23 = vadd.f32 %v1688_v10, %v1600_v53  ;;  %v1793_v46 = vadd.f32 %v1792_v28, %v1762_v48  ;;  %v3840_v28 = vld [vmem:[#allocation14_spill] sm:$0xff] }
 0x22e   : > { %v1427_v61 = vadd.f32 %v1426_v11, %v3837_v26 }
 0x22f   : > { %v2018_v24 = vrot.slane %v2016_v18, 7  ;;  %v1838_v0 = vpack.c.bf16 %v3720_v23, %v3720_v23  ;;  %v1763_v18 = vmul.f32 %v3692_v22, %v3692_v22 }
 0x231   : > { %v2021_v52 = vor.u32 %v2019_v36, %v2018_v24  ;;  %v2110_v47 = vsel %vm3528_vm5, %v2018_v24, 0  ;;  %v1902_v21 = vunpack.c.l.b16 %v1838_v0  ;;  %v1725_v24 = vadd.f32 %v1724_v25, %v3692_v22 }
 0x232   : > { %v2189_v29 = vunpack.c.l.b16 %v2110_v47  ;;  %v1515_v34 = vpop.f32.mrf.mxu2  ;;  %v1601_v3 = vpop.f32.mrf.mxu3 }
 0x233   : > { %v2093_v6 = vsel %vm3528_vm5, 0, %v2021_v52  ;;  %v1602_v13 = vadd.f32 %v1601_v3, %v1513_v19  ;;  %v1516_v44 = vadd.f32 %v1515_v34, %v1427_v61  ;;  %v1764_v34 = vmul.f32 %v3703_v14, %v3703_v14 }
 0x234   : > { %v2187_v16 = vunpack.c.l.b16 %v2093_v6  ;;  %v2188_v62 = vunpack.c.h.b16 %v2093_v6  ;;  %v2240_v51 = vpack.c.b16 %v2189_v29, %v2189_v29 }
 0x235   : > { %v3726_v41 = vadd.f32 %v1690_v58, %v1602_v13  ;;  %v1693_v9 = vpop.f32.mrf.mxu0  ;;  %v1428_v49 = vpop.f32.mrf.mxu1  ;;  %v2781_v58 = vmov 0   ;;  %v1794_v13 = vadd.f32 %v1793_v46, %v1763_v18 }
 0x236   : > { %v2238_v35 = vpack.c.b16 %v2187_v16, %v2187_v16  ;;  %v2239_v2 = vpack.c.b16 %v2188_v62, %v2188_v62  ;;  %2342 = vst [vmem:[%s3540_s25 + $0xa4] sm:$0x1] %v2240_v51  ;;  %v1429_v7 = vadd.f32 %v1428_v49, %v3838_v30  ;;  %v1927_v11 = vrot.slane %v2781_v58, 7  ;;  %v3839_v16 = vld [vmem:[#allocation13_spill] sm:$0xff] }
 0x237   : > { %v1839_v33 = vpack.c.bf16 %v3726_v41, %v3726_v41  ;;  %v1767_v15 = vmul.f32 %v3726_v41, %v3726_v41 }
 0x238   : > { %2340 = vst [vmem:[%s3540_s25 + $0x9c] sm:$0xf] %v2238_v35  ;;  %v2080_v19 = vsel %vm3528_vm5, 0, %v1927_v11  ;;  %v2097_v29 = vsel %vm3528_vm5, %v1927_v11, 0  ;;  %v1726_v35 = vadd.f32 %v1725_v24, %v3703_v14  ;;  %v1766_v14 = vmul.f32 %v3720_v23, %v3720_v23 }
 0x239   : > { %2341 = vst [vmem:[%s3540_s25 + $0xa0] sm:$0xf] %v2239_v2  ;;  %v1903_v12 = vunpack.c.l.b16 %v1839_v33  ;;  %v2148_v6 = vunpack.c.l.b16 %v2080_v19  ;;  %v2149_v0 = vunpack.c.h.b16 %v2080_v19  ;;  %v1765_v2 = vmul.f32 %v3709_v32, %v3709_v32 }
 0x23a   : > { %v1517_v42 = vpop.f32.mrf.mxu2  ;;  %v1604_v1 = vpop.f32.mrf.mxu3  ;;  %v1727_v45 = vadd.f32 %v1726_v35, %v3709_v32 }
 0x23b   : > { %v1921_v31 = vpack.c.b16 %v1903_v12, %v1902_v21  ;;  %v1605_v17 = vadd.f32 %v1604_v1, %v1516_v44  ;;  %v1518_v54 = vadd.f32 %v1517_v42, %v1429_v7  ;;  %v2199_v33 = vpack.c.b16 %v2148_v6, %v2148_v6 }
 0x23c   : > { %v2200_v61 = vpack.c.b16 %v2149_v0, %v2149_v0  ;;  %v1795_v12 = vadd.f32 %v1794_v13, %v1764_v34 }
 0x23d   : > { %v2023_v40 = vshrl.u32 %v1921_v31, 16  ;;  %v2026_v10 = vshll.u32 %v1921_v31, 16  ;;  %v1695_v59 = vpop.f32.mrf.mxu0  ;;  %v3747_v55 = vadd.f32 %v1693_v9, %v1605_v17  ;;  %v1431_v60 = vpop.f32.mrf.mxu1  ;;  %v2150_v9 = vunpack.c.l.b16 %v2097_v29  ;;  %2301 = vst [vmem:[%s3540_s25] sm:$0xf] %v2199_v33 }
 0x23e   : > { %v1432_v62 = vadd.f32 %v1431_v60, %v3839_v16  ;;  %2302 = vst [vmem:[%s3540_s25 + $0x4] sm:$0xf] %v2200_v61  ;;  %v1728_v17 = vadd.f32 %v1727_v45, %v3720_v23 }
 0x23f   : > { %v2025_v57 = vrot.slane %v2023_v40, 7  ;;  %v1840_v52 = vpack.c.bf16 %v3747_v55, %v3747_v55  ;;  %v2201_v44 = vpack.c.b16 %v2150_v9, %v2150_v9  ;;  %v1796_v40 = vadd.f32 %v1795_v12, %v1765_v2  ;;  %2352 = vst [vmem:[%s3540_s25 + $0xcc] sm:$0xf] %v2199_v33 }
 0x240   : > { %2353 = vst [vmem:[%s3540_s25 + $0xd0] sm:$0xf] %v2200_v61 }
 0x241   : > { %v2028_v27 = vor.u32 %v2026_v10, %v2025_v57  ;;  %v2111_v5 = vsel %vm3528_vm5, %v2025_v57, 0  ;;  %v1904_v49 = vunpack.c.l.b16 %v1840_v52  ;;  %2303 = vst [vmem:[%s3540_s25 + $0x8] sm:$0x1] %v2201_v44  ;;  %v1797_v48 = vadd.f32 %v1796_v40, %v1766_v14 }
 0x242   : > { %v2192_v38 = vunpack.c.l.b16 %v2111_v5  ;;  %v1606_v37 = vpop.f32.mrf.mxu3  ;;  %v1520_v50 = vpop.f32.mrf.mxu2  ;;  %v1729_v57 = vadd.f32 %v1728_v17, %v3726_v41  ;;  %v1768_v10 = vmul.f32 %v3747_v55, %v3747_v55  ;;  %2354 = vst [vmem:[%s3540_s25 + $0xd4] sm:$0x1] %v2201_v44 }
 0x243   : > { %v2094_v8 = vsel %vm3528_vm5, 0, %v2028_v27  ;;  %v1607_v53 = vadd.f32 %v1606_v37, %v1518_v54  ;;  %v1521_v21 = vadd.f32 %v1520_v50, %v1432_v62  ;;  %v1798_v27 = vadd.f32 %v1797_v48, %v1767_v15 }
 0x244   : > { %v2190_v36 = vunpack.c.l.b16 %v2094_v8  ;;  %v2191_v39 = vunpack.c.h.b16 %v2094_v8  ;;  %v2243_v56 = vpack.c.b16 %v2192_v38, %v2192_v38  ;;  %v1730_v5 = vadd.f32 %v1729_v57, %v3747_v55 }
 0x245   : > { %v1696_v47 = vadd.f32 %v1695_v59, %v1607_v53  ;;  %v1698_v42 = vpop.f32.mrf.mxu0  ;;  %v1433_v20 = vpop.f32.mrf.mxu1  ;;  %v1799_v38 = vadd.f32 %v1798_v27, %v1768_v10 }
 0x246   : > { %v2241_v22 = vpack.c.b16 %v2190_v36, %v2190_v36  ;;  %v2242_v3 = vpack.c.b16 %v2191_v39, %v2191_v39  ;;  %2345 = vst [vmem:[%s3540_s25 + $0xb0] sm:$0x1] %v2243_v56  ;;  %v1434_v59 = vadd.f32 %v1433_v20, %v3840_v28 }
 0x247   : > { %v1841_v51 = vpack.c.bf16 %v1696_v47, %v1696_v47  ;;  %v1769_v54 = vmul.f32 %v1696_v47, %v1696_v47  ;;  %v1731_v18 = vadd.f32 %v1730_v5, %v1696_v47 }
 0x248   : > { %2343 = vst [vmem:[%s3540_s25 + $0xa8] sm:$0xf] %v2241_v22 }
 0x249   : > { %2344 = vst [vmem:[%s3540_s25 + $0xac] sm:$0xf] %v2242_v3  ;;  %v1905_v26 = vunpack.c.l.b16 %v1841_v51  ;;  %v1800_v39 = vadd.f32 %v1799_v38, %v1769_v54 }
 0x24a   : > { %v1609_v1 = vpop.f32.mrf.mxu3  ;;  %v1522_v30 = vpop.f32.mrf.mxu2 }
 0x24b   : > { %v1922_v31 = vpack.c.b16 %v1905_v26, %v1904_v49  ;;  %v1610_v4 = vadd.f32 %v1609_v1, %v1521_v21  ;;  %v1523_v41 = vadd.f32 %v1522_v30, %v1434_v59 }
 0x24d   : > { %v2030_v32 = vshrl.u32 %v1922_v31, 16  ;;  %v2033_v63 = vshll.u32 %v1922_v31, 16  ;;  %v1699_v23 = vadd.f32 %v1698_v42, %v1610_v4  ;;  %v1700_v36 = vpop.f32.mrf.mxu0 }
 0x24f   : > { %v2032_v7 = vrot.slane %v2030_v32, 7  ;;  %v1770_v53 = vmul.f32 %v1699_v23, %v1699_v23  ;;  %v1732_v56 = vadd.f32 %v1731_v18, %v1699_v23  ;;  %v1842_v50 = vpack.c.bf16 %v1699_v23, %v1699_v23 }
 0x251   : > { %v2035_v25 = vor.u32 %v2033_v63, %v2032_v7  ;;  %v2112_v46 = vsel %vm3528_vm5, %v2032_v7, 0  ;;  %v1801_v34 = vadd.f32 %v1800_v39, %v1770_v53  ;;  %v1906_v6 = vunpack.c.l.b16 %v1842_v50 }
 0x252   : > { %v2195_v60 = vunpack.c.l.b16 %v2112_v46  ;;  %v1611_v37 = vpop.f32.mrf.mxu3 }
 0x253   : > { %v2095_v8 = vsel %vm3528_vm5, 0, %v2035_v25  ;;  %v1612_v58 = vadd.f32 %v1611_v37, %v1523_v41 }
 0x254   : > { %v2193_v11 = vunpack.c.l.b16 %v2095_v8  ;;  %v2194_v55 = vunpack.c.h.b16 %v2095_v8  ;;  %v2246_v24 = vpack.c.b16 %v2195_v60, %v2195_v60 }
 0x255   : > { %v1701_v52 = vadd.f32 %v1700_v36, %v1612_v58 }
 0x256   : > { %v2244_v19 = vpack.c.b16 %v2193_v11, %v2193_v11  ;;  %v2245_v29 = vpack.c.b16 %v2194_v55, %v2194_v55  ;;  %2348 = vst [vmem:[%s3540_s25 + $0xbc] sm:$0x1] %v2246_v24 }
 0x257   : > { %v1733_v47 = vadd.f32 %v1732_v56, %v1701_v52  ;;  %v1771_v22 = vmul.f32 %v1701_v52, %v1701_v52  ;;  %v1843_v3 = vpack.c.bf16 %v1701_v52, %v1701_v52 }
 0x258   : > { %2346 = vst [vmem:[%s3540_s25 + $0xb4] sm:$0xf] %v2244_v19 }
 0x259   : > { %2347 = vst [vmem:[%s3540_s25 + $0xb8] sm:$0xf] %v2245_v29  ;;  %v1734_v13 = vrot.slane %v1733_v47, 4  ;;  %v1802_v16 = vadd.f32 %v1801_v34, %v1771_v22  ;;  %v1907_v62 = vunpack.c.l.b16 %v1843_v3 }
 0x25b   : > { %v1735_v51 = vadd.f32 %v1734_v13, %v1733_v47  ;;  %v1803_v0 = vrot.slane %v1802_v16, 4  ;;  %v1923_v35 = vpack.c.b16 %v1907_v62, %v1906_v6 }
 0x25d   : > { %v1736_v2 = vrot.slane %v1735_v51, 2  ;;  %v1804_v9 = vadd.f32 %v1803_v0, %v1802_v16  ;;  %v2037_v33 = vshrl.u32 %v1923_v35, 16  ;;  %v2040_v61 = vshll.u32 %v1923_v35, 16 }
 0x25f   : > { %v1737_v49 = vadd.f32 %v1736_v2, %v1735_v51  ;;  %v1805_v21 = vrot.slane %v1804_v9, 2  ;;  %v2039_v26 = vrot.slane %v2037_v33, 7 }
 0x261   : > { %v1738_v12 = vrot.slane %v1737_v49, 1  ;;  %v1806_v45 = vadd.f32 %v1805_v21, %v1804_v9  ;;  %v2042_v14 = vor.u32 %v2040_v61, %v2039_v26  ;;  %v2113_v42 = vsel %vm3528_vm5, %v2039_v26, 0 }
 0x262   : > { %v2198_v1 = vunpack.c.l.b16 %v2113_v42 }
 0x263   : > { %v1807_v44 = vrot.slane %v1806_v45, 1  ;;  %v2096_v31 = vsel %vm3528_vm5, 0, %v2042_v14  ;;  %v1739_v15 = vadd.f32 %v1738_v12, %v1737_v49 }
 0x264   : > { %v2196_v4 = vunpack.c.l.b16 %v2096_v31  ;;  %v2197_v40 = vunpack.c.h.b16 %v2096_v31  ;;  %v2249_v17 = vpack.c.b16 %v2198_v1, %v2198_v1 }
 0x265   : > { %v1808_v20 = vadd.f32 %v1807_v44, %v1806_v45 }
 0x266   : > { %v2247_v32 = vpack.c.b16 %v2196_v4, %v2196_v4  ;;  %v2248_v48 = vpack.c.b16 %v2197_v40, %v2197_v40  ;;  %2351 = vst [vmem:[%s3540_s25 + $0xc8] sm:$0x1] %v2249_v17 }
 0x267   : > { %v1810_v57 = vsel %vm1809_vm3, %v1739_v15, %v1808_v20 }
 0x268   : > { %1811 = vst [vmem:[%s181_s28] sm:$0x3] %v1810_v57 }
 0x269   : > { %2349 = vst [vmem:[%s3540_s25 + $0xc0] sm:$0xf] %v2247_v32 }
 0x26a   : > { %2350 = vst [vmem:[%s3540_s25 + $0xc4] sm:$0xf] %v2248_v48 }
 0x26b PF: > { %s14_s12 = sadd.s32 1, %s2778_s12  }
 0x26c   : > { %p11_p4 = scmp.ge.s32.totalorder %s14_s12, 4  }
 0x26e   :  { %13 = sbr.rel (!%p11_p4) target bundleno = 1 (0x1), region = 70 }

// kernel: resblock_forward.5
= control target key start
LH: loop header
LB: loop body
LE: loop exit
PB: predicated region body
PF: predicated region fallthrough
CT: control target
= control target key end

     0   :  { %s3552_s15 = smov 0   ;;  %s4639_s0 = inlined_call_operand.vmem [shape: bf16[2,18,18,128], index: 0, kind: input, shape index: {}]   ;;  %s4640_s1 = inlined_call_operand.vmem [shape: bf16[1152,128], index: 1, kind: input, shape index: {}]   ;;  %s4641_s2 = inlined_call_operand.vmem [shape: f32[2,128], index: 2, kind: input, shape index: {}]   ;;  %s4642_s3 = inlined_call_operand.vmem [shape: bf16[2,16,16,128], index: 3, kind: output, shape index: {0}]   ;;  %s4643_s4 = inlined_call_operand.vmem [shape: f32[2,2,128], index: 4, kind: output, shape index: {1}]  }
   0x1 LB: > { %s2973_s16 = sadd.s32 4294967295, %s3524_s15   ;;  %p2977_p0 = scmp.ge.s32.totalorder %s3524_s15, 1  ;;  %s3524_s15 = sphi %s3552_s15, %s15_s15  }
   0x2   : > { %p165_p1 = scmp.lt.s32.totalorder %s3524_s15, 3 }
   0x4   : > { %p166_p2 = pnand %p2977_p0, %p165_p1 }
   0x6   : > { %169 = sbr.rel (%p166_p2) target bundleno = 818 (0x332), region = 32 }
   0xb   : > { %v3280_v0 = vld [vmem:[%s4640_s1 + $0x38] sm:$0xff]  ;;  %p195_p3 = scmp.lt.s32.totalorder %s2973_s16, 1  ;;  %v3279_v1 = vld [vmem:[%s4640_s1 + $0x30] sm:$0xff]  ;;  %v3278_v2 = vld [vmem:[%s4640_s1 + $0x28] sm:$0xff]  ;;  %vm976_vm0 = vcmask 1040384   ;;  %vm1253_vm4 = vcmask 1046528  }
   0xc   : > { %3480 = vmatpush.bf16.msra.mxu1 %v3280_v0  ;;  %3481 = vmatpush.bf16.msra.mxu2 %v3280_v0  ;;  %v3580_v3 = vld [vmem:[%s4641_s2] ss:$0 sm:$0xff]  ;;  %v3585_v4 = vld [vmem:[%s4641_s2 + $0x1] ss:$0 sm:$0xff]  ;;  %vm977_vm1 = vsmask.f32 256 }
   0xd   : > { %s4749_s16 = smov (!%p195_p3, %s2973_s16), 1  ;;  %3482 = vmatpush.bf16.msra.mxu3 %v3280_v0  ;;  %1913 = vmatpush.bf16.msra.mxu0 %v3280_v0  ;;  %v3277_v19 = vld [vmem:[%s4640_s1 + $0x20] sm:$0xff]  ;;  %v3276_v35 = vld [vmem:[%s4640_s1 + $0x18] sm:$0xff]  ;;  %vm630_vm2 = vsmask.f32 7424  ;;  %v3275_v52 = vld [vmem:[%s4640_s1 + $0x10] sm:$0xff] }
   0xe   : > { %s3504_s21 = smul.u32 216, %s4749_s16  ;;  %vm3628_vm3 = vmand %vm976_vm0, %vm977_vm1  ;;  %s3272_s8 = sshll.u32 %s4749_s16, 7 }
   0xf   : > { %s4557_s11 = scalar_lea.vmem %s4642_s3, %s3272_s8  ;;  %s2981_s12 = sshll.u32 %s4749_s16, 1 }
  0x10   : > { %3483 = vmatpush.bf16.msra.mxu1 %v3279_v1  ;;  %3484 = vmatpush.bf16.msra.mxu2 %v3279_v1  ;;  %s3575_s26 = scalar_lea.vmem %s4639_s0, %s3504_s21  ;;  %s208_s17 = scalar_lea.vmem %s4643_s4, %s2981_s12 }
  0x11   : > { %3485 = vmatpush.bf16.msra.mxu3 %v3279_v1  ;;  %1914 = vmatpush.bf16.msra.mxu0 %v3279_v1  ;;  %v3458_v5 = vld [vmem:[%s3575_s26 + $0x30] sm:$0xff]   ;;  %v221_v6 = vld [vmem:[%s3575_s26 + $0x38] sm:$0x1]  ;;  %v3460_v7 = vld [vmem:[%s3575_s26 + $0x60] sm:$0xff]  }
  0x12   : > { %v3351_v8 = vunpack.c.l.bf16 %v3458_v5  ;;  %v3352_v9 = vunpack.c.h.bf16 %v3458_v5  ;;  %v269_v10 = vunpack.c.l.bf16 %v221_v6  ;;  %v3359_v11 = vunpack.c.l.bf16 %v3460_v7  ;;  %v233_v12 = vld [vmem:[%s3575_s26 + $0x68] sm:$0x1]  ;;  %v3462_v13 = vld [vmem:[%s3575_s26 + $0x90] sm:$0xff]   ;;  %v245_v14 = vld [vmem:[%s3575_s26 + $0x98] sm:$0x1] }
  0x13   : > { %v3360_v15 = vunpack.c.h.bf16 %v3460_v7  ;;  %v281_v16 = vunpack.c.l.bf16 %v233_v12  ;;  %v3367_v17 = vunpack.c.l.bf16 %v3462_v13  ;;  %v3368_v18 = vunpack.c.h.bf16 %v3462_v13  ;;  %v222_v13 = vld [vmem:[%s3575_s26 + $0x3c] sm:$0xff]  }
  0x14   : > { %3486 = vmatpush.bf16.msra.mxu1 %v3278_v2  ;;  %3487 = vmatpush.bf16.msra.mxu2 %v3278_v2  ;;  %v317_v20 = vmul.f32 %v3580_v3, %v3351_v8  ;;  %v318_v21 = vmul.f32 %v3580_v3, %v3352_v9  ;;  %v319_v22 = vmul.f32 %v3580_v3, %v269_v10  ;;  %v293_v23 = vunpack.c.l.bf16 %v245_v14  ;;  %v3274_v8 = vld [vmem:[%s4640_s1 + $0x8] sm:$0xff] }
  0x15   : > { %3488 = vmatpush.bf16.msra.mxu3 %v3278_v2  ;;  %1915 = vmatpush.bf16.msra.mxu0 %v3278_v2  ;;  %v329_v24 = vmul.f32 %v3580_v3, %v3359_v11  ;;  %v330_v25 = vmul.f32 %v3580_v3, %v3360_v15  ;;  %v331_v26 = vmul.f32 %v3580_v3, %v281_v16  ;;  %v3526_v6 = vmov 0  }
  0x16   : > { %v367_v27 = vadd.f32 %v3585_v4, %v317_v20  ;;  %v368_v28 = vadd.f32 %v3585_v4, %v318_v21  ;;  %v369_v29 = vadd.f32 %v3585_v4, %v319_v22  ;;  %v341_v30 = vmul.f32 %v3580_v3, %v3367_v17 }
  0x17   : > { %v379_v31 = vadd.f32 %v3585_v4, %v329_v24  ;;  %v380_v32 = vadd.f32 %v3585_v4, %v330_v25  ;;  %v381_v33 = vadd.f32 %v3585_v4, %v331_v26  ;;  %v342_v34 = vmul.f32 %v3580_v3, %v3368_v18  ;;  %v3634_v24 = vld [vmem:[%s3575_s26 + $0x6c] sm:$0xff]  }
  0x18   : > { %3489 = vmatpush.bf16.msra.mxu1 %v3277_v19  ;;  %3490 = vmatpush.bf16.msra.mxu2 %v3277_v19  ;;  %v415_v36 = vmax.f32 %v367_v27, 0.0  ;;  %v416_v37 = vmax.f32 %v368_v28, 0.0  ;;  %v417_v38 = vmax.f32 %v369_v29, 0.0  ;;  %v343_v39 = vmul.f32 %v3580_v3, %v293_v23  ;;  %v224_v23 = vld [vmem:[%s3575_s26 + $0x44] sm:$0x1] }
  0x19   : > { %3491 = vmatpush.bf16.msra.mxu3 %v3277_v19  ;;  %1916 = vmatpush.bf16.msra.mxu0 %v3277_v19  ;;  %v427_v40 = vmax.f32 %v379_v31, 0.0  ;;  %v428_v41 = vmax.f32 %v380_v32, 0.0  ;;  %v429_v42 = vmax.f32 %v381_v33, 0.0  ;;  %v391_v43 = vadd.f32 %v3585_v4, %v341_v30  ;;  %v3273_v29 = vld [vmem:[%s4640_s1] sm:$0xff] }
  0x1a   : > { %v463_v44 = vpack.c.bf16 %v415_v36, %v415_v36  ;;  %v464_v45 = vpack.c.bf16 %v416_v37, %v416_v37  ;;  %v465_v46 = vpack.c.bf16 %v417_v38, %v417_v38  ;;  %v392_v47 = vadd.f32 %v3585_v4, %v342_v34 }
  0x1b   : > { %v475_v48 = vpack.c.bf16 %v427_v40, %v427_v40  ;;  %v476_v49 = vpack.c.bf16 %v428_v41, %v428_v41  ;;  %v477_v50 = vpack.c.bf16 %v429_v42, %v429_v42  ;;  %v393_v51 = vadd.f32 %v3585_v4, %v343_v39  ;;  %v3296_v42 = vld [vmem:[%s4640_s1 + $0xb8] sm:$0xff] }
  0x1c   : > { %3492 = vmatpush.bf16.msra.mxu1 %v3276_v35  ;;  %3493 = vmatpush.bf16.msra.mxu2 %v3276_v35  ;;  %v559_v53 = vunpack.c.l.b16 %v463_v44  ;;  %v560_v54 = vunpack.c.l.b16 %v464_v45  ;;  %v561_v55 = vunpack.c.l.b16 %v465_v46  ;;  %v439_v56 = vmax.f32 %v391_v43, 0.0  ;;  %v3304_v43 = vld [vmem:[%s4640_s1 + $0xf8] sm:$0xff] }
  0x1d   : > { %3494 = vmatpush.bf16.msra.mxu3 %v3276_v35  ;;  %1917 = vmatpush.bf16.msra.mxu0 %v3276_v35  ;;  %v571_v57 = vunpack.c.l.b16 %v475_v48  ;;  %v572_v58 = vunpack.c.l.b16 %v476_v49  ;;  %v573_v59 = vunpack.c.l.b16 %v477_v50  ;;  %v440_v60 = vmax.f32 %v392_v47, 0.0  ;;  %v3288_v47 = vld [vmem:[%s4640_s1 + $0x78] sm:$0xff]  ;;  %v236_v50 = vld [vmem:[%s3575_s26 + $0x74] sm:$0x1] }
  0x1e   : > { %v604_v61 = vpack.c.b16 %v560_v54, %v559_v53  ;;  %v605_v62 = vpack.c.b16 %v561_v55, %v561_v55  ;;  %v441_v63 = vmax.f32 %v393_v51, 0.0  ;;  %v487_v0 = vpack.c.bf16 %v439_v56, %v439_v56  ;;  %v3312_v48 = vld [vmem:[%s4640_s1 + $0x138] sm:$0xff] }
  0x1f   : > { %v612_v1 = vpack.c.b16 %v572_v58, %v571_v57  ;;  %v613_v2 = vpack.c.b16 %v573_v59, %v573_v59  ;;  %v488_v5 = vpack.c.bf16 %v440_v60, %v440_v60  ;;  %v3620_v7 = vrot.slane %v3526_v6, 7 }
  0x20   : > { %3495 = vmatpush.bf16.msra.mxu1 %v3275_v52  ;;  %3496 = vmatpush.bf16.msra.mxu2 %v3275_v52  ;;  %v668_v9 = vshrl.u32 %v604_v61, 16  ;;  %v670_v10 = vshll.u32 %v604_v61, 16  ;;  %v675_v11 = vshll.u32 %v605_v62, 16  ;;  %v489_v12 = vpack.c.bf16 %v441_v63, %v441_v63  ;;  %v3295_v61 = vld [vmem:[%s4640_s1 + $0xb0] sm:$0xff] }
  0x21   : > { %3497 = vmatpush.bf16.msra.mxu3 %v3275_v52  ;;  %1918 = vmatpush.bf16.msra.mxu0 %v3275_v52  ;;  %v716_v14 = vshrl.u32 %v612_v1, 16  ;;  %v718_v15 = vshll.u32 %v612_v1, 16  ;;  %v723_v16 = vshll.u32 %v613_v2, 16  ;;  %v583_v17 = vunpack.c.l.b16 %v487_v0  ;;  %v3303_v1 = vld [vmem:[%s4640_s1 + $0xf0] sm:$0xff] }
  0x22   : > { %v672_v18 = vrot.slane %v670_v10, 1  ;;  %v677_v19 = vrot.slane %v675_v11, 1  ;;  %v584_v21 = vunpack.c.l.b16 %v488_v5  ;;  %v585_v22 = vunpack.c.l.b16 %v489_v12  ;;  %v3287_v10 = vld [vmem:[%s4640_s1 + $0x70] sm:$0xff] }
  0x23   : > { %v720_v25 = vrot.slane %v718_v15, 1  ;;  %v725_v26 = vrot.slane %v723_v16, 1  ;;  %v3639_v27 = vsel %vm3628_vm3, 0, %v3620_v7  ;;  %v270_v28 = vunpack.c.l.bf16 %v222_v13 }
  0x24   : > { %4674 = vst [vmem:[#allocation2_spill] sm:$0xff] %v3639_v27  ;;  %3498 = vmatpush.bf16.msra.mxu1 %v3274_v8  ;;  %3499 = vmatpush.bf16.msra.mxu2 %v3274_v8  ;;  %v673_v30 = vor.u32 %v672_v18, %v668_v9  ;;  %v620_v31 = vpack.c.b16 %v584_v21, %v583_v17  ;;  %v271_v33 = vunpack.c.h.bf16 %v222_v13  ;;  %v272_v35 = vunpack.c.l.bf16 %v224_v23  ;;  %v246_v17 = vld [vmem:[%s3575_s26 + $0x9c] sm:$0xff]  }
  0x25   : > { %v621_v32 = vpack.c.b16 %v585_v22, %v585_v22  ;;  %3500 = vmatpush.bf16.msra.mxu3 %v3274_v8  ;;  %1919 = vmatpush.bf16.msra.mxu0 %v3274_v8  ;;  %v721_v34 = vor.u32 %v720_v25, %v716_v14  ;;  %v320_v36 = vmul.f32 %v3580_v3, %v270_v28  ;;  %v282_v37 = vunpack.c.l.bf16 %v3634_v24  ;;  %v248_v28 = vld [vmem:[%s3575_s26 + $0xa4] sm:$0x1] }
  0x26   : > { %v678_v38 = vsel %vm630_vm2, %v673_v30, %v677_v19  ;;  %v764_v39 = vshrl.u32 %v620_v31, 16  ;;  %v766_v40 = vshll.u32 %v620_v31, 16  ;;  %v321_v49 = vmul.f32 %v3580_v3, %v271_v33 }
  0x27   : > { %v771_v41 = vshll.u32 %v621_v32, 16  ;;  %v852_v44 = vshrl.u32 %v678_v38, 16  ;;  %v855_v45 = vshll.u32 %v678_v38, 16  ;;  %v726_v46 = vsel %vm630_vm2, %v721_v34, %v725_v26 }
  0x28   : > { %3501 = vmatpush.bf16.msra.mxu1 %v3273_v29  ;;  %3502 = vmatpush.bf16.msra.mxu2 %v3273_v29  ;;  %v880_v51 = vshrl.u32 %v726_v46, 16  ;;  %v883_v52 = vshll.u32 %v726_v46, 16  ;;  %v768_v53 = vrot.slane %v766_v40, 1  ;;  %v322_v56 = vmul.f32 %v3580_v3, %v272_v35 }
  0x29   : > { %v773_v54 = vrot.slane %v771_v41, 1  ;;  %3503 = vmatpush.bf16.msra.mxu3 %v3273_v29  ;;  %1920 = vmatpush.bf16.msra.mxu0 %v3273_v29  ;;  %v3662_v55 = vrot.slane %v852_v44, 7  ;;  %v370_v57 = vadd.f32 %v3585_v4, %v320_v36  ;;  %v371_v58 = vadd.f32 %v3585_v4, %v321_v49  ;;  %v3294_v29 = vld [vmem:[%s4640_s1 + $0xa8] sm:$0xff] }
  0x2a   : > { %v3667_v59 = vrot.slane %v880_v51, 7  ;;  %v769_v60 = vor.u32 %v768_v53, %v764_v39  ;;  %v283_v62 = vunpack.c.h.bf16 %v3634_v24  ;;  %v284_v63 = vunpack.c.l.bf16 %v236_v50  ;;  %v210_v50 = vld [vmem:[%s3575_s26 + $0xc] sm:$0xff]  }
  0x2b   : > { %v857_v0 = vor.u32 %v855_v45, %v3662_v55  ;;  %v372_v2 = vadd.f32 %v3585_v4, %v322_v56  ;;  %v418_v5 = vmax.f32 %v370_v57, 0.0  ;;  %v419_v6 = vmax.f32 %v371_v58, 0.0 }
  0x2c   : > { %2091 = vmatpush.bf16.msrb.mxu2 %v3296_v42  ;;  %2002 = vmatpush.bf16.msrb.mxu1 %v3288_v47  ;;  %v885_v8 = vor.u32 %v883_v52, %v3667_v59  ;;  %v774_v9 = vsel %vm630_vm2, %v769_v60, %v773_v54  ;;  %v332_v11 = vmul.f32 %v3580_v3, %v282_v37  ;;  %v294_v33 = vunpack.c.l.bf16 %v246_v17 }
  0x2d   : > { %2180 = vmatpush.bf16.msrb.mxu3 %v3304_v43  ;;  %2269 = vmatpush.bf16.msrb.mxu0 %v3312_v48  ;;  %v333_v12 = vmul.f32 %v3580_v3, %v283_v62  ;;  %v3688_v13 = vsel %vm3628_vm3, 0, %v857_v0  ;;  %v908_v14 = vshrl.u32 %v774_v9, 16  ;;  %v911_v15 = vshll.u32 %v774_v9, 16  ;;  %v3311_v9 = vld [vmem:[%s4640_s1 + $0x130] sm:$0xff] }
  0x2e   : > { %1921 = vmatmul.bf16.vlgmr.msra.gmra.mxu0 %v3639_v27  ;;  %v420_v16 = vmax.f32 %v372_v2, 0.0  ;;  %1941 = vmatmul.bf16.vlgmr.msra.gmra.mxu1 %v3688_v13  ;;  %v3694_v18 = vsel %vm3628_vm3, 0, %v885_v8  ;;  %v466_v19 = vpack.c.bf16 %v418_v5, %v418_v5  ;;  %v467_v21 = vpack.c.bf16 %v419_v6, %v419_v6  ;;  %v3302_v8 = vld [vmem:[%s4640_s1 + $0xe8] sm:$0xff] }
  0x2f   : > { %4675 = vst [vmem:[#allocation3_spill] sm:$0xff] %v3694_v18  ;;  %v334_v22 = vmul.f32 %v3580_v3, %v284_v63  ;;  %1961 = vmatmul.bf16.vlgmr.msra.gmra.mxu2 %v3694_v18  ;;  %v3698_v23 = vrot.slane %v908_v14, 7  ;;  %v382_v25 = vadd.f32 %v3585_v4, %v332_v11  ;;  %v383_v26 = vadd.f32 %v3585_v4, %v333_v12 }
  0x30   : > { %2092 = vmatpush.bf16.msrb.mxu2 %v3295_v61  ;;  %v468_v24 = vpack.c.bf16 %v420_v16, %v420_v16  ;;  %2003 = vmatpush.bf16.msrb.mxu1 %v3287_v10  ;;  %v562_v30 = vunpack.c.l.b16 %v466_v19  ;;  %v563_v31 = vunpack.c.l.b16 %v467_v21  ;;  %v295_v40 = vunpack.c.h.bf16 %v246_v17  ;;  %v3286_v10 = vld [vmem:[%s4640_s1 + $0x68] sm:$0xff]  ;;  %v3293_v17 = vld [vmem:[%s4640_s1 + $0xa0] sm:$0xff] }
  0x31   : > { %2181 = vmatpush.bf16.msrb.mxu3 %v3303_v1  ;;  %v384_v32 = vadd.f32 %v3585_v4, %v334_v22  ;;  %v913_v34 = vor.u32 %v911_v15, %v3698_v23  ;;  %v430_v36 = vmax.f32 %v382_v25, 0.0  ;;  %v431_v37 = vmax.f32 %v383_v26, 0.0  ;;  %v212_v15 = vld [vmem:[%s3575_s26 + $0x14] sm:$0x1]  ;;  %2270 = vmatpush.bf16.msrb.mxu0 %v3311_v9  ;;  %v3301_v25 = vld [vmem:[%s4640_s1 + $0xe0] sm:$0xff]  ;;  %v3310_v26 = vld [vmem:[%s4640_s1 + $0x128] sm:$0xff] }
  0x32   : > { %v564_v35 = vunpack.c.l.b16 %v468_v24  ;;  %v606_v38 = vpack.c.b16 %v563_v31, %v562_v30  ;;  %v296_v41 = vunpack.c.l.bf16 %v248_v28  ;;  %v344_v49 = vmul.f32 %v3580_v3, %v294_v33  ;;  %v3459_v33 = vld [vmem:[%s3575_s26 + $0x48] sm:$0xff]  }
  0x33   : > { %v432_v39 = vmax.f32 %v384_v32, 0.0  ;;  %v3710_v42 = vsel %vm3628_vm3, 0, %v913_v34  ;;  %v478_v44 = vpack.c.bf16 %v430_v36, %v430_v36  ;;  %v479_v45 = vpack.c.bf16 %v431_v37, %v431_v37  ;;  %v3285_v32 = vld [vmem:[%s4640_s1 + $0x60] sm:$0xff] }
  0x34   : > { %2093 = vmatpush.bf16.msrb.mxu2 %v3294_v29  ;;  %4676 = vst [vmem:[#allocation4_spill] sm:$0xff] %v3710_v42  ;;  %v607_v43 = vpack.c.b16 %v564_v35, %v564_v35  ;;  %1981 = vmatmul.bf16.vlgmr.msra.gmra.mxu3 %v3710_v42  ;;  %v680_v46 = vshrl.u32 %v606_v38, 16  ;;  %v682_v47 = vshll.u32 %v606_v38, 16  ;;  %v345_v54 = vmul.f32 %v3580_v3, %v295_v40 }
  0x35   : > { %v480_v48 = vpack.c.bf16 %v432_v39, %v432_v39  ;;  %v574_v52 = vunpack.c.l.b16 %v478_v44  ;;  %v575_v53 = vunpack.c.l.b16 %v479_v45  ;;  %v346_v58 = vmul.f32 %v3580_v3, %v296_v41  ;;  %2182 = vmatpush.bf16.msrb.mxu3 %v3302_v8  ;;  %2004 = vmatpush.bf16.msrb.mxu1 %v3286_v10 }
  0x36   : > { %v687_v51 = vshll.u32 %v607_v43, 16  ;;  %v684_v56 = vrot.slane %v682_v47, 1  ;;  %v394_v60 = vadd.f32 %v3585_v4, %v344_v49  ;;  %v395_v63 = vadd.f32 %v3585_v4, %v345_v54  ;;  %2271 = vmatpush.bf16.msrb.mxu0 %v3310_v26 }
  0x37   : > { %v576_v57 = vunpack.c.l.b16 %v480_v48  ;;  %v614_v62 = vpack.c.b16 %v575_v53, %v574_v52  ;;  %v258_v0 = vunpack.c.l.bf16 %v210_v50  ;;  %v396_v5 = vadd.f32 %v3585_v4, %v346_v58 }
  0x38   : > { %v689_v61 = vrot.slane %v687_v51, 1  ;;  %v685_v1 = vor.u32 %v684_v56, %v680_v46  ;;  %v442_v6 = vmax.f32 %v394_v60, 0.0  ;;  %v443_v14 = vmax.f32 %v395_v63, 0.0  ;;  %2094 = vmatpush.bf16.msrb.mxu2 %v3293_v17  ;;  %v227_v56 = vld [vmem:[%s3575_s26 + $0x50] sm:$0x1] }
  0x39   : > { %v615_v2 = vpack.c.b16 %v576_v57, %v576_v57  ;;  %v728_v11 = vshrl.u32 %v614_v62, 16  ;;  %v730_v12 = vshll.u32 %v614_v62, 16  ;;  %v259_v16 = vunpack.c.h.bf16 %v210_v50  ;;  %2183 = vmatpush.bf16.msrb.mxu3 %v3301_v25  ;;  %2005 = vmatpush.bf16.msrb.mxu1 %v3285_v32  ;;  %v3461_v25 = vld [vmem:[%s3575_s26 + $0x78] sm:$0xff]  }
  0x3a   : > { %v690_v19 = vsel %vm630_vm2, %v685_v1, %v689_v61  ;;  %v444_v22 = vmax.f32 %v396_v5, 0.0  ;;  %v490_v24 = vpack.c.bf16 %v442_v6, %v442_v6  ;;  %v491_v31 = vpack.c.bf16 %v443_v14, %v443_v14 }
  0x3b   : > { %v735_v21 = vshll.u32 %v615_v2, 16  ;;  %v859_v28 = vshrl.u32 %v690_v19, 16  ;;  %v862_v29 = vshll.u32 %v690_v19, 16  ;;  %v732_v30 = vrot.slane %v730_v12, 1 }
  0x3c   : > { %v492_v35 = vpack.c.bf16 %v444_v22, %v444_v22  ;;  %v586_v36 = vunpack.c.l.b16 %v490_v24  ;;  %v260_v37 = vunpack.c.l.bf16 %v212_v15  ;;  %v587_v40 = vunpack.c.l.b16 %v491_v31 }
  0x3d   : > { %v737_v34 = vrot.slane %v735_v21, 1  ;;  %v3744_v38 = vrot.slane %v859_v28, 7  ;;  %v733_v39 = vor.u32 %v732_v30, %v728_v11  ;;  %v308_v41 = vmul.f32 %v3580_v3, %v258_v0 }
  0x3e   : > { %v588_v43 = vunpack.c.l.b16 %v492_v35  ;;  %v309_v44 = vmul.f32 %v3580_v3, %v259_v16  ;;  %v310_v45 = vmul.f32 %v3580_v3, %v260_v37  ;;  %v3355_v46 = vunpack.c.l.bf16 %v3459_v33 }
  0x3f   : > { %v864_v47 = vor.u32 %v862_v29, %v3744_v38  ;;  %v738_v48 = vsel %vm630_vm2, %v733_v39, %v737_v34  ;;  %v622_v49 = vpack.c.b16 %v587_v40, %v586_v36  ;;  %v358_v50 = vadd.f32 %v3585_v4, %v308_v41  ;;  %v239_v40 = vld [vmem:[%s3575_s26 + $0x80] sm:$0x1] }
  0x40   : > { %v887_v51 = vshrl.u32 %v738_v48, 16  ;;  %v890_v52 = vshll.u32 %v738_v48, 16  ;;  %v623_v53 = vpack.c.b16 %v588_v43, %v588_v43  ;;  %v359_v54 = vadd.f32 %v3585_v4, %v309_v44 }
  0x41   : > { %v3756_v57 = vsel %vm3628_vm3, 0, %v864_v47  ;;  %v776_v58 = vshrl.u32 %v622_v49, 16  ;;  %v778_v60 = vshll.u32 %v622_v49, 16  ;;  %v360_v61 = vadd.f32 %v3585_v4, %v310_v45 }
  0x42   : > { %4677 = vst [vmem:[#allocation5_spill] sm:$0xff] %v3756_v57  ;;  %1946 = vmatmul.bf16.gmra.mxu1 %v3756_v57  ;;  %v3760_v62 = vrot.slane %v887_v51, 7  ;;  %v783_v63 = vshll.u32 %v623_v53, 16  ;;  %v406_v0 = vmax.f32 %v358_v50, 0.0  ;;  %v407_v1 = vmax.f32 %v359_v54, 0.0  ;;  %v3463_v54 = vld [vmem:[%s3575_s26 + $0xa8] sm:$0xff]  }
  0x43   : > { %v780_v2 = vrot.slane %v778_v60, 1  ;;  %v408_v5 = vmax.f32 %v360_v61, 0.0  ;;  %v3356_v6 = vunpack.c.h.bf16 %v3459_v33  ;;  %v275_v8 = vunpack.c.l.bf16 %v227_v56 }
  0x44   : > { %v892_v9 = vor.u32 %v890_v52, %v3760_v62  ;;  %v785_v10 = vrot.slane %v783_v63, 1  ;;  %v454_v11 = vpack.c.bf16 %v406_v0, %v406_v0  ;;  %v455_v12 = vpack.c.bf16 %v407_v1, %v407_v1 }
  0x45   : > { %v781_v14 = vor.u32 %v780_v2, %v776_v58  ;;  %v456_v15 = vpack.c.bf16 %v408_v5, %v408_v5  ;;  %v323_v16 = vmul.f32 %v3580_v3, %v3355_v46  ;;  %v324_v17 = vmul.f32 %v3580_v3, %v3356_v6 }
  0x46   : > { %v3767_v19 = vsel %vm3628_vm3, 0, %v892_v9  ;;  %v550_v21 = vunpack.c.l.b16 %v454_v11  ;;  %v551_v22 = vunpack.c.l.b16 %v455_v12  ;;  %v325_v24 = vmul.f32 %v3580_v3, %v275_v8 }
  0x47   : > { %4678 = vst [vmem:[#allocation6_spill] sm:$0xff] %v3767_v19  ;;  %1966 = vmatmul.bf16.gmra.mxu2 %v3767_v19  ;;  %v786_v26 = vsel %vm630_vm2, %v781_v14, %v785_v10  ;;  %v552_v28 = vunpack.c.l.b16 %v456_v15  ;;  %v373_v29 = vadd.f32 %v3585_v4, %v323_v16  ;;  %v374_v30 = vadd.f32 %v3585_v4, %v324_v17  ;;  %v3292_v10 = vld [vmem:[%s4640_s1 + $0x98] sm:$0xff]  ;;  %v251_v16 = vld [vmem:[%s3575_s26 + $0xb0] sm:$0x1] }
  0x48   : > { %v915_v31 = vshrl.u32 %v786_v26, 16  ;;  %v918_v32 = vshll.u32 %v786_v26, 16  ;;  %v598_v33 = vpack.c.b16 %v551_v22, %v550_v21  ;;  %v375_v34 = vadd.f32 %v3585_v4, %v325_v24  ;;  %2095 = vmatpush.bf16.msrb.mxu2 %v3292_v10  ;;  %v3291_v10 = vld [vmem:[%s4640_s1 + $0x90] sm:$0xff] }
  0x49   : > { %v599_v35 = vpack.c.b16 %v552_v28, %v552_v28  ;;  %v421_v36 = vmax.f32 %v373_v29, 0.0  ;;  %v422_v37 = vmax.f32 %v374_v30, 0.0  ;;  %v3363_v39 = vunpack.c.l.bf16 %v3461_v25 }
  0x4a   : > { %v3777_v41 = vrot.slane %v915_v31, 7  ;;  %v632_v43 = vshrl.u32 %v598_v33, 16  ;;  %v634_v44 = vshll.u32 %v598_v33, 16  ;;  %v423_v45 = vmax.f32 %v375_v34, 0.0 }
  0x4b   : > { %v639_v46 = vshll.u32 %v599_v35, 16  ;;  %v469_v47 = vpack.c.bf16 %v421_v36, %v421_v36  ;;  %v470_v48 = vpack.c.bf16 %v422_v37, %v422_v37  ;;  %v3364_v49 = vunpack.c.h.bf16 %v3461_v25 }
  0x4c   : > { %v920_v50 = vor.u32 %v918_v32, %v3777_v41  ;;  %v636_v51 = vrot.slane %v634_v44, 1  ;;  %v471_v52 = vpack.c.bf16 %v423_v45, %v423_v45  ;;  %v287_v53 = vunpack.c.l.bf16 %v239_v40  ;;  %2096 = vmatpush.bf16.msrb.mxu2 %v3291_v10 }
  0x4d   : > { %v641_v56 = vrot.slane %v639_v46, 1  ;;  %v565_v58 = vunpack.c.l.b16 %v469_v47  ;;  %v566_v60 = vunpack.c.l.b16 %v470_v48  ;;  %v335_v61 = vmul.f32 %v3580_v3, %v3363_v39 }
  0x4e   : > { %v3784_v63 = vsel %vm3628_vm3, 0, %v920_v50  ;;  %v637_v0 = vor.u32 %v636_v51, %v632_v43  ;;  %v567_v1 = vunpack.c.l.b16 %v471_v52  ;;  %v336_v2 = vmul.f32 %v3580_v3, %v3364_v49  ;;  %v3457_v49 = vld [vmem:[%s3575_s26 + $0x18] sm:$0xff]  }
  0x4f   : > { %1986 = vmatmul.bf16.gmra.mxu3 %v3784_v63  ;;  %v608_v5 = vpack.c.b16 %v566_v60, %v565_v58  ;;  %v337_v6 = vmul.f32 %v3580_v3, %v287_v53  ;;  %v385_v8 = vadd.f32 %v3585_v4, %v335_v61  ;;  %v3371_v9 = vunpack.c.l.bf16 %v3463_v54  ;;  %v3300_v61 = vld [vmem:[%s4640_s1 + $0xd8] sm:$0xff] }
  0x50   : > { %v642_v11 = vsel %vm630_vm2, %v637_v0, %v641_v56  ;;  %v609_v12 = vpack.c.b16 %v567_v1, %v567_v1  ;;  %v386_v14 = vadd.f32 %v3585_v4, %v336_v2  ;;  %v3372_v15 = vunpack.c.h.bf16 %v3463_v54  ;;  %v3309_v0 = vld [vmem:[%s4640_s1 + $0x120] sm:$0xff]  ;;  %v3284_v1 = vld [vmem:[%s4640_s1 + $0x58] sm:$0xff]  ;;  %2184 = vmatpush.bf16.msrb.mxu3 %v3300_v61 }
  0x51   : > { %v831_v17 = vshrl.u32 %v642_v11, 16  ;;  %v834_v21 = vshll.u32 %v642_v11, 16  ;;  %v692_v22 = vshrl.u32 %v608_v5, 16  ;;  %v694_v24 = vshll.u32 %v608_v5, 16  ;;  %2272 = vmatpush.bf16.msrb.mxu0 %v3309_v0  ;;  %2006 = vmatpush.bf16.msrb.mxu1 %v3284_v1 }
  0x52   : > { %v699_v25 = vshll.u32 %v609_v12, 16  ;;  %v387_v26 = vadd.f32 %v3585_v4, %v337_v6  ;;  %v433_v28 = vmax.f32 %v385_v8, 0.0  ;;  %v434_v29 = vmax.f32 %v386_v14, 0.0 }
  0x53   : > { %v3797_v30 = vrot.slane %v831_v17, 7  ;;  %v696_v31 = vrot.slane %v694_v24, 1  ;;  %v299_v32 = vunpack.c.l.bf16 %v251_v16  ;;  %v347_v33 = vmul.f32 %v3580_v3, %v3371_v9  ;;  %v215_v9 = vld [vmem:[%s3575_s26 + $0x20] sm:$0x1]  ;;  %v3299_v16 = vld [vmem:[%s4640_s1 + $0xd0] sm:$0xff]  ;;  %v3308_v17 = vld [vmem:[%s4640_s1 + $0x118] sm:$0xff] }
  0x54   : > { %v701_v34 = vrot.slane %v699_v25, 1  ;;  %v435_v35 = vmax.f32 %v387_v26, 0.0  ;;  %v481_v36 = vpack.c.bf16 %v433_v28, %v433_v28  ;;  %v482_v37 = vpack.c.bf16 %v434_v29, %v434_v29  ;;  %2185 = vmatpush.bf16.msrb.mxu3 %v3299_v16 }
  0x55   : > { %v836_v39 = vor.u32 %v834_v21, %v3797_v30  ;;  %v697_v40 = vor.u32 %v696_v31, %v692_v22  ;;  %v348_v43 = vmul.f32 %v3580_v3, %v3372_v15  ;;  %v349_v44 = vmul.f32 %v3580_v3, %v299_v32  ;;  %v3283_v32 = vld [vmem:[%s4640_s1 + $0x50] sm:$0xff]  ;;  %2273 = vmatpush.bf16.msrb.mxu0 %v3308_v17 }
  0x56   : > { %v483_v45 = vpack.c.bf16 %v435_v35, %v435_v35  ;;  %v577_v46 = vunpack.c.l.b16 %v481_v36  ;;  %v578_v47 = vunpack.c.l.b16 %v482_v37  ;;  %v397_v48 = vadd.f32 %v3585_v4, %v347_v33  ;;  %v228_v37 = vld [vmem:[%s3575_s26 + $0x54] sm:$0xff]   ;;  %2007 = vmatpush.bf16.msrb.mxu1 %v3283_v32 }
  0x57   : > { %v3807_v50 = vsel %vm3628_vm3, 0, %v836_v39  ;;  %v702_v51 = vsel %vm630_vm2, %v697_v40, %v701_v34  ;;  %v398_v52 = vadd.f32 %v3585_v4, %v348_v43  ;;  %v399_v53 = vadd.f32 %v3585_v4, %v349_v44 }
  0x58   : > { %1926 = vmatmul.bf16.gmra.mxu0 %v3807_v50  ;;  %v866_v54 = vshrl.u32 %v702_v51, 16  ;;  %v869_v56 = vshll.u32 %v702_v51, 16  ;;  %v579_v58 = vunpack.c.l.b16 %v483_v45  ;;  %v616_v60 = vpack.c.b16 %v578_v47, %v577_v46 }
  0x59   : > { %v445_v2 = vmax.f32 %v397_v48, 0.0  ;;  %v446_v5 = vmax.f32 %v398_v52, 0.0  ;;  %v447_v6 = vmax.f32 %v399_v53, 0.0  ;;  %v3347_v8 = vunpack.c.l.bf16 %v3457_v49  ;;  %v230_v52 = vld [vmem:[%s3575_s26 + $0x5c] sm:$0x1] }
  0x5a   : > { %v3826_v11 = vrot.slane %v866_v54, 7  ;;  %v617_v12 = vpack.c.b16 %v579_v58, %v579_v58  ;;  %v740_v14 = vshrl.u32 %v616_v60, 16  ;;  %v742_v15 = vshll.u32 %v616_v60, 16 }
  0x5b   : > { %v493_v21 = vpack.c.bf16 %v445_v2, %v445_v2  ;;  %v494_v22 = vpack.c.bf16 %v446_v5, %v446_v5  ;;  %v495_v24 = vpack.c.bf16 %v447_v6, %v447_v6  ;;  %v3348_v25 = vunpack.c.h.bf16 %v3457_v49 }
  0x5c   : > { %v871_v26 = vor.u32 %v869_v56, %v3826_v11  ;;  %v744_v28 = vrot.slane %v742_v15, 1  ;;  %v747_v29 = vshll.u32 %v617_v12, 16  ;;  %v263_v31 = vunpack.c.l.bf16 %v215_v9 }
  0x5d   : > { %v589_v33 = vunpack.c.l.b16 %v493_v21  ;;  %v590_v34 = vunpack.c.l.b16 %v494_v22  ;;  %v591_v35 = vunpack.c.l.b16 %v495_v24  ;;  %v311_v36 = vmul.f32 %v3580_v3, %v3347_v8 }
  0x5e   : > { %v3842_v39 = vsel %vm3628_vm3, 0, %v871_v26  ;;  %v745_v40 = vor.u32 %v744_v28, %v740_v14  ;;  %v749_v43 = vrot.slane %v747_v29, 1  ;;  %v312_v44 = vmul.f32 %v3580_v3, %v3348_v25 }
  0x5f   : > { %4679 = vst [vmem:[#allocation7_spill] sm:$0xff] %v3842_v39  ;;  %1951 = vmatmul.bf16.gmra.mxu1 %v3842_v39  ;;  %v624_v45 = vpack.c.b16 %v590_v34, %v589_v33  ;;  %v625_v46 = vpack.c.b16 %v591_v35, %v591_v35  ;;  %v313_v47 = vmul.f32 %v3580_v3, %v263_v31  ;;  %v276_v53 = vunpack.c.l.bf16 %v228_v37  ;;  %v240_v31 = vld [vmem:[%s3575_s26 + $0x84] sm:$0xff]  }
  0x60   : > { %v361_v48 = vadd.f32 %v3585_v4, %v311_v36  ;;  %v750_v49 = vsel %vm630_vm2, %v745_v40, %v749_v43  ;;  %v362_v51 = vadd.f32 %v3585_v4, %v312_v44  ;;  %v277_v54 = vunpack.c.h.bf16 %v228_v37 }
  0x61   : > { %v894_v56 = vshrl.u32 %v750_v49, 16  ;;  %v897_v58 = vshll.u32 %v750_v49, 16  ;;  %v788_v60 = vshrl.u32 %v624_v45, 16  ;;  %v790_v61 = vshll.u32 %v624_v45, 16 }
  0x62   : > { %v795_v0 = vshll.u32 %v625_v46, 16  ;;  %v363_v1 = vadd.f32 %v3585_v4, %v313_v47  ;;  %v409_v2 = vmax.f32 %v361_v48, 0.0  ;;  %v410_v5 = vmax.f32 %v362_v51, 0.0  ;;  %v242_v47 = vld [vmem:[%s3575_s26 + $0x8c] sm:$0x1] }
  0x63   : > { %v3852_v6 = vrot.slane %v894_v56, 7  ;;  %v792_v8 = vrot.slane %v790_v61, 1  ;;  %v278_v9 = vunpack.c.l.bf16 %v230_v52  ;;  %v326_v10 = vmul.f32 %v3580_v3, %v276_v53 }
  0x64   : > { %v797_v12 = vrot.slane %v795_v0, 1  ;;  %v411_v14 = vmax.f32 %v363_v1, 0.0  ;;  %v457_v15 = vpack.c.bf16 %v409_v2, %v409_v2  ;;  %v458_v16 = vpack.c.bf16 %v410_v5, %v410_v5 }
  0x65   : > { %v899_v17 = vor.u32 %v897_v58, %v3852_v6  ;;  %v793_v21 = vor.u32 %v792_v8, %v788_v60  ;;  %v327_v22 = vmul.f32 %v3580_v3, %v277_v54  ;;  %v328_v24 = vmul.f32 %v3580_v3, %v278_v9 }
  0x66   : > { %v459_v25 = vpack.c.bf16 %v411_v14, %v411_v14  ;;  %v553_v26 = vunpack.c.l.b16 %v457_v15  ;;  %v554_v28 = vunpack.c.l.b16 %v458_v16  ;;  %v376_v29 = vadd.f32 %v3585_v4, %v326_v10 }
  0x67   : > { %v3862_v32 = vsel %vm3628_vm3, 0, %v899_v17  ;;  %v798_v33 = vsel %vm630_vm2, %v793_v21, %v797_v12  ;;  %v377_v34 = vadd.f32 %v3585_v4, %v327_v22  ;;  %v378_v35 = vadd.f32 %v3585_v4, %v328_v24  ;;  %v252_v12 = vld [vmem:[%s3575_s26 + $0xb4] sm:$0xff]  }
  0x68   : > { %1971 = vmatmul.bf16.gmra.mxu2 %v3862_v32  ;;  %v922_v36 = vshrl.u32 %v798_v33, 16  ;;  %v925_v37 = vshll.u32 %v798_v33, 16  ;;  %v555_v40 = vunpack.c.l.b16 %v459_v25  ;;  %v600_v43 = vpack.c.b16 %v554_v28, %v553_v26  ;;  %v3290_v26 = vld [vmem:[%s4640_s1 + $0x88] sm:$0xff] }
  0x69   : > { %v424_v44 = vmax.f32 %v376_v29, 0.0  ;;  %v425_v45 = vmax.f32 %v377_v34, 0.0  ;;  %v426_v46 = vmax.f32 %v378_v35, 0.0  ;;  %v288_v48 = vunpack.c.l.bf16 %v240_v31  ;;  %2097 = vmatpush.bf16.msrb.mxu2 %v3290_v26  ;;  %v3298_v26 = vld [vmem:[%s4640_s1 + $0xc8] sm:$0xff] }
  0x6a   : > { %v3869_v49 = vrot.slane %v922_v36, 7  ;;  %v601_v51 = vpack.c.b16 %v555_v40, %v555_v40  ;;  %v644_v52 = vshrl.u32 %v600_v43, 16  ;;  %v646_v53 = vshll.u32 %v600_v43, 16  ;;  %2186 = vmatpush.bf16.msrb.mxu3 %v3298_v26  ;;  %v3328_v26 = vld [vmem:[%s4640_s1 + $0x1b8] sm:$0xff] }
  0x6b   : > { %v472_v54 = vpack.c.bf16 %v424_v44, %v424_v44  ;;  %v473_v56 = vpack.c.bf16 %v425_v45, %v425_v45  ;;  %v474_v58 = vpack.c.bf16 %v426_v46, %v426_v46  ;;  %v289_v60 = vunpack.c.h.bf16 %v240_v31  ;;  %v254_v31 = vld [vmem:[%s3575_s26 + $0xbc] sm:$0x1] }
  0x6c   : > { %v927_v61 = vor.u32 %v925_v37, %v3869_v49  ;;  %v648_v0 = vrot.slane %v646_v53, 1  ;;  %v651_v1 = vshll.u32 %v601_v51, 16  ;;  %v290_v2 = vunpack.c.l.bf16 %v242_v47  ;;  %v3894_v51 = vld [vmem:[%s4641_s2] ss:$0 sm:$0xff] }
  0x6d   : > { %v568_v5 = vunpack.c.l.b16 %v472_v54  ;;  %v569_v8 = vunpack.c.l.b16 %v473_v56  ;;  %v570_v9 = vunpack.c.l.b16 %v474_v58  ;;  %v338_v10 = vmul.f32 %v3580_v3, %v288_v48 }
  0x6e   : > { %v3876_v14 = vsel %vm3628_vm3, 0, %v927_v61  ;;  %v649_v15 = vor.u32 %v648_v0, %v644_v52  ;;  %v653_v16 = vrot.slane %v651_v1, 1  ;;  %v339_v17 = vmul.f32 %v3580_v3, %v289_v60 }
  0x6f   : > { %1991 = vmatmul.bf16.gmra.mxu3 %v3876_v14  ;;  %v610_v21 = vpack.c.b16 %v569_v8, %v568_v5  ;;  %v611_v22 = vpack.c.b16 %v570_v9, %v570_v9  ;;  %v340_v24 = vmul.f32 %v3580_v3, %v290_v2  ;;  %v388_v25 = vadd.f32 %v3585_v4, %v338_v10  ;;  %v3903_v8 = vld [vmem:[%s4641_s2 + $0x1] ss:$0 sm:$0xff]  ;;  %v216_v10 = vld [vmem:[%s3575_s26 + $0x24] sm:$0xff]  }
  0x70   : > { %v654_v28 = vsel %vm630_vm2, %v649_v15, %v653_v16  ;;  %v389_v29 = vadd.f32 %v3585_v4, %v339_v17  ;;  %v300_v33 = vunpack.c.l.bf16 %v252_v12  ;;  %v301_v34 = vunpack.c.h.bf16 %v252_v12 }
  0x71   : > { %v838_v35 = vshrl.u32 %v654_v28, 16  ;;  %v841_v36 = vshll.u32 %v654_v28, 16  ;;  %v704_v37 = vshrl.u32 %v610_v21, 16  ;;  %v706_v40 = vshll.u32 %v610_v21, 16  ;;  %v3307_v28 = vld [vmem:[%s4640_s1 + $0x110] sm:$0xff] }
  0x72   : > { %v711_v43 = vshll.u32 %v611_v22, 16  ;;  %v390_v3 = vadd.f32 %v3585_v4, %v340_v24  ;;  %v436_v44 = vmax.f32 %v388_v25, 0.0  ;;  %v437_v45 = vmax.f32 %v389_v29, 0.0  ;;  %v3282_v29 = vld [vmem:[%s4640_s1 + $0x48] sm:$0xff]  ;;  %2274 = vmatpush.bf16.msrb.mxu0 %v3307_v28 }
  0x73   : > { %v3889_v46 = vrot.slane %v838_v35, 7  ;;  %v708_v47 = vrot.slane %v706_v40, 1  ;;  %v302_v48 = vunpack.c.l.bf16 %v254_v31  ;;  %v350_v52 = vmul.f32 %v3894_v51, %v300_v33  ;;  %v218_v35 = vld [vmem:[%s3575_s26 + $0x2c] sm:$0x1]  ;;  %2008 = vmatpush.bf16.msrb.mxu1 %v3282_v29 }
  0x74   : > { %v713_v53 = vrot.slane %v711_v43, 1  ;;  %v438_v54 = vmax.f32 %v390_v3, 0.0  ;;  %v484_v56 = vpack.c.bf16 %v436_v44, %v436_v44  ;;  %v485_v58 = vpack.c.bf16 %v437_v45, %v437_v45  ;;  %v3297_v45 = vld [vmem:[%s4640_s1 + $0xc0] sm:$0xff] }
  0x75   : > { %v843_v4 = vor.u32 %v841_v36, %v3889_v46  ;;  %v709_v60 = vor.u32 %v708_v47, %v704_v37  ;;  %v351_v61 = vmul.f32 %v3894_v51, %v301_v34  ;;  %v352_v0 = vmul.f32 %v3894_v51, %v302_v48  ;;  %v3289_v37 = vld [vmem:[%s4640_s1 + $0x80] sm:$0xff]  ;;  %v3306_v47 = vld [vmem:[%s4640_s1 + $0x108] sm:$0xff]  ;;  %2187 = vmatpush.bf16.msrb.mxu3 %v3297_v45 }
  0x76   : > { %v486_v1 = vpack.c.bf16 %v438_v54, %v438_v54  ;;  %v580_v2 = vunpack.c.l.b16 %v484_v56  ;;  %v581_v5 = vunpack.c.l.b16 %v485_v58  ;;  %v400_v9 = vadd.f32 %v3903_v8, %v350_v52  ;;  %2098 = vmatpush.bf16.msrb.mxu2 %v3289_v37  ;;  %2275 = vmatpush.bf16.msrb.mxu0 %v3306_v47 }
  0x77   : > { %v3909_v12 = vsel %vm3628_vm3, 0, %v843_v4  ;;  %v714_v15 = vsel %vm630_vm2, %v709_v60, %v713_v53  ;;  %v401_v16 = vadd.f32 %v3903_v8, %v351_v61  ;;  %v402_v17 = vadd.f32 %v3903_v8, %v352_v0  ;;  %v3281_v61 = vld [vmem:[%s4640_s1 + $0x40] sm:$0xff] }
  0x78   : > { %1931 = vmatmul.bf16.gmra.mxu0 %v3909_v12  ;;  %v873_v21 = vshrl.u32 %v714_v15, 16  ;;  %v876_v22 = vshll.u32 %v714_v15, 16  ;;  %v582_v24 = vunpack.c.l.b16 %v486_v1  ;;  %v618_v25 = vpack.c.b16 %v581_v5, %v580_v2  ;;  %2009 = vmatpush.bf16.msrb.mxu1 %v3281_v61 }
  0x79   : > { %v448_v31 = vmax.f32 %v400_v9, 0.0  ;;  %v449_v33 = vmax.f32 %v401_v16, 0.0  ;;  %v450_v34 = vmax.f32 %v402_v17, 0.0  ;;  %v264_v36 = vunpack.c.l.bf16 %v216_v10  ;;  %v3305_v17 = vld [vmem:[%s4640_s1 + $0x100] sm:$0xff] }
  0x7a   : > { %v3928_v40 = vrot.slane %v873_v21, 7  ;;  %v619_v43 = vpack.c.b16 %v582_v24, %v582_v24  ;;  %v752_v3 = vshrl.u32 %v618_v25, 16  ;;  %v754_v44 = vshll.u32 %v618_v25, 16  ;;  %2447 = vmatpush.bf16.msra.mxu2 %v3328_v26  ;;  %2276 = vmatpush.bf16.msrb.mxu0 %v3305_v17  ;;  %v3320_v26 = vld [vmem:[%s4640_s1 + $0x178] sm:$0xff] }
  0x7b   : > { %v496_v48 = vpack.c.bf16 %v448_v31, %v448_v31  ;;  %v497_v52 = vpack.c.bf16 %v449_v33, %v449_v33  ;;  %v498_v53 = vpack.c.bf16 %v450_v34, %v450_v34  ;;  %v265_v54 = vunpack.c.h.bf16 %v216_v10 }
  0x7c   : > { %v878_v56 = vor.u32 %v876_v22, %v3928_v40  ;;  %v756_v58 = vrot.slane %v754_v44, 1  ;;  %v759_v4 = vshll.u32 %v619_v43, 16  ;;  %v266_v60 = vunpack.c.l.bf16 %v218_v35  ;;  %2358 = vmatpush.bf16.msra.mxu1 %v3320_v26 }
  0x7d   : > { %v592_v0 = vunpack.c.l.b16 %v496_v48  ;;  %v593_v1 = vunpack.c.l.b16 %v497_v52  ;;  %v594_v2 = vunpack.c.l.b16 %v498_v53  ;;  %v314_v5 = vmul.f32 %v3894_v51, %v264_v36 }
  0x7e   : > { %v3943_v9 = vsel %vm3628_vm3, 0, %v878_v56  ;;  %v757_v10 = vor.u32 %v756_v58, %v752_v3  ;;  %v761_v15 = vrot.slane %v759_v4, 1  ;;  %v315_v16 = vmul.f32 %v3894_v51, %v265_v54 }
  0x7f   : > { %4680 = vst [vmem:[#allocation8_spill] sm:$0xff] %v3943_v9  ;;  %1956 = vmatmul.bf16.gmra.mxu1 %v3943_v9  ;;  %v626_v21 = vpack.c.b16 %v593_v1, %v592_v0  ;;  %v627_v22 = vpack.c.b16 %v594_v2, %v594_v2  ;;  %v316_v24 = vmul.f32 %v3894_v51, %v266_v60  ;;  %v3960_v31 = vsel %vm3628_vm3, %v3620_v7, 0 }
  0x80   : > { %v364_v25 = vadd.f32 %v3903_v8, %v314_v5  ;;  %v762_v28 = vsel %vm630_vm2, %v757_v10, %v761_v15  ;;  %v365_v29 = vadd.f32 %v3903_v8, %v315_v16  ;;  %v1014_v33 = vshrl.u32 %v3639_v27, 16 }
  0x81   : > { %v901_v34 = vshrl.u32 %v762_v28, 16  ;;  %v904_v35 = vshll.u32 %v762_v28, 16  ;;  %v800_v36 = vshrl.u32 %v626_v21, 16  ;;  %v802_v37 = vshll.u32 %v626_v21, 16  ;;  %v3344_v28 = vld [vmem:[%s4640_s1 + $0x238] sm:$0xff] }
  0x82   : > { %v807_v43 = vshll.u32 %v627_v22, 16  ;;  %v366_v3 = vadd.f32 %v3903_v8, %v316_v24  ;;  %v412_v44 = vmax.f32 %v364_v25, 0.0  ;;  %v413_v45 = vmax.f32 %v365_v29, 0.0  ;;  %v3336_v25 = vld [vmem:[%s4640_s1 + $0x1f8] sm:$0xff]  ;;  %2625 = vmatpush.bf16.msra.mxu0 %v3344_v28 }
  0x83   : > { %v3964_v47 = vrot.slane %v901_v34, 7  ;;  %v804_v48 = vrot.slane %v802_v37, 1  ;;  %v1016_v52 = vshll.u32 %v3639_v27, 16  ;;  %v1021_v7 = vshll.u32 %v3960_v31, 16  ;;  %2536 = vmatpush.bf16.msra.mxu3 %v3336_v25 }
  0x84   : > { %v809_v53 = vrot.slane %v807_v43, 1  ;;  %v414_v54 = vmax.f32 %v366_v3, 0.0  ;;  %v460_v56 = vpack.c.bf16 %v412_v44, %v412_v44  ;;  %v461_v58 = vpack.c.bf16 %v413_v45, %v413_v45 }
  0x85   : > { %v906_v4 = vor.u32 %v904_v35, %v3964_v47  ;;  %v805_v60 = vor.u32 %v804_v48, %v800_v36  ;;  %v1018_v61 = vrot.slane %v1016_v52, 1  ;;  %v1023_v16 = vrot.slane %v1021_v7, 1 }
  0x86   : > { %v462_v0 = vpack.c.bf16 %v414_v54, %v414_v54  ;;  %v556_v1 = vunpack.c.l.b16 %v460_v56  ;;  %v557_v2 = vunpack.c.l.b16 %v461_v58  ;;  %v1254_v54 = vrot.slane %v3639_v27, 1 }
  0x87   : > { %v3971_v5 = vsel %vm3628_vm3, 0, %v906_v4  ;;  %v810_v10 = vsel %vm630_vm2, %v805_v60, %v809_v53  ;;  %v1019_v15 = vor.u32 %v1018_v61, %v1014_v33  ;;  %v1255_v56 = vrot.slane %v3960_v31, 1 }
  0x88   : > { %1976 = vmatmul.bf16.gmra.mxu2 %v3971_v5  ;;  %v929_v17 = vshrl.u32 %v810_v10, 16  ;;  %v932_v21 = vshll.u32 %v810_v10, 16  ;;  %v558_v22 = vunpack.c.l.b16 %v462_v0  ;;  %v602_v24 = vpack.c.b16 %v557_v2, %v556_v1 }
  0x89   : > { %v3988_v3 = vsel %vm630_vm2, %v1019_v15, %v1023_v16  ;;  %v1028_v58 = vshll.u32 %v3807_v50, 16  ;;  %v997_v60 = vsel %vm3628_vm3, %v3797_v30, 0  ;;  %v4004_v0 = vsel %vm1253_vm4, %v1254_v54, %v1255_v56 }
  0x8a   : > { %v3984_v29 = vrot.slane %v929_v17, 7  ;;  %v603_v33 = vpack.c.b16 %v558_v22, %v558_v22  ;;  %v656_v34 = vshrl.u32 %v602_v24, 16  ;;  %v658_v35 = vshll.u32 %v602_v24, 16  ;;  %4681 = vst [vmem:[#allocation9_spill] sm:$0xff] %v3988_v3  ;;  %v3327_v17 = vld [vmem:[%s4640_s1 + $0x1b0] sm:$0xff] }
  0x8b   : > { %4682 = vst [vmem:[#allocation10_spill] sm:$0xff] %v4004_v0  ;;  %v1026_v1 = vshrl.u32 %v3807_v50, 16  ;;  %v1030_v2 = vrot.slane %v1028_v58, 1  ;;  %v1033_v10 = vshll.u32 %v997_v60, 16  ;;  %v1258_v22 = vrot.slane %v997_v60, 1  ;;  %2448 = vmatpush.bf16.msra.mxu2 %v3327_v17 }
  0x8c   : > { %v934_v36 = vor.u32 %v932_v21, %v3984_v29  ;;  %v660_v37 = vrot.slane %v658_v35, 1  ;;  %v663_v43 = vshll.u32 %v603_v33, 16  ;;  %v1257_v21 = vrot.slane %v3807_v50, 1  ;;  %v3319_v35 = vld [vmem:[%s4640_s1 + $0x170] sm:$0xff] }
  0x8d   : > { %v1031_v31 = vor.u32 %v1030_v2, %v1026_v1  ;;  %v1035_v16 = vrot.slane %v1033_v10, 1  ;;  %v1040_v24 = vshll.u32 %v3909_v12, 16  ;;  %v998_v25 = vsel %vm3628_vm3, %v3889_v46, 0  ;;  %v3343_v46 = vld [vmem:[%s4640_s1 + $0x230] sm:$0xff]  ;;  %2359 = vmatpush.bf16.msra.mxu1 %v3319_v35 }
  0x8e   : > { %v3992_v44 = vsel %vm3628_vm3, 0, %v934_v36  ;;  %v661_v45 = vor.u32 %v660_v37, %v656_v34  ;;  %v665_v48 = vrot.slane %v663_v43, 1  ;;  %v4024_v26 = vsel %vm1253_vm4, %v1257_v21, %v1258_v22  ;;  %2626 = vmatpush.bf16.msra.mxu0 %v3343_v46 }
  0x8f   : > { %1996 = vmatmul.bf16.gmra.mxu3 %v3992_v44  ;;  %2010 = vmatmul.bf16.vlgmr.msrb.gmra.mxu1 %v3988_v3  ;;  %v1036_v30 = vsel %vm630_vm2, %v1031_v31, %v1035_v16  ;;  %v1038_v28 = vshrl.u32 %v3909_v12, 16  ;;  %v1042_v33 = vrot.slane %v1040_v24, 1  ;;  %v1045_v34 = vshll.u32 %v998_v25, 16 }
  0x90   : > { %v666_v52 = vsel %vm630_vm2, %v661_v45, %v665_v48  ;;  %v1260_v45 = vrot.slane %v3909_v12, 1  ;;  %v1261_v48 = vrot.slane %v998_v25, 1  ;;  %v1064_v16 = vshll.u32 %v3688_v13, 16  ;;  %v3334_v25 = vld [vmem:[%s4640_s1 + $0x1e8] sm:$0xff] }
  0x91   : > { %v845_v7 = vshrl.u32 %v666_v52, 16  ;;  %v848_v53 = vshll.u32 %v666_v52, 16  ;;  %v1043_v36 = vor.u32 %v1042_v33, %v1038_v28  ;;  %v1047_v37 = vrot.slane %v1045_v34, 1  ;;  %v3318_v28 = vld [vmem:[%s4640_s1 + $0x168] sm:$0xff] }
  0x92   : > { %v1062_v21 = vshrl.u32 %v3688_v13, 16  ;;  %v1066_v22 = vrot.slane %v1064_v16, 1  ;;  %2360 = vmatpush.bf16.msra.mxu1 %v3318_v28 }
  0x93   : > { %v847_v4 = vrot.slane %v845_v7, 7  ;;  %v4038_v43 = vsel %vm630_vm2, %v1043_v36, %v1047_v37  ;;  %v1266_v36 = vrot.slane %v3688_v13, 1 }
  0x94   : > { %v1067_v33 = vor.u32 %v1066_v22, %v1062_v21  ;;  %v1269_v22 = vrot.slane %v3756_v57, 1 }
  0x95   : > { %v850_v61 = vor.u32 %v848_v53, %v847_v4  ;;  %v999_v7 = vsel %vm3628_vm3, %v847_v4, 0  ;;  %v4047_v53 = vsel %vm1253_vm4, %v1260_v45, %v1261_v48  ;;  %v3326_v4 = vld [vmem:[%s4640_s1 + $0x1a8] sm:$0xff]  ;;  %v1076_v45 = vshll.u32 %v3756_v57, 16 }
  0x96   : > { %v1057_v58 = vshll.u32 %v999_v7, 16  ;;  %v1264_v31 = vrot.slane %v999_v7, 1  ;;  %2449 = vmatpush.bf16.msra.mxu2 %v3326_v4  ;;  %v1001_v48 = vsel %vm3628_vm3, %v3744_v38, 0 }
  0x97   : > { %v4009_v15 = vsel %vm3628_vm3, 0, %v850_v61 }
  0x98   : > { %1936 = vmatmul.bf16.gmra.mxu0 %v4009_v15  ;;  %2099 = vmatmul.bf16.vlgmr.msrb.gmra.mxu2 %v4004_v0  ;;  %v1052_v52 = vshll.u32 %v4009_v15, 16  ;;  %v1050_v54 = vshrl.u32 %v4009_v15, 16  ;;  %v1059_v61 = vrot.slane %v1057_v58, 1  ;;  %v1263_v10 = vrot.slane %v4009_v15, 1 }
  0x99   : > { %v1081_v58 = vshll.u32 %v1001_v48, 16 }
  0x9a   : > { %v1054_v56 = vrot.slane %v1052_v52, 1  ;;  %v4068_v17 = vsel %vm1253_vm4, %v1263_v10, %v1264_v31 }
  0x9b   : > { %v1083_v10 = vrot.slane %v1081_v58, 1 }
  0x9c   : > { %v1055_v60 = vor.u32 %v1054_v56, %v1050_v54  ;;  %v1074_v54 = vshrl.u32 %v3756_v57, 16  ;;  %v1078_v56 = vrot.slane %v1076_v45, 1 }
  0x9e   : > { %v4053_v1 = vsel %vm630_vm2, %v1055_v60, %v1059_v61  ;;  %v1079_v38 = vor.u32 %v1078_v56, %v1074_v54  ;;  %v3333_v54 = vld [vmem:[%s4640_s1 + $0x1e0] sm:$0xff] }
  0x9f   : > { %2188 = vmatmul.bf16.vlgmr.msrb.gmra.mxu3 %v3807_v50  ;;  %2015 = vmatmul.bf16.gmra.mxu1 %v1036_v30  ;;  %v3335_v50 = vld [vmem:[%s4640_s1 + $0x1f0] sm:$0xff]  ;;  %v3341_v56 = vld [vmem:[%s4640_s1 + $0x220] sm:$0xff] }
  0xa0   : > { %2537 = vmatpush.bf16.msra.mxu3 %v3335_v50  ;;  %v4111_v31 = vsel %vm630_vm2, %v1079_v38, %v1083_v10 }
  0xa1   : > { %4685 = vst [vmem:[#allocation13_spill] sm:$0xff] %v4111_v31 }
  0xa4   : > { %2538 = vmatpush.bf16.msra.mxu3 %v3334_v25  ;;  %v1088_v25 = vshll.u32 %v3842_v39, 16 }
  0xa8   : > { %2277 = vmatmul.bf16.vlgmr.msrb.gmra.mxu0 %v1036_v30  ;;  %2104 = vmatmul.bf16.gmra.mxu2 %v4024_v26  ;;  %v1000_v30 = vsel %vm3628_vm3, %v3662_v55, 0  ;;  %v3342_v55 = vld [vmem:[%s4640_s1 + $0x228] sm:$0xff] }
  0xa9   : > { %v1069_v24 = vshll.u32 %v1000_v30, 16  ;;  %2627 = vmatpush.bf16.msra.mxu0 %v3342_v55  ;;  %v1267_v37 = vrot.slane %v1000_v30, 1  ;;  %v3325_v30 = vld [vmem:[%s4640_s1 + $0x1a0] sm:$0xff]  ;;  %v1002_v55 = vsel %vm3628_vm3, %v3826_v11, 0  ;;  %2539 = vmatpush.bf16.msra.mxu3 %v3333_v54  ;;  %v1003_v54 = vsel %vm3628_vm3, %v3928_v40, 0 }
  0xaa   : > { %2450 = vmatpush.bf16.msra.mxu2 %v3325_v30  ;;  %v1093_v45 = vshll.u32 %v1002_v55, 16  ;;  %v3317_v11 = vld [vmem:[%s4640_s1 + $0x160] sm:$0xff]  ;;  %v1105_v0 = vshll.u32 %v1003_v54, 16 }
  0xab   : > { %v4060_v2 = vpop.f32.mrf.mxu1  ;;  %v1071_v34 = vrot.slane %v1069_v24, 1  ;;  %v4099_v7 = vsel %vm1253_vm4, %v1266_v36, %v1267_v37  ;;  %v4106_v61 = vpop.f32.mrf.mxu0  ;;  %v1270_v24 = vrot.slane %v1001_v48, 1  ;;  %v1086_v36 = vshrl.u32 %v3842_v39, 16  ;;  %2361 = vmatpush.bf16.msra.mxu1 %v3317_v11 }
  0xac   : > { %4683 = vst [vmem:[#allocation11_spill] sm:$0xff] %v4099_v7  ;;  %v1090_v37 = vrot.slane %v1088_v25, 1  ;;  %v1095_v38 = vrot.slane %v1093_v45, 1  ;;  %v1272_v25 = vrot.slane %v3842_v39, 1 }
  0xad   : > { %v4085_v35 = vsel %vm630_vm2, %v1067_v33, %v1071_v34  ;;  %v4132_v34 = vsel %vm1253_vm4, %v1269_v22, %v1270_v24  ;;  %2628 = vmatpush.bf16.msra.mxu0 %v3341_v56 }
  0xae   : > { %4687 = vst [vmem:[#allocation15_spill] sm:$0xff] %v4132_v34  ;;  %v1091_v58 = vor.u32 %v1090_v37, %v1086_v36  ;;  %v1273_v36 = vrot.slane %v1002_v55, 1  ;;  %v1100_v37 = vshll.u32 %v3943_v9, 16 }
  0xaf   : > { %2193 = vmatmul.bf16.gmra.mxu3 %v3909_v12  ;;  %2020 = vmatmul.bf16.gmra.mxu1 %v4038_v43 }
  0xb0   : > { %v4155_v24 = vsel %vm630_vm2, %v1091_v58, %v1095_v38  ;;  %v4169_v56 = vsel %vm1253_vm4, %v1272_v25, %v1273_v36  ;;  %v1098_v58 = vshrl.u32 %v3943_v9, 16  ;;  %v1102_v38 = vrot.slane %v1100_v37, 1 }
  0xb1   : > { %4689 = vst [vmem:[#allocation17_spill] sm:$0xff] %v4155_v24 }
  0xb2   : > { %v4089_v46 = vpop.f32.mrf.mxu2  ;;  %4691 = vst [vmem:[#allocation19_spill] sm:$0xff] %v4169_v56  ;;  %v1103_v27 = vor.u32 %v1102_v38, %v1098_v58  ;;  %v3324_v38 = vld [vmem:[%s4640_s1 + $0x198] sm:$0xff] }
  0xb3   : > { %v4082_v50 = vpop.f32.mrf.mxu1  ;;  %v4124_v28 = vpop.f32.mrf.mxu0  ;;  %2451 = vmatpush.bf16.msra.mxu2 %v3324_v38 }
  0xb7   : > { %v4102_v60 = vpop.f32.mrf.mxu3 }
  0xb8   : > { %2282 = vmatmul.bf16.gmra.mxu0 %v4038_v43  ;;  %2109 = vmatmul.bf16.gmra.mxu2 %v4047_v53  ;;  %4684 = vst [vmem:[#allocation12_spill] sm:$0xff] %v4102_v60 }
  0xba   : > { %v4108_v4 = vpop.f32.mrf.mxu2 }
  0xbf   : > { %2198 = vmatmul.bf16.gmra.mxu3 %v4009_v15  ;;  %2025 = vmatmul.bf16.gmra.mxu1 %v4053_v1  ;;  %v4096_v52 = vpop.f32.mrf.mxu1  ;;  %v4120_v21 = vpop.f32.mrf.mxu3 }
  0xc0   : > { %4686 = vst [vmem:[#allocation14_spill] sm:$0xff] %v4120_v21  ;;  %v1275_v21 = vrot.slane %v3943_v9, 1 }
  0xc7   : > { %v4113_v16 = vpop.f32.mrf.mxu1 }
  0xc8   : > { %2287 = vmatmul.bf16.gmra.mxu0 %v4053_v1  ;;  %2114 = vmatmul.bf16.gmra.mxu2 %v4068_v17 }
  0xca   : > { %v4129_v33 = vpop.f32.mrf.mxu2 }
  0xcf   : > { %2203 = vmatmul.bf16.gmra.mxu3 %v3688_v13  ;;  %2030 = vmatmul.bf16.gmra.mxu1 %v4085_v35 }
  0xd2   : > { %v4148_v10 = vpop.f32.mrf.mxu3  ;;  %v4152_v22 = vpop.f32.mrf.mxu2 }
  0xd3   : > { %4688 = vst [vmem:[#allocation16_spill] sm:$0xff] %v4148_v10  ;;  %v1107_v10 = vrot.slane %v1105_v0, 1  ;;  %v1112_v0 = vshll.u32 %v3694_v18, 16 }
  0xd5   : > { %v4150_v30 = vpop.f32.mrf.mxu0 }
  0xd8   : > { %2292 = vmatmul.bf16.gmra.mxu0 %v4085_v35  ;;  %2119 = vmatmul.bf16.gmra.mxu2 %v4099_v7 }
  0xda   : > { %v4166_v11 = vpop.f32.mrf.mxu3 }
  0xdb   : > { %4690 = vst [vmem:[#allocation18_spill] sm:$0xff] %v4166_v11  ;;  %v4181_v11 = vsel %vm630_vm2, %v1103_v27, %v1107_v10  ;;  %v1004_v27 = vsel %vm3628_vm3, %v3667_v59, 0  ;;  %v3332_v59 = vld [vmem:[%s4640_s1 + $0x1d8] sm:$0xff] }
  0xdc   : > { %v4137_v48 = vpop.f32.mrf.mxu1  ;;  %4692 = vst [vmem:[#allocation20_spill] sm:$0xff] %v4181_v11  ;;  %2540 = vmatpush.bf16.msra.mxu3 %v3332_v59  ;;  %v1124_v59 = vshll.u32 %v3767_v19, 16 }
  0xdd   : > { %v4172_v3 = vpop.f32.mrf.mxu0 }
  0xdf   : > { %2208 = vmatmul.bf16.gmra.mxu3 %v3756_v57  ;;  %2035 = vmatmul.bf16.gmra.mxu1 %v4111_v31 }
  0xe4   : > { %v4161_v45 = vpop.f32.mrf.mxu1 }
  0xe8   : > { %2297 = vmatmul.bf16.gmra.mxu0 %v4111_v31  ;;  %2124 = vmatmul.bf16.gmra.mxu2 %v4132_v34 }
  0xeb   : > { %v4174_v55 = vpop.f32.mrf.mxu2 }
  0xef   : > { %2213 = vmatmul.bf16.gmra.mxu3 %v3842_v39  ;;  %2040 = vmatmul.bf16.gmra.mxu1 %v4155_v24  ;;  %v1005_v39 = vsel %vm3628_vm3, %v3760_v62, 0 }
  0xf2   : > { %v4183_v25 = vpop.f32.mrf.mxu3 }
  0xf3   : > { %4693 = vst [vmem:[#allocation21_spill] sm:$0xff] %v4183_v25  ;;  %v4189_v37 = vpop.f32.mrf.mxu2  ;;  %v1110_v25 = vshrl.u32 %v3694_v18, 16 }
  0xf4   : > { %4694 = vst [vmem:[#allocation22_spill] sm:$0xff] %v4189_v37 }
  0xf5   : > { %v4187_v36 = vpop.f32.mrf.mxu0 }
  0xf8   : > { %2302 = vmatmul.bf16.gmra.mxu0 %v4155_v24  ;;  %2129 = vmatmul.bf16.gmra.mxu2 %v4169_v56  ;;  %v1276_v56 = vrot.slane %v1003_v54, 1  ;;  %v1114_v24 = vrot.slane %v1112_v0, 1 }
  0xfa   : > { %v4199_v58 = vsel %vm1253_vm4, %v1275_v21, %v1276_v56  ;;  %v4206_v54 = vpop.f32.mrf.mxu3  ;;  %v3316_v21 = vld [vmem:[%s4640_s1 + $0x158] sm:$0xff]  ;;  %v1115_v56 = vor.u32 %v1114_v24, %v1110_v25  ;;  %v1279_v24 = vrot.slane %v1004_v27, 1 }
  0xfb   : > { %4695 = vst [vmem:[#allocation23_spill] sm:$0xff] %v4199_v58  ;;  %2362 = vmatpush.bf16.msra.mxu1 %v3316_v21 }
  0xfc   : > { %v4178_v40 = vpop.f32.mrf.mxu1  ;;  %4696 = vst [vmem:[#allocation24_spill] sm:$0xff] %v4206_v54  ;;  %v3340_v54 = vld [vmem:[%s4640_s1 + $0x218] sm:$0xff] }
  0xfd   : > { %v4215_v0 = vpop.f32.mrf.mxu0  ;;  %2629 = vmatpush.bf16.msra.mxu0 %v3340_v54  ;;  %v1122_v54 = vshrl.u32 %v3767_v19, 16 }
  0xff   : > { %2218 = vmatmul.bf16.gmra.mxu3 %v3943_v9  ;;  %2045 = vmatmul.bf16.gmra.mxu1 %v4181_v11  ;;  %v1117_v9 = vshll.u32 %v1004_v27, 16  ;;  %v1129_v27 = vshll.u32 %v1005_v39, 16 }
 0x101   : > { %v1119_v60 = vrot.slane %v1117_v9, 1  ;;  %v1278_v9 = vrot.slane %v3694_v18, 1  ;;  %v1131_v62 = vrot.slane %v1129_v27, 1 }
 0x103   : > { %v4239_v34 = vsel %vm1253_vm4, %v1278_v9, %v1279_v24 }
 0x104   : > { %v4196_v10 = vpop.f32.mrf.mxu1 }
 0x108   : > { %2307 = vmatmul.bf16.gmra.mxu0 %v4181_v11  ;;  %2134 = vmatmul.bf16.gmra.mxu2 %v4199_v58  ;;  %v4223_v58 = vsel %vm630_vm2, %v1115_v56, %v1119_v60 }
 0x10b   : > { %v4217_v38 = vpop.f32.mrf.mxu2 }
 0x10c   : > { %4697 = vst [vmem:[#allocation25_spill] sm:$0xff] %v4217_v38  ;;  %v2011_v11 = vpop.f32.mrf.mxu1 }
 0x10f   : > { %2223 = vmatmul.bf16.gmra.mxu3 %v3694_v18  ;;  %2050 = vmatmul.bf16.gmra.mxu1 %v4223_v58  ;;  %v1126_v18 = vrot.slane %v1124_v59, 1  ;;  %v1281_v59 = vrot.slane %v3767_v19, 1 }
 0x111   : > { %v1127_v31 = vor.u32 %v1126_v18, %v1122_v54 }
 0x112   : > { %v4228_v25 = vpop.f32.mrf.mxu3 }
 0x113   : > { %4698 = vst [vmem:[#allocation26_spill] sm:$0xff] %v4228_v25  ;;  %v4231_v21 = vpop.f32.mrf.mxu2  ;;  %v4251_v24 = vsel %vm630_vm2, %v1127_v31, %v1131_v62 }
 0x114   : > { %4699 = vst [vmem:[#allocation27_spill] sm:$0xff] %v4231_v21  ;;  %v2013_v60 = vpop.f32.mrf.mxu1  ;;  %v2012_v21 = vadd.f32 %v2011_v11, %v4106_v61  ;;  %v1136_v11 = vshll.u32 %v3862_v32, 16 }
 0x115   : > { %v4236_v56 = vpop.f32.mrf.mxu0  ;;  %4701 = vst [vmem:[#allocation29_spill] sm:$0xff] %v4251_v24  ;;  %v2014_v18 = vadd.f32 %v2013_v60, %v4124_v28  ;;  %v1134_v28 = vshrl.u32 %v3862_v32, 16 }
 0x116   : > { %v1138_v60 = vrot.slane %v1136_v11, 1 }
 0x118   : > { %2312 = vmatmul.bf16.gmra.mxu0 %v4223_v58  ;;  %2139 = vmatmul.bf16.gmra.mxu2 %v4239_v34 }
 0x11a   : > { %v4244_v25 = vpop.f32.mrf.mxu3 }
 0x11b   : > { %4700 = vst [vmem:[#allocation28_spill] sm:$0xff] %v4244_v25  ;;  %v2100_v38 = vpop.f32.mrf.mxu2  ;;  %v1282_v25 = vrot.slane %v1005_v39, 1  ;;  %v3323_v39 = vld [vmem:[%s4640_s1 + $0x190] sm:$0xff] }
 0x11c   : > { %v2101_v57 = vadd.f32 %v2100_v38, %v2012_v21  ;;  %v2016_v37 = vpop.f32.mrf.mxu1  ;;  %2452 = vmatpush.bf16.msra.mxu2 %v3323_v39 }
 0x11d   : > { %v4247_v7 = vpop.f32.mrf.mxu0  ;;  %v2017_v9 = vadd.f32 %v2016_v37, %v4150_v30  ;;  %v1006_v30 = vsel %vm3628_vm3, %v3852_v6, 0  ;;  %v4262_v27 = vsel %vm1253_vm4, %v1281_v59, %v1282_v25  ;;  %v3331_v6 = vld [vmem:[%s4640_s1 + $0x1d0] sm:$0xff] }
 0x11e   : > { %4702 = vst [vmem:[#allocation30_spill] sm:$0xff] %v4262_v27  ;;  %v1141_v62 = vshll.u32 %v1006_v30, 16  ;;  %v3315_v25 = vld [vmem:[%s4640_s1 + $0x150] sm:$0xff]  ;;  %2541 = vmatpush.bf16.msra.mxu3 %v3331_v6 }
 0x11f   : > { %2228 = vmatmul.bf16.gmra.mxu3 %v3767_v19  ;;  %2055 = vmatmul.bf16.gmra.mxu1 %v4251_v24 }
 0x120   : > { %2363 = vmatpush.bf16.msra.mxu1 %v3315_v25  ;;  %v1007_v25 = vsel %vm3628_vm3, %v3964_v47, 0 }
 0x122   : > { %v2189_v61 = vpop.f32.mrf.mxu3 }
 0x123   : > { %v2190_v38 = vadd.f32 %v2189_v61, %v2101_v57  ;;  %v2102_v21 = vpop.f32.mrf.mxu2  ;;  %v1139_v61 = vor.u32 %v1138_v60, %v1134_v28  ;;  %v1148_v60 = vshll.u32 %v3971_v5, 16 }
 0x124   : > { %v2103_v31 = vadd.f32 %v2102_v21, %v2014_v18  ;;  %v2018_v37 = vpop.f32.mrf.mxu1  ;;  %v1143_v18 = vrot.slane %v1141_v62, 1 }
 0x125   : > { %v2278_v54 = vpop.f32.mrf.mxu0 }
 0x126   : > { %v4268_v57 = vadd.f32 %v2278_v54, %v2190_v38 }
 0x128   : > { %4703 = vst [vmem:[#allocation31_spill] sm:$0xff] %v4268_v57  ;;  %2317 = vmatmul.bf16.gmra.mxu0 %v4251_v24  ;;  %2144 = vmatmul.bf16.gmra.mxu2 %v4262_v27  ;;  %v3339_v27 = vld [vmem:[%s4640_s1 + $0x210] sm:$0xff]  ;;  %v4283_v24 = vsel %vm630_vm2, %v1139_v61, %v1143_v18 }
 0x129   : > { %2630 = vmatpush.bf16.msra.mxu0 %v3339_v27 }
 0x12a   : > { %v2191_v59 = vpop.f32.mrf.mxu3 }
 0x12b   : > { %v2192_v11 = vadd.f32 %v2191_v59, %v2103_v31  ;;  %v2105_v38 = vpop.f32.mrf.mxu2  ;;  %v1285_v31 = vrot.slane %v1006_v30, 1  ;;  %v1146_v30 = vshrl.u32 %v3971_v5, 16 }
 0x12c   : > { %v2106_v21 = vadd.f32 %v2105_v38, %v2017_v9  ;;  %v2021_v54 = vpop.f32.mrf.mxu1  ;;  %v1284_v9 = vrot.slane %v3862_v32, 1  ;;  %v1150_v38 = vrot.slane %v1148_v60, 1 }
 0x12d   : > { %v2280_v39 = vpop.f32.mrf.mxu0  ;;  %v2022_v57 = vadd.f32 %v2021_v54, %v4187_v36  ;;  %v2019_v36 = vadd.f32 %v2018_v37, %v4172_v3  ;;  %v1153_v3 = vshll.u32 %v1007_v25, 16 }
 0x12e   : > { %v4285_v19 = vadd.f32 %v2280_v39, %v2192_v11  ;;  %v4296_v11 = vsel %vm1253_vm4, %v1284_v9, %v1285_v31  ;;  %v1151_v47 = vor.u32 %v1150_v38, %v1146_v30 }
 0x12f   : > { %2233 = vmatmul.bf16.gmra.mxu3 %v3862_v32  ;;  %2060 = vmatmul.bf16.gmra.mxu1 %v4283_v24  ;;  %v1155_v54 = vrot.slane %v1153_v3, 1 }
 0x132   : > { %v2194_v28 = vpop.f32.mrf.mxu3 }
 0x133   : > { %v2195_v62 = vadd.f32 %v2194_v28, %v2106_v21  ;;  %v2107_v6 = vpop.f32.mrf.mxu2 }
 0x134   : > { %v2108_v59 = vadd.f32 %v2107_v6, %v2019_v36  ;;  %v2023_v61 = vpop.f32.mrf.mxu1  ;;  %v4306_v6 = vsel %vm630_vm2, %v1151_v47, %v1155_v54 }
 0x135   : > { %v2283_v18 = vpop.f32.mrf.mxu0  ;;  %v2024_v27 = vadd.f32 %v2023_v61, %v4215_v0  ;;  %v1288_v61 = vrot.slane %v1007_v25, 1  ;;  %v3322_v25 = vld [vmem:[%s4640_s1 + $0x188] sm:$0xff] }
 0x136   : > { %v4300_v37 = vadd.f32 %v2283_v18, %v2195_v62  ;;  %v1287_v62 = vrot.slane %v3971_v5, 1  ;;  %2453 = vmatpush.bf16.msra.mxu2 %v3322_v25 }
 0x138   : > { %2322 = vmatmul.bf16.gmra.mxu0 %v4283_v24  ;;  %2149 = vmatmul.bf16.gmra.mxu2 %v4296_v11  ;;  %v4318_v47 = vsel %vm1253_vm4, %v1287_v62, %v1288_v61 }
 0x139   : > { %4705 = vst [vmem:[#allocation33_spill] sm:$0xff] %v4318_v47 }
 0x13a   : > { %v2196_v21 = vpop.f32.mrf.mxu3 }
 0x13b   : > { %v2197_v39 = vadd.f32 %v2196_v21, %v2108_v59  ;;  %v2110_v28 = vpop.f32.mrf.mxu2  ;;  %v1160_v59 = vshll.u32 %v3710_v42, 16 }
 0x13c   : > { %v2111_v36 = vadd.f32 %v2110_v28, %v2022_v57  ;;  %v2026_v9 = vpop.f32.mrf.mxu1 }
 0x13d   : > { %v2285_v31 = vpop.f32.mrf.mxu0  ;;  %v2027_v0 = vadd.f32 %v2026_v9, %v4236_v56  ;;  %v1008_v56 = vsel %vm3628_vm3, %v3698_v23, 0  ;;  %v1162_v28 = vrot.slane %v1160_v59, 1  ;;  %v3330_v23 = vld [vmem:[%s4640_s1 + $0x1c8] sm:$0xff] }
 0x13e   : > { %v4308_v60 = vadd.f32 %v2285_v31, %v2197_v39  ;;  %v1158_v39 = vshrl.u32 %v3710_v42, 16  ;;  %2542 = vmatpush.bf16.msra.mxu3 %v3330_v23 }
 0x13f   : > { %2238 = vmatmul.bf16.gmra.mxu3 %v3971_v5  ;;  %2065 = vmatmul.bf16.gmra.mxu1 %v4306_v6 }
 0x140   : > { %4704 = vst [vmem:[#allocation32_spill] sm:$0xff] %v4308_v60  ;;  %v1163_v31 = vor.u32 %v1162_v28, %v1158_v39  ;;  %v1172_v28 = vshll.u32 %v3784_v63, 16 }
 0x142   : > { %v2199_v18 = vpop.f32.mrf.mxu3 }
 0x143   : > { %v2200_v57 = vadd.f32 %v2199_v18, %v2111_v36  ;;  %v2112_v30 = vpop.f32.mrf.mxu2  ;;  %v1165_v36 = vshll.u32 %v1008_v56, 16 }
 0x144   : > { %v2113_v38 = vadd.f32 %v2112_v30, %v2024_v27  ;;  %v2028_v3 = vpop.f32.mrf.mxu1 }
 0x145   : > { %v2288_v21 = vpop.f32.mrf.mxu0  ;;  %v2029_v54 = vadd.f32 %v2028_v3, %v4247_v7  ;;  %v3314_v7 = vld [vmem:[%s4640_s1 + $0x148] sm:$0xff]  ;;  %v1167_v62 = vrot.slane %v1165_v36, 1 }
 0x146   : > { %v4325_v9 = vadd.f32 %v2288_v21, %v2200_v57  ;;  %2364 = vmatpush.bf16.msra.mxu1 %v3314_v7  ;;  %v3338_v3 = vld [vmem:[%s4640_s1 + $0x208] sm:$0xff]  ;;  %v1009_v7 = vsel %vm3628_vm3, %v3777_v41, 0 }
 0x147   : > { %v4339_v21 = vsel %vm630_vm2, %v1163_v31, %v1167_v62  ;;  %2631 = vmatpush.bf16.msra.mxu0 %v3338_v3  ;;  %v3464_v62 = vld [vmem:[%s3575_s26 + $0xc0] sm:$0xff]  }
 0x148   : > { %4706 = vst [vmem:[#allocation34_spill] sm:$0xff] %v4325_v9  ;;  %2327 = vmatmul.bf16.gmra.mxu0 %v4306_v6  ;;  %2154 = vmatmul.bf16.gmra.mxu2 %v4318_v47  ;;  %v3376_v3 = vunpack.c.h.bf16 %v3464_v62  ;;  %v1177_v9 = vshll.u32 %v1009_v7, 16 }
 0x149   : > { %4707 = vst [vmem:[#allocation35_spill] sm:$0xff] %v4339_v21 }
 0x14a   : > { %v2201_v27 = vpop.f32.mrf.mxu3  ;;  %v354_v41 = vmul.f32 %v3894_v51, %v3376_v3 }
 0x14b   : > { %v2202_v61 = vadd.f32 %v2201_v27, %v2113_v38  ;;  %v2115_v18 = vpop.f32.mrf.mxu2  ;;  %v1290_v38 = vrot.slane %v3710_v42, 1 }
 0x14c   : > { %v2116_v59 = vadd.f32 %v2115_v18, %v2027_v0  ;;  %v2031_v57 = vpop.f32.mrf.mxu1  ;;  %v1291_v0 = vrot.slane %v1008_v56, 1  ;;  %v1170_v56 = vshrl.u32 %v3784_v63, 16 }
 0x14d   : > { %v2290_v30 = vpop.f32.mrf.mxu0 }
 0x14e   : > { %v4341_v25 = vadd.f32 %v2290_v30, %v2202_v61  ;;  %v4352_v18 = vsel %vm1253_vm4, %v1290_v38, %v1291_v0  ;;  %v3375_v30 = vunpack.c.l.bf16 %v3464_v62  ;;  %v404_v0 = vadd.f32 %v3903_v8, %v354_v41 }
 0x14f   : > { %2243 = vmatmul.bf16.gmra.mxu3 %v3710_v42  ;;  %2070 = vmatmul.bf16.gmra.mxu1 %v4339_v21  ;;  %4709 = vst [vmem:[#allocation37_spill] sm:$0xff] %v4352_v18  ;;  %v257_v42 = vld [vmem:[%s3575_s26 + $0xc8] sm:$0x1]  ;;  %v1179_v62 = vrot.slane %v1177_v9, 1 }
 0x150   : > { %4708 = vst [vmem:[#allocation36_spill] sm:$0xff] %v4341_v25  ;;  %v1174_v25 = vrot.slane %v1172_v28, 1  ;;  %v353_v60 = vmul.f32 %v3894_v51, %v3375_v30 }
 0x152   : > { %v2204_v39 = vpop.f32.mrf.mxu3  ;;  %v403_v38 = vadd.f32 %v3903_v8, %v353_v60 }
 0x153   : > { %v2205_v36 = vadd.f32 %v2204_v39, %v2116_v59  ;;  %v2117_v23 = vpop.f32.mrf.mxu2  ;;  %v305_v39 = vunpack.c.l.bf16 %v257_v42 }
 0x154   : > { %v2118_v27 = vadd.f32 %v2117_v23, %v2029_v54  ;;  %v2033_v31 = vpop.f32.mrf.mxu1  ;;  %v2032_v23 = vadd.f32 %v2031_v57, %v4060_v2  ;;  %v451_v3 = vmax.f32 %v403_v38, 0.0 }
 0x155   : > { %v2293_v61 = vpop.f32.mrf.mxu0  ;;  %v355_v54 = vmul.f32 %v3894_v51, %v305_v39  ;;  %v1010_v39 = vsel %vm3628_vm3, %v3869_v49, 0 }
 0x156   : > { %v4356_v59 = vadd.f32 %v2293_v61, %v2205_v36  ;;  %v1175_v36 = vor.u32 %v1174_v25, %v1170_v56  ;;  %v499_v9 = vpack.c.bf16 %v451_v3, %v451_v3  ;;  %v1293_v25 = vrot.slane %v3784_v63, 1  ;;  %v3313_v3 = vld [vmem:[%s4640_s1 + $0x140] sm:$0xff] }
 0x157   : > { %v405_v30 = vadd.f32 %v3903_v8, %v355_v54  ;;  %v1294_v8 = vrot.slane %v1009_v7, 1  ;;  %v2034_v56 = vadd.f32 %v2033_v31, %v4082_v50  ;;  %v3321_v50 = vld [vmem:[%s4640_s1 + $0x180] sm:$0xff]  ;;  %v1182_v7 = vshrl.u32 %v3876_v14, 16  ;;  %2365 = vmatpush.bf16.msra.mxu1 %v3313_v3 }
 0x158   : > { %4710 = vst [vmem:[#allocation38_spill] sm:$0xff] %v4356_v59  ;;  %2332 = vmatmul.bf16.gmra.mxu0 %v4339_v21  ;;  %2159 = vmatmul.bf16.gmra.mxu2 %v4352_v18  ;;  %v452_v59 = vmax.f32 %v404_v0, 0.0  ;;  %v4368_v51 = vsel %vm630_vm2, %v1175_v36, %v1179_v62  ;;  %v595_v0 = vunpack.c.l.b16 %v499_v9  ;;  %v1189_v31 = vshll.u32 %v1010_v39, 16 }
 0x159   : > { %v453_v2 = vmax.f32 %v405_v30, 0.0  ;;  %v4381_v62 = vsel %vm1253_vm4, %v1293_v25, %v1294_v8  ;;  %2454 = vmatpush.bf16.msra.mxu2 %v3321_v50  ;;  %v3329_v30 = vld [vmem:[%s4640_s1 + $0x1c0] sm:$0xff]  ;;  %v1296_v50 = vrot.slane %v3876_v14, 1 }
 0x15a   : > { %v2206_v28 = vpop.f32.mrf.mxu3  ;;  %v500_v57 = vpack.c.bf16 %v452_v59, %v452_v59  ;;  %v1191_v25 = vrot.slane %v1189_v31, 1  ;;  %2543 = vmatpush.bf16.msra.mxu3 %v3329_v30 }
 0x15b   : > { %v2207_v42 = vadd.f32 %v2206_v28, %v2118_v27  ;;  %v2120_v61 = vpop.f32.mrf.mxu2  ;;  %v501_v38 = vpack.c.bf16 %v453_v2, %v453_v2 }
 0x15c   : > { %v2121_v21 = vadd.f32 %v2120_v61, %v2032_v23  ;;  %v2036_v47 = vpop.f32.mrf.mxu1  ;;  %v596_v28 = vunpack.c.l.b16 %v500_v57 }
 0x15d   : > { %v2295_v18 = vpop.f32.mrf.mxu0  ;;  %v2037_v9 = vadd.f32 %v2036_v47, %v4096_v52 }
 0x15e   : > { %v4370_v60 = vadd.f32 %v2295_v18, %v2207_v42  ;;  %v1184_v18 = vshll.u32 %v3876_v14, 16  ;;  %v628_v61 = vpack.c.b16 %v596_v28, %v595_v0  ;;  %v3337_v0 = vld [vmem:[%s4640_s1 + $0x200] sm:$0xff] }
 0x15f   : > { %2248 = vmatmul.bf16.gmra.mxu3 %v3784_v63  ;;  %2075 = vmatmul.bf16.gmra.mxu1 %v4368_v51 }
 0x160   : > { %v1186_v49 = vrot.slane %v1184_v18, 1  ;;  %v814_v18 = vshll.u32 %v628_v61, 16  ;;  %v812_v52 = vshrl.u32 %v628_v61, 16  ;;  %2632 = vmatpush.bf16.msra.mxu0 %v3337_v0 }
 0x162   : > { %v2209_v27 = vpop.f32.mrf.mxu3  ;;  %v1187_v57 = vor.u32 %v1186_v49, %v1182_v7  ;;  %v816_v47 = vrot.slane %v814_v18, 1  ;;  %v1297_v7 = vrot.slane %v1010_v39, 1  ;;  %v1194_v39 = vshrl.u32 %v3992_v44, 16 }
 0x163   : > { %v2210_v41 = vadd.f32 %v2209_v27, %v2121_v21  ;;  %v2122_v54 = vpop.f32.mrf.mxu2  ;;  %v597_v21 = vunpack.c.l.b16 %v501_v38 }
 0x164   : > { %v2123_v23 = vadd.f32 %v2122_v54, %v2034_v56  ;;  %v2038_v36 = vpop.f32.mrf.mxu1  ;;  %v4402_v28 = vsel %vm630_vm2, %v1187_v57, %v1191_v25 }
 0x165   : > { %v2298_v59 = vpop.f32.mrf.mxu0  ;;  %v629_v56 = vpack.c.b16 %v597_v21, %v597_v21  ;;  %v2039_v31 = vadd.f32 %v2038_v36, %v4113_v16  ;;  %v1196_v21 = vshll.u32 %v3992_v44, 16 }
 0x166   : > { %v4387_v42 = vadd.f32 %v2298_v59, %v2210_v41 }
 0x168   : > { %2337 = vmatmul.bf16.gmra.mxu0 %v4368_v51  ;;  %2164 = vmatmul.bf16.gmra.mxu2 %v4381_v62 }
 0x16a   : > { %v2211_v2 = vpop.f32.mrf.mxu3 }
 0x16b   : > { %v2212_v8 = vadd.f32 %v2211_v2, %v2123_v23  ;;  %v2125_v27 = vpop.f32.mrf.mxu2  ;;  %v819_v23 = vshll.u32 %v629_v56, 16  ;;  %v1011_v2 = vsel %vm3628_vm3, %v3984_v29, 0  ;;  %v1198_v56 = vrot.slane %v1196_v21, 1 }
 0x16c   : > { %v2126_v41 = vadd.f32 %v2125_v27, %v2037_v9  ;;  %v2041_v54 = vpop.f32.mrf.mxu1  ;;  %v817_v9 = vor.u32 %v816_v47, %v812_v52  ;;  %v4415_v27 = vsel %vm1253_vm4, %v1296_v50, %v1297_v7  ;;  %v1201_v16 = vshll.u32 %v1011_v2, 16 }
 0x16d   : > { %v2300_v38 = vpop.f32.mrf.mxu0  ;;  %v821_v57 = vrot.slane %v819_v23, 1 }
 0x16e   : > { %v4404_v59 = vadd.f32 %v2300_v38, %v2212_v8  ;;  %v1199_v38 = vor.u32 %v1198_v56, %v1194_v39  ;;  %v1203_v0 = vrot.slane %v1201_v16, 1 }
 0x16f   : > { %2253 = vmatmul.bf16.gmra.mxu3 %v3876_v14  ;;  %2080 = vmatmul.bf16.gmra.mxu1 %v4402_v28  ;;  %v822_v18 = vsel %vm630_vm2, %v817_v9, %v821_v57 }
 0x170   : > { %v936_v52 = vshrl.u32 %v822_v18, 16 }
 0x172   : > { %v2214_v49 = vpop.f32.mrf.mxu3  ;;  %v938_v21 = vrot.slane %v936_v52, 7 }
 0x173   : > { %v2215_v30 = vadd.f32 %v2214_v49, %v2126_v41  ;;  %v2127_v3 = vpop.f32.mrf.mxu2  ;;  %v2042_v41 = vadd.f32 %v2041_v54, %v4137_v48  ;;  %v1299_v48 = vrot.slane %v3992_v44, 1  ;;  %v1300_v54 = vrot.slane %v1011_v2, 1 }
 0x174   : > { %v2128_v61 = vadd.f32 %v2127_v3, %v2039_v31  ;;  %v2043_v25 = vpop.f32.mrf.mxu1  ;;  %v4425_v31 = vsel %vm630_vm2, %v1199_v38, %v1203_v0  ;;  %v4448_v0 = vsel %vm3628_vm3, %v938_v21, 0 }
 0x175   : > { %v2303_v8 = vpop.f32.mrf.mxu0  ;;  %v2044_v57 = vadd.f32 %v2043_v25, %v4161_v45 }
 0x176   : > { %v4418_v36 = vadd.f32 %v2303_v8, %v2215_v30  ;;  %v939_v30 = vshll.u32 %v822_v18, 16  ;;  %v4434_v18 = vsel %vm1253_vm4, %v1299_v48, %v1300_v54  ;;  %v1326_v54 = vshll.u32 %v4448_v0, 16 }
 0x178   : > { %2342 = vmatmul.bf16.gmra.mxu0 %v4402_v28  ;;  %2169 = vmatmul.bf16.gmra.mxu2 %v4415_v27  ;;  %v1328_v20 = vrot.slane %v1326_v54, 1 }
 0x17a   : > { %v2216_v29 = vpop.f32.mrf.mxu3 }
 0x17b   : > { %v2217_v47 = vadd.f32 %v2216_v29, %v2128_v61  ;;  %v2130_v23 = vpop.f32.mrf.mxu2  ;;  %v941_v61 = vor.u32 %v939_v30, %v938_v21 }
 0x17c   : > { %v2131_v50 = vadd.f32 %v2130_v23, %v2042_v41  ;;  %v2046_v7 = vpop.f32.mrf.mxu1 }
 0x17d   : > { %v2305_v49 = vpop.f32.mrf.mxu0  ;;  %v4438_v41 = vsel %vm3628_vm3, 0, %v941_v61  ;;  %v2047_v25 = vadd.f32 %v2046_v7, %v4178_v40 }
 0x17e   : > { %v4427_v3 = vadd.f32 %v2305_v49, %v2217_v47  ;;  %v1321_v45 = vshll.u32 %v4438_v41, 16  ;;  %v1319_v30 = vshrl.u32 %v4438_v41, 16 }
 0x17f   : > { %2258 = vmatmul.bf16.gmra.mxu3 %v3992_v44  ;;  %2085 = vmatmul.bf16.gmra.mxu1 %v4425_v31 }
 0x180   : > { %v1323_v48 = vrot.slane %v1321_v45, 1 }
 0x182   : > { %v2219_v9 = vpop.f32.mrf.mxu3  ;;  %v1324_v40 = vor.u32 %v1323_v48, %v1319_v30 }
 0x183   : > { %v2220_v8 = vadd.f32 %v2219_v9, %v2131_v50  ;;  %v2132_v39 = vpop.f32.mrf.mxu2 }
 0x184   : > { %v2133_v56 = vadd.f32 %v2132_v39, %v2044_v57  ;;  %v2048_v16 = vpop.f32.mrf.mxu1 }
 0x185   : > { %v2308_v29 = vpop.f32.mrf.mxu0  ;;  %v2049_v21 = vadd.f32 %v2048_v16, %v4196_v10 }
 0x186   : > { %v4440_v38 = vadd.f32 %v2308_v29, %v2220_v8  ;;  %v4458_v29 = vsel %vm630_vm2, %v1324_v40, %v1328_v20 }
 0x188   : > { %2347 = vmatmul.bf16.gmra.mxu0 %v4425_v31  ;;  %2174 = vmatmul.bf16.gmra.mxu2 %v4434_v18 }
 0x18a   : > { %v2221_v2 = vpop.f32.mrf.mxu3 }
 0x18b   : > { %v2222_v52 = vadd.f32 %v2221_v2, %v2133_v56  ;;  %v2135_v47 = vpop.f32.mrf.mxu2 }
 0x18c   : > { %v2136_v23 = vadd.f32 %v2135_v47, %v2047_v25  ;;  %v2051_v50 = vpop.f32.mrf.mxu1 }
 0x18d   : > { %v2310_v49 = vpop.f32.mrf.mxu0  ;;  %v2052_v2 = vadd.f32 %v2051_v50, %v4089_v46 }
 0x18e   : > { %v4452_v9 = vadd.f32 %v2310_v49, %v2222_v52 }
 0x18f   : > { %2263 = vmatmul.bf16.gmra.mxu3 %v4438_v41  ;;  %2366 = vmatmul.bf16.vlgmr.msra.gmra.mxu1 %v4024_v26 }
 0x192   : > { %v2224_v7 = vpop.f32.mrf.mxu3 }
 0x193   : > { %v2225_v57 = vadd.f32 %v2224_v7, %v2136_v23  ;;  %v2137_v61 = vpop.f32.mrf.mxu2 }
 0x194   : > { %v2138_v8 = vadd.f32 %v2137_v61, %v2049_v21  ;;  %v2053_v39 = vpop.f32.mrf.mxu1 }
 0x195   : > { %v2313_v56 = vpop.f32.mrf.mxu0  ;;  %v2054_v30 = vadd.f32 %v2053_v39, %v4108_v4 }
 0x196   : > { %v4460_v45 = vadd.f32 %v2313_v56, %v2225_v57 }
 0x198   : > { %2352 = vmatmul.bf16.gmra.mxu0 %v4458_v29  ;;  %2455 = vmatmul.bf16.vlgmr.msra.gmra.mxu2 %v3909_v12 }
 0x19a   : > { %v2226_v26 = vpop.f32.mrf.mxu3 }
 0x19b   : > { %v2227_v25 = vadd.f32 %v2226_v26, %v2138_v8  ;;  %v2140_v52 = vpop.f32.mrf.mxu2 }
 0x19c   : > { %v2141_v10 = vadd.f32 %v2140_v52, %v2052_v2  ;;  %v2056_v16 = vpop.f32.mrf.mxu1 }
 0x19d   : > { %v2315_v47 = vpop.f32.mrf.mxu0  ;;  %v2057_v7 = vadd.f32 %v2056_v16, %v4129_v33 }
 0x19e   : > { %v4465_v23 = vadd.f32 %v2315_v47, %v2227_v25 }
 0x19f   : > { %2544 = vmatmul.bf16.vlgmr.msra.gmra.mxu3 %v4038_v43  ;;  %2371 = vmatmul.bf16.gmra.mxu1 %v4047_v53 }
 0x1a2   : > { %v2229_v49 = vpop.f32.mrf.mxu3 }
 0x1a3   : > { %v2230_v48 = vadd.f32 %v2229_v49, %v2141_v10  ;;  %v2142_v54 = vpop.f32.mrf.mxu2 }
 0x1a4   : > { %v2143_v12 = vadd.f32 %v2142_v54, %v2054_v30  ;;  %v2058_v40 = vpop.f32.mrf.mxu1 }
 0x1a5   : > { %v2318_v20 = vpop.f32.mrf.mxu0  ;;  %v2059_v56 = vadd.f32 %v2058_v40, %v4152_v22 }
 0x1a6   : > { %v4470_v46 = vadd.f32 %v2318_v20, %v2230_v48  ;;  %v4711_v48 = vld [vmem:[#allocation11_spill] sm:$0xff] }
 0x1a8   : > { %2633 = vmatmul.bf16.vlgmr.msra.gmra.mxu0 %v4047_v53  ;;  %2460 = vmatmul.bf16.gmra.mxu2 %v4009_v15 }
 0x1aa   : > { %v2231_v50 = vpop.f32.mrf.mxu3 }
 0x1ab   : > { %v2232_v43 = vadd.f32 %v2231_v50, %v2143_v12  ;;  %v2145_v21 = vpop.f32.mrf.mxu2  ;;  %v4712_v12 = vld [vmem:[#allocation22_spill] sm:$0xff] }
 0x1ac   : > { %v2146_v57 = vadd.f32 %v2145_v21, %v2057_v7  ;;  %v2061_v61 = vpop.f32.mrf.mxu1 }
 0x1ad   : > { %v2320_v8 = vpop.f32.mrf.mxu0  ;;  %v2062_v10 = vadd.f32 %v2061_v61, %v4174_v55 }
 0x1ae   : > { %v4475_v4 = vadd.f32 %v2320_v8, %v2232_v43  ;;  %v4713_v43 = vld [vmem:[#allocation5_spill] sm:$0xff] }
 0x1af   : > { %2549 = vmatmul.bf16.gmra.mxu3 %v4053_v1  ;;  %2376 = vmatmul.bf16.gmra.mxu1 %v4068_v17 }
 0x1b2   : > { %v2234_v39 = vpop.f32.mrf.mxu3 }
 0x1b3   : > { %v2235_v53 = vadd.f32 %v2234_v39, %v2146_v57  ;;  %v2147_v26 = vpop.f32.mrf.mxu2  ;;  %v4714_v57 = vld [vmem:[#allocation25_spill] sm:$0xff] }
 0x1b4   : > { %v2148_v15 = vadd.f32 %v2147_v26, %v2059_v56  ;;  %v2063_v2 = vpop.f32.mrf.mxu1 }
 0x1b5   : > { %v2323_v25 = vpop.f32.mrf.mxu0  ;;  %v2064_v40 = vadd.f32 %v2063_v2, %v4712_v12  ;;  %v4716_v2 = vld [vmem:[#allocation15_spill] sm:$0xff] }
 0x1b6   : > { %v4480_v33 = vadd.f32 %v2323_v25, %v2235_v53 }
 0x1b8   : > { %2638 = vmatmul.bf16.gmra.mxu0 %v4068_v17  ;;  %2465 = vmatmul.bf16.gmra.mxu2 %v3688_v13 }
 0x1ba   : > { %v2236_v52 = vpop.f32.mrf.mxu3 }
 0x1bb   : > { %v2237_v1 = vadd.f32 %v2236_v52, %v2148_v15  ;;  %v2150_v16 = vpop.f32.mrf.mxu2  ;;  %v4715_v15 = vld [vmem:[#allocation13_spill] sm:$0xff]  ;;  %v4717_v52 = vld [vmem:[#allocation27_spill] sm:$0xff] }
 0x1bc   : > { %v2151_v47 = vadd.f32 %v2150_v16, %v2062_v10  ;;  %v2066_v49 = vpop.f32.mrf.mxu1 }
 0x1bd   : > { %v2325_v30 = vpop.f32.mrf.mxu0  ;;  %v2067_v61 = vadd.f32 %v2066_v49, %v4714_v57  ;;  %v4720_v57 = vld [vmem:[#allocation17_spill] sm:$0xff] }
 0x1be   : > { %v4485_v22 = vadd.f32 %v2325_v30, %v2237_v1 }
 0x1bf   : > { %2554 = vmatmul.bf16.gmra.mxu3 %v4085_v35  ;;  %2381 = vmatmul.bf16.gmra.mxu1 %v4711_v48 }
 0x1c2   : > { %v2239_v54 = vpop.f32.mrf.mxu3 }
 0x1c3   : > { %v2240_v17 = vadd.f32 %v2239_v54, %v2151_v47  ;;  %v2152_v20 = vpop.f32.mrf.mxu2  ;;  %v4718_v54 = vld [vmem:[#allocation7_spill] sm:$0xff] }
 0x1c4   : > { %v2153_v13 = vadd.f32 %v2152_v20, %v2064_v40  ;;  %v2068_v50 = vpop.f32.mrf.mxu1  ;;  %v4719_v40 = vld [vmem:[#allocation12_spill] sm:$0xff] }
 0x1c5   : > { %v2328_v7 = vpop.f32.mrf.mxu0  ;;  %v2069_v10 = vadd.f32 %v2068_v50, %v4717_v52 }
 0x1c6   : > { %v4490_v55 = vadd.f32 %v2328_v7, %v2240_v17 }
 0x1c8   : > { %2643 = vmatmul.bf16.gmra.mxu0 %v4711_v48  ;;  %2470 = vmatmul.bf16.gmra.mxu2 %v4713_v43 }
 0x1ca   : > { %v2241_v21 = vpop.f32.mrf.mxu3 }
 0x1cb   : > { %v2242_v35 = vadd.f32 %v2241_v21, %v2153_v13  ;;  %v2155_v8 = vpop.f32.mrf.mxu2 }
 0x1cc   : > { %v2156_v39 = vadd.f32 %v2155_v8, %v2067_v61  ;;  %v2071_v56 = vpop.f32.mrf.mxu1  ;;  %v4721_v61 = vld [vmem:[#allocation19_spill] sm:$0xff]  ;;  %v4722_v8 = vld [vmem:[#allocation14_spill] sm:$0xff] }
 0x1cd   : > { %v2330_v53 = vpop.f32.mrf.mxu0  ;;  %v2072_v17 = vadd.f32 %v2071_v56, %v4719_v40 }
 0x1ce   : > { %v4495_v26 = vadd.f32 %v2330_v53, %v2242_v35 }
 0x1cf   : > { %2559 = vmatmul.bf16.gmra.mxu3 %v4715_v15  ;;  %2386 = vmatmul.bf16.gmra.mxu1 %v4716_v2 }
 0x1d2   : > { %v2244_v25 = vpop.f32.mrf.mxu3 }
 0x1d3   : > { %v2245_v1 = vadd.f32 %v2244_v25, %v2156_v39  ;;  %v2157_v16 = vpop.f32.mrf.mxu2 }
 0x1d4   : > { %v2158_v47 = vadd.f32 %v2157_v16, %v2069_v10  ;;  %v2073_v30 = vpop.f32.mrf.mxu1  ;;  %v4723_v10 = vld [vmem:[#allocation8_spill] sm:$0xff] }
 0x1d5   : > { %v2333_v48 = vpop.f32.mrf.mxu0  ;;  %v2074_v39 = vadd.f32 %v2073_v30, %v4722_v8  ;;  %v4724_v16 = vld [vmem:[#allocation16_spill] sm:$0xff] }
 0x1d6   : > { %v4500_v49 = vadd.f32 %v2333_v48, %v2245_v1 }
 0x1d8   : > { %2648 = vmatmul.bf16.gmra.mxu0 %v4716_v2  ;;  %2475 = vmatmul.bf16.gmra.mxu2 %v4718_v54 }
 0x1da   : > { %v2246_v12 = vpop.f32.mrf.mxu3 }
 0x1db   : > { %v2247_v20 = vadd.f32 %v2246_v12, %v2158_v47  ;;  %v2160_v13 = vpop.f32.mrf.mxu2 }
 0x1dc   : > { %v2161_v7 = vadd.f32 %v2160_v13, %v2072_v17  ;;  %v2076_v43 = vpop.f32.mrf.mxu1  ;;  %v4726_v13 = vld [vmem:[#allocation23_spill] sm:$0xff] }
 0x1dd   : > { %v2335_v21 = vpop.f32.mrf.mxu0  ;;  %v2077_v47 = vadd.f32 %v2076_v43, %v4724_v16 }
 0x1de   : > { %v4505_v50 = vadd.f32 %v2335_v21, %v2247_v20  ;;  %v4725_v20 = vld [vmem:[#allocation20_spill] sm:$0xff]  ;;  %v4727_v21 = vld [vmem:[#allocation18_spill] sm:$0xff] }
 0x1df   : > { %2564 = vmatmul.bf16.gmra.mxu3 %v4720_v57  ;;  %2391 = vmatmul.bf16.gmra.mxu1 %v4721_v61 }
 0x1e2   : > { %v2249_v35 = vpop.f32.mrf.mxu3 }
 0x1e3   : > { %v2250_v53 = vadd.f32 %v2249_v35, %v2161_v7  ;;  %v2162_v15 = vpop.f32.mrf.mxu2 }
 0x1e4   : > { %v2163_v2 = vadd.f32 %v2162_v15, %v2074_v39  ;;  %v2078_v25 = vpop.f32.mrf.mxu1  ;;  %v4728_v15 = vld [vmem:[#allocation3_spill] sm:$0xff] }
 0x1e5   : > { %v2338_v52 = vpop.f32.mrf.mxu0  ;;  %v2079_v57 = vadd.f32 %v2078_v25, %v4727_v21 }
 0x1e6   : > { %v4510_v56 = vadd.f32 %v2338_v52, %v2250_v53  ;;  %v4729_v52 = vld [vmem:[#allocation21_spill] sm:$0xff] }
 0x1e8   : > { %2653 = vmatmul.bf16.gmra.mxu0 %v4721_v61  ;;  %2480 = vmatmul.bf16.gmra.mxu2 %v4723_v10 }
 0x1ea   : > { %v2251_v1 = vpop.f32.mrf.mxu3 }
 0x1eb   : > { %v2252_v48 = vadd.f32 %v2251_v1, %v2163_v2  ;;  %v2165_v54 = vpop.f32.mrf.mxu2 }
 0x1ec   : > { %v2166_v12 = vadd.f32 %v2165_v54, %v2077_v47  ;;  %v2081_v40 = vpop.f32.mrf.mxu1 }
 0x1ed   : > { %v2340_v17 = vpop.f32.mrf.mxu0  ;;  %v2082_v10 = vadd.f32 %v2081_v40, %v4729_v52 }
 0x1ee   : > { %v4515_v30 = vadd.f32 %v2340_v17, %v2252_v48  ;;  %v4730_v17 = vld [vmem:[#allocation24_spill] sm:$0xff] }
 0x1ef   : > { %2569 = vmatmul.bf16.gmra.mxu3 %v4725_v20  ;;  %2396 = vmatmul.bf16.gmra.mxu1 %v4726_v13 }
 0x1f2   : > { %v2254_v7 = vpop.f32.mrf.mxu3 }
 0x1f3   : > { %v2255_v61 = vadd.f32 %v2254_v7, %v2166_v12  ;;  %v2167_v35 = vpop.f32.mrf.mxu2 }
 0x1f4   : > { %v2168_v8 = vadd.f32 %v2167_v35, %v2079_v57  ;;  %v2083_v39 = vpop.f32.mrf.mxu1  ;;  %v4731_v35 = vld [vmem:[#allocation6_spill] sm:$0xff] }
 0x1f5   : > { %v2343_v53 = vpop.f32.mrf.mxu0  ;;  %v2084_v20 = vadd.f32 %v2083_v39, %v4730_v17 }
 0x1f6   : > { %v4520_v43 = vadd.f32 %v2343_v53, %v2255_v61  ;;  %v4732_v53 = vld [vmem:[#allocation26_spill] sm:$0xff] }
 0x1f8   : > { %2658 = vmatmul.bf16.gmra.mxu0 %v4726_v13  ;;  %2485 = vmatmul.bf16.gmra.mxu2 %v4728_v15 }
 0x1fa   : > { %v2256_v2 = vpop.f32.mrf.mxu3 }
 0x1fb   : > { %v2257_v1 = vadd.f32 %v2256_v2, %v2168_v8  ;;  %v2170_v16 = vpop.f32.mrf.mxu2 }
 0x1fc   : > { %v2171_v47 = vadd.f32 %v2170_v16, %v2082_v10  ;;  %v2086_v48 = vpop.f32.mrf.mxu1  ;;  %v4733_v16 = vld [vmem:[#allocation29_spill] sm:$0xff] }
 0x1fd   : > { %v2345_v54 = vpop.f32.mrf.mxu0  ;;  %v2087_v15 = vadd.f32 %v2086_v48, %v4732_v53 }
 0x1fe   : > { %v4525_v25 = vadd.f32 %v2345_v54, %v2257_v1 }
 0x1ff   : > { %2574 = vmatmul.bf16.gmra.mxu3 %v4223_v58  ;;  %2401 = vmatmul.bf16.gmra.mxu1 %v4239_v34 }
 0x202   : > { %v2259_v12 = vpop.f32.mrf.mxu3 }
 0x203   : > { %v2260_v13 = vadd.f32 %v2259_v12, %v2171_v47  ;;  %v2172_v7 = vpop.f32.mrf.mxu2  ;;  %v4734_v47 = vld [vmem:[#allocation30_spill] sm:$0xff]  ;;  %v4735_v12 = vld [vmem:[#allocation28_spill] sm:$0xff] }
 0x204   : > { %v2173_v21 = vadd.f32 %v2172_v7, %v2084_v20  ;;  %v2088_v57 = vpop.f32.mrf.mxu1 }
 0x205   : > { %v2348_v61 = vpop.f32.mrf.mxu0  ;;  %v2089_v17 = vadd.f32 %v2088_v57, %v4735_v12  ;;  %v4736_v57 = vld [vmem:[#allocation31_spill] sm:$0xff] }
 0x206   : > { %v4530_v40 = vadd.f32 %v2348_v61, %v2260_v13 }
 0x208   : > { %2663 = vmatmul.bf16.gmra.mxu0 %v4239_v34  ;;  %2490 = vmatmul.bf16.gmra.mxu2 %v4731_v35 }
 0x20a   : > { %v2261_v8 = vpop.f32.mrf.mxu3 }
 0x20b   : > { %v2262_v58 = vadd.f32 %v2261_v8, %v2173_v21  ;;  %v2175_v2 = vpop.f32.mrf.mxu2 }
 0x20c   : > { %v2176_v52 = vadd.f32 %v2175_v2, %v2087_v15  ;;  %v2367_v10 = vpop.f32.mrf.mxu1 }
 0x20d   : > { %v2350_v1 = vpop.f32.mrf.mxu0  ;;  %v2368_v2 = vadd.f32 %v2367_v10, %v4736_v57 }
 0x20e   : > { %v4535_v39 = vadd.f32 %v2350_v1, %v2262_v58 }
 0x20f   : > { %2579 = vmatmul.bf16.gmra.mxu3 %v4733_v16  ;;  %2406 = vmatmul.bf16.gmra.mxu1 %v4734_v47 }
 0x212   : > { %v2264_v54 = vpop.f32.mrf.mxu3 }
 0x213   : > { %v2265_v34 = vadd.f32 %v2264_v54, %v2176_v52  ;;  %v2177_v20 = vpop.f32.mrf.mxu2 }
 0x214   : > { %v2178_v13 = vadd.f32 %v2177_v20, %v2089_v17  ;;  %v2369_v7 = vpop.f32.mrf.mxu1 }
 0x215   : > { %v2353_v61 = vpop.f32.mrf.mxu0 }
 0x216   : > { %v4540_v48 = vadd.f32 %v2353_v61, %v2265_v34 }
 0x218   : > { %2668 = vmatmul.bf16.gmra.mxu0 %v4734_v47  ;;  %2495 = vmatmul.bf16.gmra.mxu2 %v3862_v32  ;;  %v2370_v32 = vadd.f32 %v2369_v7, %v4285_v19 }
 0x21a   : > { %v2266_v21 = vpop.f32.mrf.mxu3 }
 0x21b   : > { %v2267_v35 = vadd.f32 %v2266_v21, %v2178_v13  ;;  %v2456_v8 = vpop.f32.mrf.mxu2 }
 0x21c   : > { %v2372_v53 = vpop.f32.mrf.mxu1  ;;  %v2457_v16 = vadd.f32 %v2456_v8, %v2368_v2 }
 0x21d   : > { %v2355_v15 = vpop.f32.mrf.mxu0  ;;  %v2373_v21 = vadd.f32 %v2372_v53, %v4300_v37 }
 0x21e   : > { %v4544_v58 = vadd.f32 %v2355_v15, %v2267_v35 }
 0x21f   : > { %2584 = vmatmul.bf16.gmra.mxu3 %v4283_v24  ;;  %2411 = vmatmul.bf16.gmra.mxu1 %v4296_v11 }
 0x222   : > { %v2545_v52 = vpop.f32.mrf.mxu3 }
 0x223   : > { %v2458_v1 = vpop.f32.mrf.mxu2  ;;  %v2546_v17 = vadd.f32 %v2545_v52, %v2457_v16  ;;  %v4738_v16 = vld [vmem:[#allocation32_spill] sm:$0xff] }
 0x224   : > { %v2374_v47 = vpop.f32.mrf.mxu1  ;;  %v2459_v12 = vadd.f32 %v2458_v1, %v2370_v32 }
 0x225   : > { %v2634_v54 = vpop.f32.mrf.mxu0 }
 0x226   : > { %v2635_v13 = vadd.f32 %v2634_v54, %v2546_v17  ;;  %v2375_v54 = vadd.f32 %v2374_v47, %v4738_v16 }
 0x228   : > { %2673 = vmatmul.bf16.gmra.mxu0 %v4296_v11  ;;  %2500 = vmatmul.bf16.gmra.mxu2 %v3971_v5  ;;  %v4737_v5 = vld [vmem:[#allocation33_spill] sm:$0xff]  ;;  %v2751_v11 = vmul.f32 %v2635_v13, %v2635_v13 }
 0x22a   : > { %v2547_v34 = vpop.f32.mrf.mxu3 }
 0x22b   : > { %v2548_v24 = vadd.f32 %v2547_v34, %v2459_v12  ;;  %v2461_v20 = vpop.f32.mrf.mxu2  ;;  %v4739_v34 = vld [vmem:[#allocation4_spill] sm:$0xff] }
 0x22c   : > { %v2377_v61 = vpop.f32.mrf.mxu1  ;;  %v2462_v19 = vadd.f32 %v2461_v20, %v2373_v21 }
 0x22d   : > { %v2636_v10 = vpop.f32.mrf.mxu0 }
 0x22e   : > { %v2637_v35 = vadd.f32 %v2636_v10, %v2548_v24 }
 0x22f   : > { %2589 = vmatmul.bf16.gmra.mxu3 %v4306_v6  ;;  %2416 = vmatmul.bf16.gmra.mxu1 %v4737_v5 }
 0x230   : > { %v2714_v7 = vadd.f32 %v2637_v35, %v2635_v13  ;;  %v2752_v8 = vmul.f32 %v2637_v35, %v2637_v35  ;;  %v3380_v15 = vpack.c.bf16 %v2637_v35, %v2635_v13 }
 0x232   : > { %v2783_v57 = vadd.f32 %v2752_v8, %v2751_v11  ;;  %3381 = vst [vmem:[%s4557_s11] sm:$0xff] %v3380_v15   ;;  %v2550_v2 = vpop.f32.mrf.mxu3  ;;  %v4741_v15 = vld [vmem:[#allocation35_spill] sm:$0xff] }
 0x233   : > { %v2551_v37 = vadd.f32 %v2550_v2, %v2462_v19  ;;  %v2463_v53 = vpop.f32.mrf.mxu2  ;;  %v4740_v19 = vld [vmem:[#allocation34_spill] sm:$0xff]  ;;  %v4742_v2 = vld [vmem:[#allocation37_spill] sm:$0xff] }
 0x234   : > { %v2379_v52 = vpop.f32.mrf.mxu1  ;;  %v2464_v12 = vadd.f32 %v2463_v53, %v2375_v54  ;;  %v2378_v11 = vadd.f32 %v2377_v61, %v4740_v19 }
 0x235   : > { %v2639_v1 = vpop.f32.mrf.mxu0 }
 0x236   : > { %v2640_v32 = vadd.f32 %v2639_v1, %v2551_v37 }
 0x238   : > { %2678 = vmatmul.bf16.gmra.mxu0 %v4737_v5  ;;  %v2715_v6 = vadd.f32 %v2714_v7, %v2640_v32  ;;  %v2753_v17 = vmul.f32 %v2640_v32, %v2640_v32  ;;  %2505 = vmatmul.bf16.gmra.mxu2 %v4739_v34 }
 0x23a   : > { %v2784_v24 = vadd.f32 %v2783_v57, %v2753_v17  ;;  %v2552_v20 = vpop.f32.mrf.mxu3  ;;  %v4743_v17 = vld [vmem:[#allocation36_spill] sm:$0xff] }
 0x23b   : > { %v2553_v13 = vadd.f32 %v2552_v20, %v2464_v12  ;;  %v2466_v10 = vpop.f32.mrf.mxu2  ;;  %v2380_v34 = vadd.f32 %v2379_v52, %v4743_v17 }
 0x23c   : > { %v2382_v21 = vpop.f32.mrf.mxu1  ;;  %v2467_v47 = vadd.f32 %v2466_v10, %v2378_v11 }
 0x23d   : > { %v2641_v35 = vpop.f32.mrf.mxu0 }
 0x23e   : > { %v2642_v8 = vadd.f32 %v2641_v35, %v2553_v13 }
 0x23f   : > { %2594 = vmatmul.bf16.gmra.mxu3 %v4741_v15  ;;  %2421 = vmatmul.bf16.gmra.mxu1 %v4742_v2 }
 0x240   : > { %v2716_v5 = vadd.f32 %v2715_v6, %v2642_v8  ;;  %v2754_v7 = vmul.f32 %v2642_v8, %v2642_v8  ;;  %v3385_v37 = vpack.c.bf16 %v2642_v8, %v2640_v32  ;;  %v4744_v8 = vld [vmem:[#allocation38_spill] sm:$0xff] }
 0x241   : > { %v2383_v15 = vadd.f32 %v2382_v21, %v4744_v8 }
 0x242   : > { %v2785_v53 = vadd.f32 %v2784_v24, %v2754_v7  ;;  %3465 = vst [vmem:[%s4557_s11 + $0x8] sm:$0xff] %v3385_v37   ;;  %v2555_v1 = vpop.f32.mrf.mxu3 }
 0x243   : > { %v2556_v57 = vadd.f32 %v2555_v1, %v2467_v47  ;;  %v2468_v16 = vpop.f32.mrf.mxu2 }
 0x244   : > { %v2384_v54 = vpop.f32.mrf.mxu1  ;;  %v2469_v61 = vadd.f32 %v2468_v16, %v2380_v34 }
 0x245   : > { %v2644_v12 = vpop.f32.mrf.mxu0 }
 0x246   : > { %v2645_v20 = vadd.f32 %v2644_v12, %v2556_v57  ;;  %v2385_v12 = vadd.f32 %v2384_v54, %v4370_v60 }
 0x248   : > { %2683 = vmatmul.bf16.gmra.mxu0 %v4742_v2  ;;  %v2717_v13 = vadd.f32 %v2716_v5, %v2645_v20  ;;  %v2755_v10 = vmul.f32 %v2645_v20, %v2645_v20  ;;  %2510 = vmatmul.bf16.gmra.mxu2 %v3784_v63 }
 0x24a   : > { %v2786_v6 = vadd.f32 %v2785_v53, %v2755_v10  ;;  %v2557_v32 = vpop.f32.mrf.mxu3 }
 0x24b   : > { %v2558_v24 = vadd.f32 %v2557_v32, %v2469_v61  ;;  %v2471_v35 = vpop.f32.mrf.mxu2 }
 0x24c   : > { %v2387_v19 = vpop.f32.mrf.mxu1  ;;  %v2472_v52 = vadd.f32 %v2471_v35, %v2383_v15 }
 0x24d   : > { %v2646_v11 = vpop.f32.mrf.mxu0 }
 0x24e   : > { %v2647_v47 = vadd.f32 %v2646_v11, %v2558_v24  ;;  %v2388_v24 = vadd.f32 %v2387_v19, %v4387_v42 }
 0x24f   : > { %2599 = vmatmul.bf16.gmra.mxu3 %v4368_v51  ;;  %2426 = vmatmul.bf16.gmra.mxu1 %v4381_v62 }
 0x250   : > { %v2718_v2 = vadd.f32 %v2717_v13, %v2647_v47  ;;  %v2756_v5 = vmul.f32 %v2647_v47, %v2647_v47  ;;  %v3390_v7 = vpack.c.bf16 %v2647_v47, %v2645_v20 }
 0x252   : > { %v2787_v37 = vadd.f32 %v2786_v6, %v2756_v5  ;;  %3466 = vst [vmem:[%s4557_s11 + $0x10] sm:$0xff] %v3390_v7   ;;  %v2560_v63 = vpop.f32.mrf.mxu3 }
 0x253   : > { %v2561_v53 = vadd.f32 %v2560_v63, %v2472_v52  ;;  %v2473_v1 = vpop.f32.mrf.mxu2 }
 0x254   : > { %v2389_v57 = vpop.f32.mrf.mxu1  ;;  %v2474_v21 = vadd.f32 %v2473_v1, %v2385_v12 }
 0x255   : > { %v2649_v16 = vpop.f32.mrf.mxu0  ;;  %v2390_v5 = vadd.f32 %v2389_v57, %v4404_v59 }
 0x256   : > { %v2650_v17 = vadd.f32 %v2649_v16, %v2561_v53 }
 0x258   : > { %2688 = vmatmul.bf16.gmra.mxu0 %v4381_v62  ;;  %v2719_v51 = vadd.f32 %v2718_v2, %v2650_v17  ;;  %v2757_v34 = vmul.f32 %v2650_v17, %v2650_v17  ;;  %2515 = vmatmul.bf16.gmra.mxu2 %v3876_v14 }
 0x25a   : > { %v2788_v61 = vadd.f32 %v2787_v37, %v2757_v34  ;;  %v2562_v20 = vpop.f32.mrf.mxu3 }
 0x25b   : > { %v2563_v13 = vadd.f32 %v2562_v20, %v2474_v21  ;;  %v2476_v10 = vpop.f32.mrf.mxu2 }
 0x25c   : > { %v2392_v6 = vpop.f32.mrf.mxu1  ;;  %v2477_v60 = vadd.f32 %v2476_v10, %v2388_v24 }
 0x25d   : > { %v2651_v32 = vpop.f32.mrf.mxu0 }
 0x25e   : > { %v2652_v35 = vadd.f32 %v2651_v32, %v2563_v13 }
 0x25f   : > { %2604 = vmatmul.bf16.gmra.mxu3 %v4402_v28  ;;  %2431 = vmatmul.bf16.gmra.mxu1 %v4415_v27 }
 0x260   : > { %v2720_v62 = vadd.f32 %v2719_v51, %v2652_v35  ;;  %v2758_v54 = vmul.f32 %v2652_v35, %v2652_v35  ;;  %v3395_v11 = vpack.c.bf16 %v2652_v35, %v2650_v17  ;;  %v2393_v17 = vadd.f32 %v2392_v6, %v4418_v36 }
 0x262   : > { %v2789_v8 = vadd.f32 %v2788_v61, %v2758_v54  ;;  %3467 = vst [vmem:[%s4557_s11 + $0x18] sm:$0xff] %v3395_v11   ;;  %v2565_v14 = vpop.f32.mrf.mxu3  ;;  %v1334_v54 = vrot.slane %v4448_v0, 1 }
 0x263   : > { %v2566_v15 = vadd.f32 %v2565_v14, %v2477_v60  ;;  %v2478_v47 = vpop.f32.mrf.mxu2 }
 0x264   : > { %v2394_v52 = vpop.f32.mrf.mxu1  ;;  %v2479_v42 = vadd.f32 %v2478_v47, %v2390_v5 }
 0x265   : > { %v2654_v2 = vpop.f32.mrf.mxu0  ;;  %v2395_v32 = vadd.f32 %v2394_v52, %v4427_v3 }
 0x266   : > { %v2655_v7 = vadd.f32 %v2654_v2, %v2566_v15 }
 0x268   : > { %2693 = vmatmul.bf16.gmra.mxu0 %v4415_v27  ;;  %v2721_v28 = vadd.f32 %v2720_v62, %v2655_v7  ;;  %v2759_v19 = vmul.f32 %v2655_v7, %v2655_v7  ;;  %2520 = vmatmul.bf16.gmra.mxu2 %v3992_v44  ;;  %v1333_v62 = vrot.slane %v4438_v41, 1 }
 0x26a   : > { %v2790_v37 = vadd.f32 %v2789_v8, %v2759_v19  ;;  %v2567_v63 = vpop.f32.mrf.mxu3 }
 0x26b   : > { %v2568_v53 = vadd.f32 %v2567_v63, %v2479_v42  ;;  %v2481_v1 = vpop.f32.mrf.mxu2 }
 0x26c   : > { %v2397_v16 = vpop.f32.mrf.mxu1  ;;  %v2482_v59 = vadd.f32 %v2481_v1, %v2393_v17 }
 0x26d   : > { %v2656_v12 = vpop.f32.mrf.mxu0  ;;  %v2398_v3 = vadd.f32 %v2397_v16, %v4440_v38 }
 0x26e   : > { %v2657_v21 = vadd.f32 %v2656_v12, %v2568_v53 }
 0x26f   : > { %2609 = vmatmul.bf16.gmra.mxu3 %v4425_v31  ;;  %2436 = vmatmul.bf16.gmra.mxu1 %v4434_v18 }
 0x270   : > { %v2722_v27 = vadd.f32 %v2721_v28, %v2657_v21  ;;  %v2760_v57 = vmul.f32 %v2657_v21, %v2657_v21  ;;  %v3400_v51 = vpack.c.bf16 %v2657_v21, %v2655_v7 }
 0x272   : > { %v2791_v34 = vadd.f32 %v2790_v37, %v2760_v57  ;;  %3468 = vst [vmem:[%s4557_s11 + $0x20] sm:$0xff] %v3400_v51   ;;  %v2570_v44 = vpop.f32.mrf.mxu3 }
 0x273   : > { %v2571_v61 = vadd.f32 %v2570_v44, %v2482_v59  ;;  %v2483_v20 = vpop.f32.mrf.mxu2  ;;  %v4746_v44 = vld [vmem:[#allocation9_spill] sm:$0xff] }
 0x274   : > { %v2399_v13 = vpop.f32.mrf.mxu1  ;;  %v2484_v36 = vadd.f32 %v2483_v20, %v2395_v32 }
 0x275   : > { %v2659_v10 = vpop.f32.mrf.mxu0  ;;  %v2400_v63 = vadd.f32 %v2399_v13, %v4452_v9 }
 0x276   : > { %v2660_v24 = vadd.f32 %v2659_v10, %v2571_v61 }
 0x278   : > { %2698 = vmatmul.bf16.gmra.mxu0 %v4434_v18  ;;  %v2723_v31 = vadd.f32 %v2722_v27, %v2660_v24  ;;  %v2761_v6 = vmul.f32 %v2660_v24, %v2660_v24  ;;  %2525 = vmatmul.bf16.gmra.mxu2 %v4438_v41  ;;  %v1335_v18 = vsel %vm1253_vm4, %v1333_v62, %v1334_v54  ;;  %v4747_v54 = vld [vmem:[#allocation10_spill] sm:$0xff] }
 0x27a   : > { %v2792_v35 = vadd.f32 %v2791_v34, %v2761_v6  ;;  %v2572_v60 = vpop.f32.mrf.mxu3 }
 0x27b   : > { %v2573_v11 = vadd.f32 %v2572_v60, %v2484_v36  ;;  %v2486_v8 = vpop.f32.mrf.mxu2 }
 0x27c   : > { %v2402_v14 = vpop.f32.mrf.mxu1  ;;  %v2487_v52 = vadd.f32 %v2486_v8, %v2398_v3 }
 0x27d   : > { %v2661_v15 = vpop.f32.mrf.mxu0  ;;  %v2403_v51 = vadd.f32 %v2402_v14, %v4460_v45 }
 0x27e   : > { %v2662_v47 = vadd.f32 %v2661_v15, %v2573_v11 }
 0x27f   : > { %2614 = vmatmul.bf16.gmra.mxu3 %v4458_v29  ;;  %2441 = vmatmul.bf16.gmra.mxu1 %v1335_v18  ;;  %v4745_v29 = vld [vmem:[#allocation2_spill] sm:$0xff] }
 0x280   : > { %v2724_v2 = vadd.f32 %v2723_v31, %v2662_v47  ;;  %v2762_v5 = vmul.f32 %v2662_v47, %v2662_v47  ;;  %v3405_v7 = vpack.c.bf16 %v2662_v47, %v2660_v24 }
 0x282   : > { %v2793_v41 = vadd.f32 %v2792_v35, %v2762_v5  ;;  %3469 = vst [vmem:[%s4557_s11 + $0x28] sm:$0xff] %v3405_v7   ;;  %v2575_v42 = vpop.f32.mrf.mxu3 }
 0x283   : > { %v2576_v0 = vadd.f32 %v2575_v42, %v2487_v52  ;;  %v2488_v28 = vpop.f32.mrf.mxu2 }
 0x284   : > { %v2404_v19 = vpop.f32.mrf.mxu1  ;;  %v2489_v53 = vadd.f32 %v2488_v28, %v2400_v63 }
 0x285   : > { %v2664_v37 = vpop.f32.mrf.mxu0  ;;  %v2405_v35 = vadd.f32 %v2404_v19, %v4465_v23 }
 0x286   : > { %v2665_v38 = vadd.f32 %v2664_v37, %v2576_v0 }
 0x288   : > { %2703 = vmatmul.bf16.gmra.mxu0 %v1335_v18  ;;  %v2725_v1 = vadd.f32 %v2724_v2, %v2665_v38  ;;  %v2763_v16 = vmul.f32 %v2665_v38, %v2665_v38  ;;  %2530 = vmatmul.bf16.gmra.mxu2 %v4745_v29 }
 0x28a   : > { %v2794_v12 = vadd.f32 %v2793_v41, %v2763_v16  ;;  %v2577_v17 = vpop.f32.mrf.mxu3 }
 0x28b   : > { %v2578_v21 = vadd.f32 %v2577_v17, %v2489_v53  ;;  %v2491_v59 = vpop.f32.mrf.mxu2 }
 0x28c   : > { %v2407_v27 = vpop.f32.mrf.mxu1  ;;  %v2492_v9 = vadd.f32 %v2491_v59, %v2403_v51 }
 0x28d   : > { %v2666_v57 = vpop.f32.mrf.mxu0  ;;  %v2408_v52 = vadd.f32 %v2407_v27, %v4470_v46 }
 0x28e   : > { %v2667_v34 = vadd.f32 %v2666_v57, %v2578_v21 }
 0x28f   : > { %2619 = vmatmul.bf16.gmra.mxu3 %v4746_v44 }
 0x290   : > { %v2726_v61 = vadd.f32 %v2725_v1, %v2667_v34  ;;  %v2764_v20 = vmul.f32 %v2667_v34, %v2667_v34  ;;  %v3410_v13 = vpack.c.bf16 %v2667_v34, %v2665_v38 }
 0x292   : > { %v2795_v10 = vadd.f32 %v2794_v12, %v2764_v20  ;;  %3470 = vst [vmem:[%s4557_s11 + $0x30] sm:$0xff] %v3410_v13   ;;  %v2580_v32 = vpop.f32.mrf.mxu3 }
 0x293   : > { %v2581_v24 = vadd.f32 %v2580_v32, %v2492_v9  ;;  %v2493_v36 = vpop.f32.mrf.mxu2 }
 0x294   : > { %v2409_v31 = vpop.f32.mrf.mxu1  ;;  %v2494_v62 = vadd.f32 %v2493_v36, %v2405_v35 }
 0x295   : > { %v2669_v6 = vpop.f32.mrf.mxu0  ;;  %v2410_v38 = vadd.f32 %v2409_v31, %v4475_v4 }
 0x296   : > { %v2670_v60 = vadd.f32 %v2669_v6, %v2581_v24 }
 0x298   : > { %2708 = vmatmul.bf16.gmra.mxu0 %v4747_v54  ;;  %v2727_v45 = vadd.f32 %v2726_v61, %v2670_v60  ;;  %v2765_v11 = vmul.f32 %v2670_v60, %v2670_v60 }
 0x29a   : > { %v2796_v8 = vadd.f32 %v2795_v10, %v2765_v11  ;;  %v2582_v14 = vpop.f32.mrf.mxu3 }
 0x29b   : > { %v2583_v15 = vadd.f32 %v2582_v14, %v2494_v62  ;;  %v2496_v3 = vpop.f32.mrf.mxu2 }
 0x29c   : > { %v2412_v47 = vpop.f32.mrf.mxu1  ;;  %v2497_v5 = vadd.f32 %v2496_v3, %v2408_v52 }
 0x29d   : > { %v2671_v18 = vpop.f32.mrf.mxu0  ;;  %v2413_v57 = vadd.f32 %v2412_v47, %v4480_v33 }
 0x29e   : > { %v2672_v2 = vadd.f32 %v2671_v18, %v2583_v15 }
 0x2a0   : > { %v2728_v7 = vadd.f32 %v2727_v45, %v2672_v2  ;;  %v2766_v41 = vmul.f32 %v2672_v2, %v2672_v2  ;;  %v3415_v23 = vpack.c.bf16 %v2672_v2, %v2670_v60 }
 0x2a2   : > { %v2797_v42 = vadd.f32 %v2796_v8, %v2766_v41  ;;  %3471 = vst [vmem:[%s4557_s11 + $0x38] sm:$0xff] %v3415_v23   ;;  %v2585_v0 = vpop.f32.mrf.mxu3 }
 0x2a3   : > { %v2586_v28 = vadd.f32 %v2585_v0, %v2497_v5  ;;  %v2498_v19 = vpop.f32.mrf.mxu2 }
 0x2a4   : > { %v2414_v37 = vpop.f32.mrf.mxu1  ;;  %v2499_v1 = vadd.f32 %v2498_v19, %v2410_v38 }
 0x2a5   : > { %v2674_v63 = vpop.f32.mrf.mxu0  ;;  %v2415_v36 = vadd.f32 %v2414_v37, %v4485_v22 }
 0x2a6   : > { %v2675_v53 = vadd.f32 %v2674_v63, %v2586_v28 }
 0x2a8   : > { %v2729_v16 = vadd.f32 %v2728_v7, %v2675_v53  ;;  %v2767_v29 = vmul.f32 %v2675_v53, %v2675_v53 }
 0x2aa   : > { %v2798_v46 = vadd.f32 %v2797_v42, %v2767_v29  ;;  %v2587_v12 = vpop.f32.mrf.mxu3 }
 0x2ab   : > { %v2588_v17 = vadd.f32 %v2587_v12, %v2499_v1  ;;  %v2501_v21 = vpop.f32.mrf.mxu2 }
 0x2ac   : > { %v2417_v59 = vpop.f32.mrf.mxu1  ;;  %v2502_v34 = vadd.f32 %v2501_v21, %v2413_v57 }
 0x2ad   : > { %v2676_v27 = vpop.f32.mrf.mxu0  ;;  %v2418_v14 = vadd.f32 %v2417_v59, %v4490_v55 }
 0x2ae   : > { %v2677_v51 = vadd.f32 %v2676_v27, %v2588_v17 }
 0x2b0   : > { %v2730_v44 = vadd.f32 %v2729_v16, %v2677_v51  ;;  %v2768_v9 = vmul.f32 %v2677_v51, %v2677_v51  ;;  %v3420_v61 = vpack.c.bf16 %v2677_v51, %v2675_v53 }
 0x2b2   : > { %v2799_v20 = vadd.f32 %v2798_v46, %v2768_v9  ;;  %3472 = vst [vmem:[%s4557_s11 + $0x40] sm:$0xff] %v3420_v61   ;;  %v2590_v4 = vpop.f32.mrf.mxu3 }
 0x2b3   : > { %v2591_v13 = vadd.f32 %v2590_v4, %v2502_v34  ;;  %v2503_v10 = vpop.f32.mrf.mxu2 }
 0x2b4   : > { %v2419_v32 = vpop.f32.mrf.mxu1  ;;  %v2504_v6 = vadd.f32 %v2503_v10, %v2415_v36 }
 0x2b5   : > { %v2679_v24 = vpop.f32.mrf.mxu0  ;;  %v2420_v42 = vadd.f32 %v2419_v32, %v4495_v26 }
 0x2b6   : > { %v2680_v31 = vadd.f32 %v2679_v24, %v2591_v13 }
 0x2b8   : > { %v2731_v35 = vadd.f32 %v2730_v44, %v2680_v31  ;;  %v2769_v60 = vmul.f32 %v2680_v31, %v2680_v31 }
 0x2ba   : > { %v2800_v33 = vadd.f32 %v2799_v20, %v2769_v60  ;;  %v2592_v62 = vpop.f32.mrf.mxu3 }
 0x2bb   : > { %v2593_v54 = vadd.f32 %v2592_v62, %v2504_v6  ;;  %v2506_v45 = vpop.f32.mrf.mxu2 }
 0x2bc   : > { %v2422_v11 = vpop.f32.mrf.mxu1  ;;  %v2507_v3 = vadd.f32 %v2506_v45, %v2418_v14 }
 0x2bd   : > { %v2681_v8 = vpop.f32.mrf.mxu0  ;;  %v2423_v29 = vadd.f32 %v2422_v11, %v4500_v49 }
 0x2be   : > { %v2682_v15 = vadd.f32 %v2681_v8, %v2593_v54 }
 0x2c0   : > { %v2732_v47 = vadd.f32 %v2731_v35, %v2682_v15  ;;  %v2770_v18 = vmul.f32 %v2682_v15, %v2682_v15  ;;  %v3425_v52 = vpack.c.bf16 %v2682_v15, %v2680_v31 }
 0x2c2   : > { %v2801_v2 = vadd.f32 %v2800_v33, %v2770_v18  ;;  %3473 = vst [vmem:[%s4557_s11 + $0x48] sm:$0xff] %v3425_v52   ;;  %v2595_v22 = vpop.f32.mrf.mxu3 }
 0x2c3   : > { %v2596_v5 = vadd.f32 %v2595_v22, %v2507_v3  ;;  %v2508_v7 = vpop.f32.mrf.mxu2 }
 0x2c4   : > { %v2424_v41 = vpop.f32.mrf.mxu1  ;;  %v2509_v28 = vadd.f32 %v2508_v7, %v2420_v42 }
 0x2c5   : > { %v2684_v23 = vpop.f32.mrf.mxu0  ;;  %v2425_v44 = vadd.f32 %v2424_v41, %v4505_v50 }
 0x2c6   : > { %v2685_v0 = vadd.f32 %v2684_v23, %v2596_v5 }
 0x2c8   : > { %v2733_v19 = vadd.f32 %v2732_v47, %v2685_v0  ;;  %v2771_v37 = vmul.f32 %v2685_v0, %v2685_v0 }
 0x2ca   : > { %v2802_v55 = vadd.f32 %v2801_v2, %v2771_v37  ;;  %v2597_v63 = vpop.f32.mrf.mxu3 }
 0x2cb   : > { %v2598_v38 = vadd.f32 %v2597_v63, %v2509_v28  ;;  %v2511_v53 = vpop.f32.mrf.mxu2 }
 0x2cc   : > { %v2427_v1 = vpop.f32.mrf.mxu1  ;;  %v2512_v12 = vadd.f32 %v2511_v53, %v2423_v29 }
 0x2cd   : > { %v2686_v16 = vpop.f32.mrf.mxu0  ;;  %v2428_v31 = vadd.f32 %v2427_v1, %v4510_v56 }
 0x2ce   : > { %v2687_v46 = vadd.f32 %v2686_v16, %v2598_v38 }
 0x2d0   : > { %v2734_v17 = vadd.f32 %v2733_v19, %v2687_v46  ;;  %v2772_v21 = vmul.f32 %v2687_v46, %v2687_v46  ;;  %v3430_v59 = vpack.c.bf16 %v2687_v46, %v2685_v0 }
 0x2d2   : > { %v2803_v27 = vadd.f32 %v2802_v55, %v2772_v21  ;;  %3474 = vst [vmem:[%s4557_s11 + $0x50] sm:$0xff] %v3430_v59   ;;  %v2600_v26 = vpop.f32.mrf.mxu3 }
 0x2d3   : > { %v2601_v57 = vadd.f32 %v2600_v26, %v2512_v12  ;;  %v2513_v51 = vpop.f32.mrf.mxu2 }
 0x2d4   : > { %v2429_v61 = vpop.f32.mrf.mxu1  ;;  %v2514_v20 = vadd.f32 %v2513_v51, %v2425_v44 }
 0x2d5   : > { %v2689_v34 = vpop.f32.mrf.mxu0  ;;  %v2430_v15 = vadd.f32 %v2429_v61, %v4515_v30 }
 0x2d6   : > { %v2690_v9 = vadd.f32 %v2689_v34, %v2601_v57 }
 0x2d8   : > { %v2735_v4 = vadd.f32 %v2734_v17, %v2690_v9  ;;  %v2773_v13 = vmul.f32 %v2690_v9, %v2690_v9 }
 0x2da   : > { %v2804_v49 = vadd.f32 %v2803_v27, %v2773_v13  ;;  %v2602_v10 = vpop.f32.mrf.mxu3 }
 0x2db   : > { %v2603_v32 = vadd.f32 %v2602_v10, %v2514_v20  ;;  %v2516_v24 = vpop.f32.mrf.mxu2 }
 0x2dc   : > { %v2517_v35 = vadd.f32 %v2516_v24, %v2428_v31  ;;  %v2432_v54 = vpop.f32.mrf.mxu1 }
 0x2dd   : > { %v2691_v36 = vpop.f32.mrf.mxu0  ;;  %v2433_v23 = vadd.f32 %v2432_v54, %v4520_v43 }
 0x2de   : > { %v2692_v6 = vadd.f32 %v2691_v36, %v2603_v32 }
 0x2e0   : > { %v2736_v60 = vadd.f32 %v2735_v4, %v2692_v6  ;;  %v2774_v33 = vmul.f32 %v2692_v6, %v2692_v6  ;;  %v3435_v62 = vpack.c.bf16 %v2692_v6, %v2690_v9 }
 0x2e2   : > { %v2805_v50 = vadd.f32 %v2804_v49, %v2774_v33  ;;  %3475 = vst [vmem:[%s4557_s11 + $0x58] sm:$0xff] %v3435_v62   ;;  %v2605_v45 = vpop.f32.mrf.mxu3 }
 0x2e3   : > { %v2606_v11 = vadd.f32 %v2605_v45, %v2517_v35  ;;  %v2518_v8 = vpop.f32.mrf.mxu2 }
 0x2e4   : > { %v2519_v47 = vadd.f32 %v2518_v8, %v2430_v15  ;;  %v2434_v22 = vpop.f32.mrf.mxu1 }
 0x2e5   : > { %v2694_v14 = vpop.f32.mrf.mxu0  ;;  %v2435_v16 = vadd.f32 %v2434_v22, %v4525_v25 }
 0x2e6   : > { %v2695_v3 = vadd.f32 %v2694_v14, %v2606_v11 }
 0x2e8   : > { %v2737_v18 = vadd.f32 %v2736_v60, %v2695_v3  ;;  %v2775_v52 = vmul.f32 %v2695_v3, %v2695_v3 }
 0x2ea   : > { %v2806_v56 = vadd.f32 %v2805_v50, %v2775_v52  ;;  %v2607_v2 = vpop.f32.mrf.mxu3 }
 0x2eb   : > { %v2608_v5 = vadd.f32 %v2607_v2, %v2519_v47  ;;  %v2521_v7 = vpop.f32.mrf.mxu2 }
 0x2ec   : > { %v2522_v0 = vadd.f32 %v2521_v7, %v2433_v23  ;;  %v2437_v53 = vpop.f32.mrf.mxu1 }
 0x2ed   : > { %v2696_v41 = vpop.f32.mrf.mxu0  ;;  %v2438_v57 = vadd.f32 %v2437_v53, %v4530_v40 }
 0x2ee   : > { %v2697_v42 = vadd.f32 %v2696_v41, %v2608_v5 }
 0x2f0   : > { %v2738_v28 = vadd.f32 %v2737_v18, %v2697_v42  ;;  %v2776_v19 = vmul.f32 %v2697_v42, %v2697_v42  ;;  %v3440_v37 = vpack.c.bf16 %v2697_v42, %v2695_v3 }
 0x2f2   : > { %v2807_v55 = vadd.f32 %v2806_v56, %v2776_v19  ;;  %3476 = vst [vmem:[%s4557_s11 + $0x60] sm:$0xff] %v3440_v37   ;;  %v2610_v30 = vpop.f32.mrf.mxu3 }
 0x2f3   : > { %v2611_v63 = vadd.f32 %v2610_v30, %v2522_v0  ;;  %v2523_v38 = vpop.f32.mrf.mxu2 }
 0x2f4   : > { %v2524_v46 = vadd.f32 %v2523_v38, %v2435_v16  ;;  %v2439_v34 = vpop.f32.mrf.mxu1 }
 0x2f5   : > { %v2699_v1 = vpop.f32.mrf.mxu0  ;;  %v2440_v32 = vadd.f32 %v2439_v34, %v4535_v39 }
 0x2f6   : > { %v2700_v29 = vadd.f32 %v2699_v1, %v2611_v63 }
 0x2f8   : > { %v2739_v12 = vadd.f32 %v2738_v28, %v2700_v29  ;;  %v2777_v17 = vmul.f32 %v2700_v29, %v2700_v29 }
 0x2fa   : > { %v2808_v43 = vadd.f32 %v2807_v55, %v2777_v17  ;;  %v2612_v21 = vpop.f32.mrf.mxu3 }
 0x2fb   : > { %v2613_v59 = vadd.f32 %v2612_v21, %v2524_v46  ;;  %v2526_v27 = vpop.f32.mrf.mxu2 }
 0x2fc   : > { %v2527_v44 = vadd.f32 %v2526_v27, %v2438_v57  ;;  %v2442_v40 = vpop.f32.mrf.mxu1 }
 0x2fd   : > { %v2701_v26 = vpop.f32.mrf.mxu0  ;;  %v2443_v50 = vadd.f32 %v2442_v40, %v4540_v48 }
 0x2fe   : > { %v2702_v51 = vadd.f32 %v2701_v26, %v2613_v59 }
 0x300   : > { %v2740_v9 = vadd.f32 %v2739_v12, %v2702_v51  ;;  %v2778_v61 = vmul.f32 %v2702_v51, %v2702_v51  ;;  %v3445_v20 = vpack.c.bf16 %v2702_v51, %v2700_v29 }
 0x302   : > { %v2809_v4 = vadd.f32 %v2808_v43, %v2778_v61  ;;  %3477 = vst [vmem:[%s4557_s11 + $0x68] sm:$0xff] %v3445_v20   ;;  %v2615_v25 = vpop.f32.mrf.mxu3 }
 0x303   : > { %v2616_v13 = vadd.f32 %v2615_v25, %v2527_v44  ;;  %v2528_v49 = vpop.f32.mrf.mxu2 }
 0x304   : > { %v2529_v36 = vadd.f32 %v2528_v49, %v2440_v32  ;;  %v2444_v47 = vpop.f32.mrf.mxu1 }
 0x305   : > { %v2704_v10 = vpop.f32.mrf.mxu0  ;;  %v2445_v2 = vadd.f32 %v2444_v47, %v4544_v58 }
 0x306   : > { %v2705_v24 = vadd.f32 %v2704_v10, %v2616_v13 }
 0x308   : > { %v2741_v31 = vadd.f32 %v2740_v9, %v2705_v24  ;;  %v2779_v6 = vmul.f32 %v2705_v24, %v2705_v24 }
 0x30a   : > { %v2810_v35 = vadd.f32 %v2809_v4, %v2779_v6  ;;  %v2617_v60 = vpop.f32.mrf.mxu3 }
 0x30b   : > { %v2618_v33 = vadd.f32 %v2617_v60, %v2529_v36  ;;  %v2531_v62 = vpop.f32.mrf.mxu2 }
 0x30c   : > { %v2532_v11 = vadd.f32 %v2531_v62, %v2443_v50 }
 0x30d   : > { %v2706_v54 = vpop.f32.mrf.mxu0 }
 0x30e   : > { %v2707_v45 = vadd.f32 %v2706_v54, %v2618_v33 }
 0x310   : > { %v2742_v8 = vadd.f32 %v2741_v31, %v2707_v45  ;;  %v2780_v14 = vmul.f32 %v2707_v45, %v2707_v45  ;;  %v3450_v15 = vpack.c.bf16 %v2707_v45, %v2705_v24 }
 0x312   : > { %v2811_v3 = vadd.f32 %v2810_v35, %v2780_v14  ;;  %3478 = vst [vmem:[%s4557_s11 + $0x70] sm:$0xff] %v3450_v15   ;;  %v2620_v39 = vpop.f32.mrf.mxu3 }
 0x313   : > { %v2621_v18 = vadd.f32 %v2620_v39, %v2532_v11  ;;  %v2533_v52 = vpop.f32.mrf.mxu2 }
 0x314   : > { %v2534_v5 = vadd.f32 %v2533_v52, %v2445_v2 }
 0x315   : > { %v2709_v56 = vpop.f32.mrf.mxu0 }
 0x316   : > { %v2710_v22 = vadd.f32 %v2709_v56, %v2621_v18 }
 0x318   : > { %v2743_v7 = vadd.f32 %v2742_v8, %v2710_v22  ;;  %v2781_v41 = vmul.f32 %v2710_v22, %v2710_v22 }
 0x31a   : > { %v2812_v48 = vadd.f32 %v2811_v3, %v2781_v41  ;;  %v2622_v23 = vpop.f32.mrf.mxu3 }
 0x31b   : > { %v2623_v42 = vadd.f32 %v2622_v23, %v2534_v5 }
 0x31d   : > { %v2711_v0 = vpop.f32.mrf.mxu0 }
 0x31e   : > { %v2712_v28 = vadd.f32 %v2711_v0, %v2623_v42 }
 0x320   : > { %v2744_v19 = vadd.f32 %v2743_v7, %v2712_v28  ;;  %v2782_v37 = vmul.f32 %v2712_v28, %v2712_v28  ;;  %v3455_v55 = vpack.c.bf16 %v2712_v28, %v2710_v22 }
 0x322   : > { %v2745_v30 = vrot.slane %v2744_v19, 4  ;;  %v2813_v63 = vadd.f32 %v2812_v48, %v2782_v37  ;;  %3479 = vst [vmem:[%s4557_s11 + $0x78] sm:$0xff] %v3455_v55  }
 0x324   : > { %v2746_v38 = vadd.f32 %v2745_v30, %v2744_v19  ;;  %v2814_v53 = vrot.slane %v2813_v63, 4 }
 0x326   : > { %v2747_v1 = vrot.slane %v2746_v38, 2  ;;  %v2815_v58 = vadd.f32 %v2814_v53, %v2813_v63 }
 0x328   : > { %v2748_v16 = vadd.f32 %v2747_v1, %v2746_v38  ;;  %v2816_v29 = vrot.slane %v2815_v58, 2 }
 0x32a   : > { %v2749_v46 = vrot.slane %v2748_v16, 1  ;;  %v2817_v12 = vadd.f32 %v2816_v29, %v2815_v58 }
 0x32c   : > { %v2818_v17 = vrot.slane %v2817_v12, 1  ;;  %v2750_v43 = vadd.f32 %v2749_v46, %v2748_v16 }
 0x32e   : > { %v2819_v21 = vadd.f32 %v2818_v17, %v2817_v12 }
 0x330   : > { %v2821_v59 = vsel %vm976_vm0, %v2750_v43, %v2819_v21 }
 0x331   : > { %2822 = vst [vmem:[%s208_s17] sm:$0x3] %v2821_v59 }
 0x332 PF: > { %s15_s15 = sadd.s32 1, %s3524_s15  }
 0x333   : > { %p12_p4 = scmp.ge.s32.totalorder %s15_s15, 4  }
 0x335   :  { %14 = sbr.rel (!%p12_p4) target bundleno = 1 (0x1), region = 74 }

</bundles_post_ra>
